<compile_context>
chip_gen: v7x
topology: tpu7x:2x2x1
jax: 0.10.0
libtpu: 0.0.40
codegen_flags: <defaults>
</compile_context>

<pallas_src>
import jax
import jax.numpy as jnp
import numpy as np
from jax import lax
from jax.experimental import pallas as pl
from jax.experimental.pallas import tpu as pltpu

LANE = 128
KH = KW = 3          # conv2 is 3x3, padding=1, stride=1, bias=False


def _round_up(n, m):
    return ((n + m - 1) // m) * m


def _pad_last(a, target):
    pad = target - a.shape[-1]
    if pad == 0:
        return a
    return jnp.pad(a, [(0, 0)] * (a.ndim - 1) + [(0, pad)])


def _pad_to(a, shape):
    pads = [(0, t - s) for s, t in zip(a.shape, shape)]
    if not any(p[1] for p in pads):
        return a
    return jnp.pad(a, pads)


def bottleneck_kernel(x_ref, w1_ref, w2_ref, w3_ref,
                      s1_ref, b1_ref, s2_ref, b2_ref, s3_ref, b3_ref,
                      mask_ref, out_ref, mid_ref, slab_ref):
    """One image per grid step.  x_ref: (1, H*W, Cp) f32; weights bf16;
    mid_ref: (H+2, W+2, Wp) bf16 halo scratch; slab_ref: (H*W, 9*Wp) bf16 im2col."""
    hw, cp = x_ref.shape[1], x_ref.shape[2]
    hh = mid_ref.shape[0] - 2
    ww = mid_ref.shape[1] - 2
    wp = mid_ref.shape[2]

    x = x_ref[0]                                             # (H*W, Cp) f32

    # ---- conv1 (1x1) + bn1 (folded) + relu : single MXU matmul ----
    h1 = jnp.dot(x.astype(jnp.bfloat16), w1_ref[...],
                 preferred_element_type=jnp.float32)
    h1 = jnp.maximum(h1 * s1_ref[...] + b1_ref[...], 0.0)

    # ---- zero-halo intermediate, written with ONE dense aligned store ----
    # (scratch is fully rewritten every step -> safe under "parallel" batch sharding)
    h1_3d = h1.astype(jnp.bfloat16).reshape(hh, ww, wp)
    zrow = jnp.zeros((1, ww + 2, wp), jnp.bfloat16)
    zcol = jnp.zeros((hh, 1, wp), jnp.bfloat16)
    mid_ref[...] = jnp.concatenate(
        [zrow, jnp.concatenate([zcol, h1_3d, zcol], axis=1), zrow], axis=0)

    # ---- conv2 (3x3, pad 1, stride 1) as ONE im2col matmul, K = 9*Wp ----
    for t in range(KH * KW):                     # lane-aligned 128-wide stores
        kh, kw = t // KW, t % KW
        slab_ref[:, t * wp:(t + 1) * wp] = (
            mid_ref[kh:kh + hh, kw:kw + ww, :].reshape(hw, wp))
    h2 = jnp.dot(slab_ref[...], w2_ref[...], preferred_element_type=jnp.float32)
    h2 = jnp.maximum(h2 * s2_ref[...] + b2_ref[...], 0.0)

    # ---- conv3 (1x1) + bn3 (folded) ----
    h3 = jnp.dot(h2.astype(jnp.bfloat16), w3_ref[...],
                 preferred_element_type=jnp.float32)
    h3 = h3 * s3_ref[...] + b3_ref[...]

    # ---- shortcut (downsample=None): identity = x masked to shortcut_idx ----
    out_ref[0] = jnp.maximum(h3 + x * mask_ref[...], 0.0)


def bottleneck_forward(x_nchw, w1, w2_hwio, w3, bn1, bn2, bn3,
                       shortcut_mask, eps=1e-5):
    """x_nchw: (N, Cin, H, W).  w1: (Cin, width), w2_hwio: (3,3,width,width),
    w3: (width, Cout).  bn* = (gamma, beta, running_mean, running_var).
    Requires Cin == Cout (downsample=None residual path)."""
    n, cin, h, w = x_nchw.shape
    width = w1.shape[1]
    cout = w3.shape[1]
    assert cin == cout, "downsample=None requires inplanes == planes*expansion"
    assert (h * w) % 8 == 0

    cp = _round_up(max(cin, cout), LANE)      # lane-dense activation channels
    wp = _round_up(width, LANE)               # lane-dense bottleneck width

    # NCHW -> NHWC -> (N, H*W, Cp).  In a real pipeline this padded layout would
    # be the end-to-end activation layout (no per-block transpose/pad).
    x = jnp.transpose(x_nchw, (0, 2, 3, 1)).astype(jnp.float32)
    x = _pad_last(x.reshape(n, h * w, cin), cp)

    # Zero-pad + bf16-cast weights once; reshape conv2 weight to im2col (9*Wp, Wp).
    w1_p = _pad_to(w1, (cp, wp)).astype(jnp.bfloat16)
    w2_p = _pad_to(w2_hwio, (KH, KW, wp, wp)).astype(jnp.bfloat16)
    w2_p = w2_p.reshape(KH * KW * wp, wp)
    w3_p = _pad_to(w3, (wp, cp)).astype(jnp.bfloat16)

    # Fold BatchNorm (eval mode, running stats) into per-channel scale/bias.
    def fold(bn, cpad):
        g, b, m, v = bn
        s = g / jnp.sqrt(v + eps)
        t = b - m * s
        return (_pad_last(s.reshape(1, -1), cpad).astype(jnp.float32),
                _pad_last(t.reshape(1, -1), cpad).astype(jnp.float32))

    s1, b1 = fold(bn1, wp)
    s2, b2 = fold(bn2, wp)
    s3, b3 = fold(bn3, cp)
    mask = _pad_last(shortcut_mask.astype(jnp.float32).reshape(1, -1), cp)

    hw = h * w
    grid_spec = pltpu.PrefetchScalarGridSpec(
        num_scalar_prefetch=0,
        grid=(n,),
        in_specs=[
            pl.BlockSpec((1, hw, cp), lambda i: (i, 0, 0)),       # x
            pl.BlockSpec((cp, wp), lambda i: (0, 0)),             # w1 (constant idx -> one DMA)
            pl.BlockSpec((KH * KW * wp, wp), lambda i: (0, 0)),   # w2 (im2col layout)
            pl.BlockSpec((wp, cp), lambda i: (0, 0)),             # w3
            pl.BlockSpec((1, wp), lambda i: (0, 0)),              # s1
            pl.BlockSpec((1, wp), lambda i: (0, 0)),              # b1
            pl.BlockSpec((1, wp), lambda i: (0, 0)),              # s2
            pl.BlockSpec((1, wp), lambda i: (0, 0)),              # b2
            pl.BlockSpec((1, cp), lambda i: (0, 0)),              # s3
            pl.BlockSpec((1, cp), lambda i: (0, 0)),              # b3
            pl.BlockSpec((1, cp), lambda i: (0, 0)),              # shortcut mask
        ],
        out_specs=pl.BlockSpec((1, hw, cp), lambda i: (i, 0, 0)),
        scratch_shapes=[
            pltpu.VMEM((h + 2, w + 2, wp), jnp.bfloat16),          # halo'd conv1 output
            pltpu.VMEM((hw, KH * KW * wp), jnp.bfloat16),          # im2col slab
        ],
    )

    out = pl.pallas_call(
        bottleneck_kernel,
        out_shape=jax.ShapeDtypeStruct((n, hw, cp), jnp.float32),
        grid_spec=grid_spec,
        compiler_params=pltpu.CompilerParams(
            dimension_semantics=("parallel",)),    # shard batch over both TCs on v7x
    )(x, w1_p, w2_p, w3_p, s1, b1, s2, b2, s3, b3, mask)

    out = out[:, :, :cout].reshape(n, h, w, cout)
    return jnp.transpose(out, (0, 3, 1, 2))        # NHWC -> NCHW (module interface)


# ------------------------- pure-JAX f32 reference ---------------------------
def reference_forward(x_nchw, w1, w2_hwio, w3, bn1, bn2, bn3,
                      shortcut_mask, eps=1e-5):
    x = jnp.transpose(x_nchw, (0, 2, 3, 1)).astype(jnp.float32)

    def fold(bn):
        g, b, m, v = bn
        s = g / jnp.sqrt(v + eps)
        return s, b - m * s

    s1, b1 = fold(bn1)
    s2, b2 = fold(bn2)
    s3, b3 = fold(bn3)
    hcur = jnp.maximum(jnp.einsum('nhwc,cd->nhwd', x, w1) * s1 + b1, 0.0)
    hcur = lax.conv_general_dilated(
        hcur, w2_hwio, (1, 1), 'SAME',
        dimension_numbers=('NHWC', 'HWIO', 'NHWC'))
    hcur = jnp.maximum(hcur * s2 + b2, 0.0)
    hcur = jnp.einsum('nhwc,cd->nhwd', hcur, w3) * s3 + b3
    out = jnp.maximum(hcur + x * shortcut_mask.astype(jnp.float32), 0.0)
    return jnp.transpose(out, (0, 3, 1, 2))


if __name__ == "__main__":
    # Bottleneck with downsample=None and stride=1 requires
    # inplanes == planes * expansion for the residual add to be shape-consistent.
    N, H, W = 2, 16, 16
    planes, expansion, base_width, groups = 4, 4, 64, 1
    width = int(planes * (base_width / 64.0)) * groups      # = 4
    inplanes = planes * expansion                           # = 16
    # TODO(synk): stride>1 / groups>1 / dilation>1 / downsample-module variants not implemented.

    key = jax.random.PRNGKey(0)
    ks = jax.random.split(key, 8)

    x = jax.random.normal(ks[0], (N, inplanes, H, W), jnp.float32)

    w1 = jax.random.normal(ks[1], (inplanes, width), jnp.float32) * (2.0 / inplanes) ** 0.5
    w2 = jax.random.normal(ks[2], (KH, KW, width, width), jnp.float32) * (2.0 / (9 * width)) ** 0.5
    w3 = jax.random.normal(ks[3], (width, inplanes), jnp.float32) * (2.0 / width) ** 0.5

    def make_bn(k, c):
        k1, k2, k3, k4 = jax.random.split(k, 4)
        gamma = jax.random.uniform(k1, (c,), jnp.float32, 0.7, 1.3)
        beta = 0.1 * jax.random.normal(k2, (c,), jnp.float32)
        mean = 0.1 * jax.random.normal(k3, (c,), jnp.float32)
        var = jax.random.uniform(k4, (c,), jnp.float32, 0.7, 1.3)
        return gamma, beta, mean, var

    bn1 = make_bn(ks[4], width)
    bn2 = make_bn(ks[5], width)
    bn3 = make_bn(ks[6], inplanes)

    # shortcut_idx is injected externally in the original model zoo; pick a
    # deterministic subset (even channels) here.
    shortcut_idx = jnp.arange(0, inplanes, 2)
    shortcut_mask = jnp.zeros((inplanes,), jnp.float32).at[shortcut_idx].set(1.0)

    out = bottleneck_forward(x, w1, w2, w3, bn1, bn2, bn3, shortcut_mask)
    out = jax.block_until_ready(out)

    ref = reference_forward(x, w1, w2, w3, bn1, bn2, bn3, shortcut_mask)
    ref = jax.block_until_ready(ref)

    assert out.shape == (N, inplanes, H, W)
    # bf16 MXU inputs (f32 accumulation) per the perf review -> tolerance is
    # looser than a pure-f32 variant would need.
    np.testing.assert_allclose(np.asarray(out), np.asarray(ref),
                               rtol=5e-2, atol=1e-1)
    print("KERNEL_OK")
</pallas_src>

<mosaic_0001>
module attributes {stable_mosaic.version = 11 : i64} {
  func.func @bottleneck_kernel(%arg0: i32, %arg1: memref<1x256x128xf32, #tpu.memory_space<vmem>>, %arg2: memref<128x128xbf16, #tpu.memory_space<vmem>>, %arg3: memref<1152x128xbf16, #tpu.memory_space<vmem>>, %arg4: memref<128x128xbf16, #tpu.memory_space<vmem>>, %arg5: memref<1x128xf32, #tpu.memory_space<vmem>>, %arg6: memref<1x128xf32, #tpu.memory_space<vmem>>, %arg7: memref<1x128xf32, #tpu.memory_space<vmem>>, %arg8: memref<1x128xf32, #tpu.memory_space<vmem>>, %arg9: memref<1x128xf32, #tpu.memory_space<vmem>>, %arg10: memref<1x128xf32, #tpu.memory_space<vmem>>, %arg11: memref<1x128xf32, #tpu.memory_space<vmem>>, %arg12: memref<1x256x128xf32, #tpu.memory_space<vmem>>, %arg13: memref<18x18x128xbf16, #tpu.memory_space<vmem>>, %arg14: memref<256x1152xbf16, #tpu.memory_space<vmem>>) attributes {dimension_semantics = [#tpu.dimension_semantics<parallel>], iteration_bounds = array<i64: 2>, scalar_prefetch = 0 : i64, scratch_operands = 2 : i64, tpu.core_type = #tpu.core_type<tc>, window_params = [{transform_indices = @transform_0, window_bounds = array<i64: 1, 256, 128>}, {pipeline_mode = #tpu.pipeline_mode<synchronous>, transform_indices = @transform_1, window_bounds = array<i64: 128, 128>}, {pipeline_mode = #tpu.pipeline_mode<synchronous>, transform_indices = @transform_2, window_bounds = array<i64: 1152, 128>}, {pipeline_mode = #tpu.pipeline_mode<synchronous>, transform_indices = @transform_3, window_bounds = array<i64: 128, 128>}, {pipeline_mode = #tpu.pipeline_mode<synchronous>, transform_indices = @transform_4, window_bounds = array<i64: 1, 128>}, {pipeline_mode = #tpu.pipeline_mode<synchronous>, transform_indices = @transform_5, window_bounds = array<i64: 1, 128>}, {pipeline_mode = #tpu.pipeline_mode<synchronous>, transform_indices = @transform_6, window_bounds = array<i64: 1, 128>}, {pipeline_mode = #tpu.pipeline_mode<synchronous>, transform_indices = @transform_7, window_bounds = array<i64: 1, 128>}, {pipeline_mode = #tpu.pipeline_mode<synchronous>, transform_indices = @transform_8, window_bounds = array<i64: 1, 128>}, {pipeline_mode = #tpu.pipeline_mode<synchronous>, transform_indices = @transform_9, window_bounds = array<i64: 1, 128>}, {pipeline_mode = #tpu.pipeline_mode<synchronous>, transform_indices = @transform_10, window_bounds = array<i64: 1, 128>}, {transform_indices = @transform_11, window_bounds = array<i64: 1, 256, 128>}]} {
    %c0 = arith.constant 0 : index
    %c0_0 = arith.constant 0 : index
    %c0_1 = arith.constant 0 : index
    %0 = vector.load %arg1[%c0, %c0_0, %c0_1] : memref<1x256x128xf32, #tpu.memory_space<vmem>>, vector<1x256x128xf32>
    %1 = vector.shape_cast %0 : vector<1x256x128xf32> to vector<256x128xf32>
    %2 = arith.truncf %1 : vector<256x128xf32> to vector<256x128xbf16>
    %c0_2 = arith.constant 0 : index
    %c0_3 = arith.constant 0 : index
    %3 = vector.load %arg2[%c0_2, %c0_3] : memref<128x128xbf16, #tpu.memory_space<vmem>>, vector<128x128xbf16>
    %cst = arith.constant dense<0.000000e+00> : vector<256x128xf32>
    %4 = tpu.matmul %2, %3, %cst {dimension_numbers = #tpu.dot_dimension_numbers<[1], [0], [0], [1], [0, 0, 1, 1], [], []>} : vector<256x128xbf16>, vector<128x128xbf16>, vector<256x128xf32> -> vector<256x128xf32>
    %c0_4 = arith.constant 0 : index
    %c0_5 = arith.constant 0 : index
    %5 = vector.load %arg5[%c0_4, %c0_5] : memref<1x128xf32, #tpu.memory_space<vmem>>, vector<1x128xf32>
    %6 = vector.broadcast %5 : vector<1x128xf32> to vector<256x128xf32>
    %7 = arith.mulf %4, %6 : vector<256x128xf32>
    %c0_6 = arith.constant 0 : index
    %c0_7 = arith.constant 0 : index
    %8 = vector.load %arg6[%c0_6, %c0_7] : memref<1x128xf32, #tpu.memory_space<vmem>>, vector<1x128xf32>
    %9 = vector.broadcast %8 : vector<1x128xf32> to vector<256x128xf32>
    %10 = arith.addf %7, %9 : vector<256x128xf32>
    %cst_8 = arith.constant 0.000000e+00 : f32
    %11 = vector.broadcast %cst_8 : f32 to vector<256x128xf32>
    %12 = arith.maximumf %10, %11 : vector<256x128xf32>
    %13 = arith.truncf %12 : vector<256x128xf32> to vector<256x128xbf16>
    %14 = vector.shape_cast %13 : vector<256x128xbf16> to vector<16x16x128xbf16>
    %cst_9 = arith.constant 0.000000e+00 : bf16
    %15 = vector.broadcast %cst_9 : bf16 to vector<1x18x128xbf16>
    %cst_10 = arith.constant 0.000000e+00 : bf16
    %16 = vector.broadcast %cst_10 : bf16 to vector<16x1x128xbf16>
    %17 = tpu.concatenate %16, %14, %16 in 1 : vector<16x1x128xbf16>, vector<16x16x128xbf16>, vector<16x1x128xbf16> -> vector<16x18x128xbf16>
    %18 = tpu.concatenate %15, %17, %15 in 0 : vector<1x18x128xbf16>, vector<16x18x128xbf16>, vector<1x18x128xbf16> -> vector<18x18x128xbf16>
    %c0_11 = arith.constant 0 : index
    %c0_12 = arith.constant 0 : index
    %c0_13 = arith.constant 0 : index
    %19 = vector.load %arg13[%c0_11, %c0_12, %c0_13] : memref<18x18x128xbf16, #tpu.memory_space<vmem>>, vector<18x18x128xbf16>
    tpu.vector_store %arg13[%c0_11, %c0_12, %c0_13], %18 {strides = array<i32>} : memref<18x18x128xbf16, #tpu.memory_space<vmem>>, vector<18x18x128xbf16>,
    %c0_14 = arith.constant 0 : index
    %c0_15 = arith.constant 0 : index
    %c0_16 = arith.constant 0 : index
    %20 = vector.load %arg13[%c0_14, %c0_15, %c0_16] : memref<18x18x128xbf16, #tpu.memory_space<vmem>>, vector<16x16x128xbf16>
    %21 = vector.shape_cast %20 : vector<16x16x128xbf16> to vector<256x128xbf16>
    %c0_17 = arith.constant 0 : index
    %c0_18 = arith.constant 0 : index
    %22 = vector.load %arg14[%c0_17, %c0_18] : memref<256x1152xbf16, #tpu.memory_space<vmem>>, vector<256x128xbf16>
    tpu.vector_store %arg14[%c0_17, %c0_18], %21 {strides = array<i32>} : memref<256x1152xbf16, #tpu.memory_space<vmem>>, vector<256x128xbf16>,
    %c0_19 = arith.constant 0 : index
    %c1 = arith.constant 1 : index
    %c0_20 = arith.constant 0 : index
    %23 = vector.load %arg13[%c0_19, %c1, %c0_20] : memref<18x18x128xbf16, #tpu.memory_space<vmem>>, vector<16x16x128xbf16>
    %24 = vector.shape_cast %23 : vector<16x16x128xbf16> to vector<256x128xbf16>
    %c0_21 = arith.constant 0 : index
    %c128 = arith.constant 128 : index
    %25 = vector.load %arg14[%c0_21, %c128] : memref<256x1152xbf16, #tpu.memory_space<vmem>>, vector<256x128xbf16>
    tpu.vector_store %arg14[%c0_21, %c128], %24 {strides = array<i32>} : memref<256x1152xbf16, #tpu.memory_space<vmem>>, vector<256x128xbf16>,
    %c0_22 = arith.constant 0 : index
    %c2 = arith.constant 2 : index
    %c0_23 = arith.constant 0 : index
    %26 = vector.load %arg13[%c0_22, %c2, %c0_23] : memref<18x18x128xbf16, #tpu.memory_space<vmem>>, vector<16x16x128xbf16>
    %27 = vector.shape_cast %26 : vector<16x16x128xbf16> to vector<256x128xbf16>
    %c0_24 = arith.constant 0 : index
    %c256 = arith.constant 256 : index
    %28 = vector.load %arg14[%c0_24, %c256] : memref<256x1152xbf16, #tpu.memory_space<vmem>>, vector<256x128xbf16>
    tpu.vector_store %arg14[%c0_24, %c256], %27 {strides = array<i32>} : memref<256x1152xbf16, #tpu.memory_space<vmem>>, vector<256x128xbf16>,
    %c1_25 = arith.constant 1 : index
    %c0_26 = arith.constant 0 : index
    %c0_27 = arith.constant 0 : index
    %29 = vector.load %arg13[%c1_25, %c0_26, %c0_27] : memref<18x18x128xbf16, #tpu.memory_space<vmem>>, vector<16x16x128xbf16>
    %30 = vector.shape_cast %29 : vector<16x16x128xbf16> to vector<256x128xbf16>
    %c0_28 = arith.constant 0 : index
    %c384 = arith.constant 384 : index
    %31 = vector.load %arg14[%c0_28, %c384] : memref<256x1152xbf16, #tpu.memory_space<vmem>>, vector<256x128xbf16>
    tpu.vector_store %arg14[%c0_28, %c384], %30 {strides = array<i32>} : memref<256x1152xbf16, #tpu.memory_space<vmem>>, vector<256x128xbf16>,
    %c1_29 = arith.constant 1 : index
    %c1_30 = arith.constant 1 : index
    %c0_31 = arith.constant 0 : index
    %32 = vector.load %arg13[%c1_29, %c1_30, %c0_31] : memref<18x18x128xbf16, #tpu.memory_space<vmem>>, vector<16x16x128xbf16>
    %33 = vector.shape_cast %32 : vector<16x16x128xbf16> to vector<256x128xbf16>
    %c0_32 = arith.constant 0 : index
    %c512 = arith.constant 512 : index
    %34 = vector.load %arg14[%c0_32, %c512] : memref<256x1152xbf16, #tpu.memory_space<vmem>>, vector<256x128xbf16>
    tpu.vector_store %arg14[%c0_32, %c512], %33 {strides = array<i32>} : memref<256x1152xbf16, #tpu.memory_space<vmem>>, vector<256x128xbf16>,
    %c1_33 = arith.constant 1 : index
    %c2_34 = arith.constant 2 : index
    %c0_35 = arith.constant 0 : index
    %35 = vector.load %arg13[%c1_33, %c2_34, %c0_35] : memref<18x18x128xbf16, #tpu.memory_space<vmem>>, vector<16x16x128xbf16>
    %36 = vector.shape_cast %35 : vector<16x16x128xbf16> to vector<256x128xbf16>
    %c0_36 = arith.constant 0 : index
    %c640 = arith.constant 640 : index
    %37 = vector.load %arg14[%c0_36, %c640] : memref<256x1152xbf16, #tpu.memory_space<vmem>>, vector<256x128xbf16>
    tpu.vector_store %arg14[%c0_36, %c640], %36 {strides = array<i32>} : memref<256x1152xbf16, #tpu.memory_space<vmem>>, vector<256x128xbf16>,
    %c2_37 = arith.constant 2 : index
    %c0_38 = arith.constant 0 : index
    %c0_39 = arith.constant 0 : index
    %38 = vector.load %arg13[%c2_37, %c0_38, %c0_39] : memref<18x18x128xbf16, #tpu.memory_space<vmem>>, vector<16x16x128xbf16>
    %39 = vector.shape_cast %38 : vector<16x16x128xbf16> to vector<256x128xbf16>
    %c0_40 = arith.constant 0 : index
    %c768 = arith.constant 768 : index
    %40 = vector.load %arg14[%c0_40, %c768] : memref<256x1152xbf16, #tpu.memory_space<vmem>>, vector<256x128xbf16>
    tpu.vector_store %arg14[%c0_40, %c768], %39 {strides = array<i32>} : memref<256x1152xbf16, #tpu.memory_space<vmem>>, vector<256x128xbf16>,
    %c2_41 = arith.constant 2 : index
    %c1_42 = arith.constant 1 : index
    %c0_43 = arith.constant 0 : index
    %41 = vector.load %arg13[%c2_41, %c1_42, %c0_43] : memref<18x18x128xbf16, #tpu.memory_space<vmem>>, vector<16x16x128xbf16>
    %42 = vector.shape_cast %41 : vector<16x16x128xbf16> to vector<256x128xbf16>
    %c0_44 = arith.constant 0 : index
    %c896 = arith.constant 896 : index
    %43 = vector.load %arg14[%c0_44, %c896] : memref<256x1152xbf16, #tpu.memory_space<vmem>>, vector<256x128xbf16>
    tpu.vector_store %arg14[%c0_44, %c896], %42 {strides = array<i32>} : memref<256x1152xbf16, #tpu.memory_space<vmem>>, vector<256x128xbf16>,
    %c2_45 = arith.constant 2 : index
    %c2_46 = arith.constant 2 : index
    %c0_47 = arith.constant 0 : index
    %44 = vector.load %arg13[%c2_45, %c2_46, %c0_47] : memref<18x18x128xbf16, #tpu.memory_space<vmem>>, vector<16x16x128xbf16>
    %45 = vector.shape_cast %44 : vector<16x16x128xbf16> to vector<256x128xbf16>
    %c0_48 = arith.constant 0 : index
    %c1024 = arith.constant 1024 : index
    %46 = vector.load %arg14[%c0_48, %c1024] : memref<256x1152xbf16, #tpu.memory_space<vmem>>, vector<256x128xbf16>
    tpu.vector_store %arg14[%c0_48, %c1024], %45 {strides = array<i32>} : memref<256x1152xbf16, #tpu.memory_space<vmem>>, vector<256x128xbf16>,
    %c0_49 = arith.constant 0 : index
    %c0_50 = arith.constant 0 : index
    %47 = vector.load %arg14[%c0_49, %c0_50] : memref<256x1152xbf16, #tpu.memory_space<vmem>>, vector<256x1152xbf16>
    %c0_51 = arith.constant 0 : index
    %c0_52 = arith.constant 0 : index
    %48 = vector.load %arg3[%c0_51, %c0_52] : memref<1152x128xbf16, #tpu.memory_space<vmem>>, vector<1152x128xbf16>
    %cst_53 = arith.constant dense<0.000000e+00> : vector<256x128xf32>
    %49 = tpu.matmul %47, %48, %cst_53 {dimension_numbers = #tpu.dot_dimension_numbers<[1], [0], [0], [1], [0, 0, 1, 1], [], []>} : vector<256x1152xbf16>, vector<1152x128xbf16>, vector<256x128xf32> -> vector<256x128xf32>
    %c0_54 = arith.constant 0 : index
    %c0_55 = arith.constant 0 : index
    %50 = vector.load %arg7[%c0_54, %c0_55] : memref<1x128xf32, #tpu.memory_space<vmem>>, vector<1x128xf32>
    %51 = vector.broadcast %50 : vector<1x128xf32> to vector<256x128xf32>
    %52 = arith.mulf %49, %51 : vector<256x128xf32>
    %c0_56 = arith.constant 0 : index
    %c0_57 = arith.constant 0 : index
    %53 = vector.load %arg8[%c0_56, %c0_57] : memref<1x128xf32, #tpu.memory_space<vmem>>, vector<1x128xf32>
    %54 = vector.broadcast %53 : vector<1x128xf32> to vector<256x128xf32>
    %55 = arith.addf %52, %54 : vector<256x128xf32>
    %cst_58 = arith.constant 0.000000e+00 : f32
    %56 = vector.broadcast %cst_58 : f32 to vector<256x128xf32>
    %57 = arith.maximumf %55, %56 : vector<256x128xf32>
    %58 = arith.truncf %57 : vector<256x128xf32> to vector<256x128xbf16>
    %c0_59 = arith.constant 0 : index
    %c0_60 = arith.constant 0 : index
    %59 = vector.load %arg4[%c0_59, %c0_60] : memref<128x128xbf16, #tpu.memory_space<vmem>>, vector<128x128xbf16>
    %cst_61 = arith.constant dense<0.000000e+00> : vector<256x128xf32>
    %60 = tpu.matmul %58, %59, %cst_61 {dimension_numbers = #tpu.dot_dimension_numbers<[1], [0], [0], [1], [0, 0, 1, 1], [], []>} : vector<256x128xbf16>, vector<128x128xbf16>, vector<256x128xf32> -> vector<256x128xf32>
    %c0_62 = arith.constant 0 : index
    %c0_63 = arith.constant 0 : index
    %61 = vector.load %arg9[%c0_62, %c0_63] : memref<1x128xf32, #tpu.memory_space<vmem>>, vector<1x128xf32>
    %62 = vector.broadcast %61 : vector<1x128xf32> to vector<256x128xf32>
    %63 = arith.mulf %60, %62 : vector<256x128xf32>
    %c0_64 = arith.constant 0 : index
    %c0_65 = arith.constant 0 : index
    %64 = vector.load %arg10[%c0_64, %c0_65] : memref<1x128xf32, #tpu.memory_space<vmem>>, vector<1x128xf32>
    %65 = vector.broadcast %64 : vector<1x128xf32> to vector<256x128xf32>
    %66 = arith.addf %63, %65 : vector<256x128xf32>
    %c0_66 = arith.constant 0 : index
    %c0_67 = arith.constant 0 : index
    %67 = vector.load %arg11[%c0_66, %c0_67] : memref<1x128xf32, #tpu.memory_space<vmem>>, vector<1x128xf32>
    %68 = vector.broadcast %67 : vector<1x128xf32> to vector<256x128xf32>
    %69 = arith.mulf %1, %68 : vector<256x128xf32>
    %70 = arith.addf %66, %69 : vector<256x128xf32>
    %cst_68 = arith.constant 0.000000e+00 : f32
    %71 = vector.broadcast %cst_68 : f32 to vector<256x128xf32>
    %72 = arith.maximumf %70, %71 : vector<256x128xf32>
    %c0_69 = arith.constant 0 : index
    %c0_70 = arith.constant 0 : index
    %c0_71 = arith.constant 0 : index
    %73 = vector.load %arg12[%c0_69, %c0_70, %c0_71] : memref<1x256x128xf32, #tpu.memory_space<vmem>>, vector<1x256x128xf32>
    %74 = vector.shape_cast %73 : vector<1x256x128xf32> to vector<256x128xf32>
    %75 = vector.shape_cast %72 : vector<256x128xf32> to vector<1x256x128xf32>
    tpu.vector_store %arg12[%c0_69, %c0_70, %c0_71], %75 {strides = array<i32>} : memref<1x256x128xf32, #tpu.memory_space<vmem>>, vector<1x256x128xf32>,
    return
  }
  func.func @transform_0(%arg0: i32) -> (i32, i32, i32) {
    %c0_i32 = arith.constant 0 : i32
    %c0_i32_0 = arith.constant 0 : i32
    %c0_i32_1 = arith.constant 0 : i32
    return %arg0, %c0_i32, %c0_i32_0 : i32, i32, i32
  }
  func.func @transform_1(%arg0: i32) -> (i32, i32) {
    %c0_i32 = arith.constant 0 : i32
    %c0_i32_0 = arith.constant 0 : i32
    %c0_i32_1 = arith.constant 0 : i32
    return %c0_i32, %c0_i32_0 : i32, i32
  }
  func.func @transform_2(%arg0: i32) -> (i32, i32) {
    %c0_i32 = arith.constant 0 : i32
    %c0_i32_0 = arith.constant 0 : i32
    %c0_i32_1 = arith.constant 0 : i32
    return %c0_i32, %c0_i32_0 : i32, i32
  }
  func.func @transform_3(%arg0: i32) -> (i32, i32) {
    %c0_i32 = arith.constant 0 : i32
    %c0_i32_0 = arith.constant 0 : i32
    %c0_i32_1 = arith.constant 0 : i32
    return %c0_i32, %c0_i32_0 : i32, i32
  }
  func.func @transform_4(%arg0: i32) -> (i32, i32) {
    %c0_i32 = arith.constant 0 : i32
    %c0_i32_0 = arith.constant 0 : i32
    %c0_i32_1 = arith.constant 0 : i32
    return %c0_i32, %c0_i32_0 : i32, i32
  }
  func.func @transform_5(%arg0: i32) -> (i32, i32) {
    %c0_i32 = arith.constant 0 : i32
    %c0_i32_0 = arith.constant 0 : i32
    %c0_i32_1 = arith.constant 0 : i32
    return %c0_i32, %c0_i32_0 : i32, i32
  }
  func.func @transform_6(%arg0: i32) -> (i32, i32) {
    %c0_i32 = arith.constant 0 : i32
    %c0_i32_0 = arith.constant 0 : i32
    %c0_i32_1 = arith.constant 0 : i32
    return %c0_i32, %c0_i32_0 : i32, i32
  }
  func.func @transform_7(%arg0: i32) -> (i32, i32) {
    %c0_i32 = arith.constant 0 : i32
    %c0_i32_0 = arith.constant 0 : i32
    %c0_i32_1 = arith.constant 0 : i32
    return %c0_i32, %c0_i32_0 : i32, i32
  }
  func.func @transform_8(%arg0: i32) -> (i32, i32) {
    %c0_i32 = arith.constant 0 : i32
    %c0_i32_0 = arith.constant 0 : i32
    %c0_i32_1 = arith.constant 0 : i32
    return %c0_i32, %c0_i32_0 : i32, i32
  }
  func.func @transform_9(%arg0: i32) -> (i32, i32) {
    %c0_i32 = arith.constant 0 : i32
    %c0_i32_0 = arith.constant 0 : i32
    %c0_i32_1 = arith.constant 0 : i32
    return %c0_i32, %c0_i32_0 : i32, i32
  }
  func.func @transform_10(%arg0: i32) -> (i32, i32) {
    %c0_i32 = arith.constant 0 : i32
    %c0_i32_0 = arith.constant 0 : i32
    %c0_i32_1 = arith.constant 0 : i32
    return %c0_i32, %c0_i32_0 : i32, i32
  }
  func.func @transform_11(%arg0: i32) -> (i32, i32, i32) {
    %c0_i32 = arith.constant 0 : i32
    %c0_i32_0 = arith.constant 0 : i32
    %c0_i32_1 = arith.constant 0 : i32
    return %arg0, %c0_i32, %c0_i32_0 : i32, i32, i32
  }
}

</mosaic_0001>

<bundles_post_ra>
// kernel: tpu_custom_call.1
= control target key start
LH: loop header
LB: loop body
LE: loop exit
PB: predicated region body
PF: predicated region fallthrough
CT: control target
= control target key end

     0   :  { %s9510_s0 = inlined_call_operand.hbm [shape: f32[2,256,128], index: 0, kind: input, shape index: {}]   ;;  %s9511_s1 = inlined_call_operand.hbm [shape: bf16[128,128], index: 1, kind: input, shape index: {}]   ;;  %s9512_s2 = inlined_call_operand.hbm [shape: bf16[1152,128], index: 2, kind: input, shape index: {}]   ;;  %s9513_s3 = inlined_call_operand.hbm [shape: bf16[128,128], index: 3, kind: input, shape index: {}]   ;;  %s9514_s4 = inlined_call_operand.vmem [shape: f32[1,128], index: 4, kind: input, shape index: {}]   ;;  %s9515_s5 = inlined_call_operand.vmem [shape: f32[1,128], index: 5, kind: input, shape index: {}]   ;;  %s9516_s6 = inlined_call_operand.vmem [shape: f32[1,128], index: 6, kind: input, shape index: {}]   ;;  %s9517_s7 = inlined_call_operand.vmem [shape: f32[1,128], index: 7, kind: input, shape index: {}]   ;;  %s9518_s8 = inlined_call_operand.vmem [shape: f32[1,128], index: 8, kind: input, shape index: {}]   ;;  %s9519_s9 = inlined_call_operand.vmem [shape: f32[1,128], index: 9, kind: input, shape index: {}]   ;;  %s9520_s10 = inlined_call_operand.vmem [shape: f32[1,128], index: 10, kind: input, shape index: {}]   ;;  %s9521_s11 = inlined_call_operand.hbm [shape: f32[2,256,128], index: 11, kind: output, shape index: {}]  }
   0x1   :  { %9528 = sst [smem:[#allocation27_spill]] %s9518_s8 }
   0x2   :  { %9529 = sst [smem:[#allocation28_spill]] %s9519_s9 }
   0x3   :  { %9530 = sst [smem:[#allocation29_spill]] %s9521_s11 }
   0x4   :  { %16 = vsyncpa [#allocation5], 0 }
   0x5   :  { %18 = vsyncpa [#allocation5 + $0x1], 0 }
   0x6   :  { %19 = vsyncpa [#allocation8], 0 }
   0x7   :  { %20 = vsyncpa [#allocation11], 0 }
   0x8   :  { %21 = vsyncpa [#allocation6], 0 }
   0x9   :  { %23 = vsyncpa [#allocation6 + $0x1], 0  ;;  %s7866_s17 = smov 0   ;;  %s7868_s18 = smov 0  }
   0xa   :  { %s7870_s19 = smov 0   ;;  %s7872_s20 = smov 0  }
   0xb LB: > { %9531 = sst [smem:[#allocation17_spill]] %s7780_s17  ;;  %s7887_s21 = sadd.s32 4294967295, %s7792_s20   ;;  %s7792_s20 = sphi %s7872_s20, %s9579_s20   ;;  %s7788_s19 = sphi %s7870_s19, %s9578_s19   ;;  %s7784_s18 = sphi %s7868_s18, %s9577_s18   ;;  %s7780_s17 = sphi %s7866_s17, %s9576_s17  }
   0xc   : > { %s6310_s22 = sadd.s32 4294967294, %s7792_s20   ;;  %p49_p0 = scmp.ne.s32.totalorder %s7784_s18, %s7780_s17 }
   0xd   : > { %p9523_p1 = scmp.eq.s32.totalorder %s7887_s21, 0  ;;  %p289_p3 = scmp.eq.s32.totalorder %s6310_s22, 1 }
   0xe   : > { %p6311_p5 = scmp.ge.s32.totalorder %s7792_s20, 1  ;;  %p296_p7 = scmp.lt.s32.totalorder %s7792_s20, 3 }
   0xf   : > { %p7896_p4 = por %p9523_p1, %p49_p0  ;;  %p7901_p6 = por %p289_p3, %p49_p0 }
  0x10   : > { %p7906_p8 = pnand %p6311_p5, %p296_p7  ;;  %s7794_s26 = smov [#allocation7]  }
  0x11   : > { %s9532_s23 = scalar_select %p7896_p4, 1, 0 }
  0x12   : > { %s9533_s24 = scalar_select %p7901_p6, 1, 0 }
  0x13   : > { %s9535_s25 = scalar_select %p7906_p8, 1, 0 }
  0x14   : > { %9534 = sst [smem:[#allocation18_spill]] %s9533_s24  ;;  %s308_s27 = sshll.u32 %s7794_s26, 4  ;;  %s7910_s27 = int_to_ptr.vmem [resolvable:$true] %s308_s27 }
  0x15   : > { %p7365_p9 = pneg %p7906_p8  ;;  %s7795_s29 = smov [#allocation9]  }
  0x16   : > { %s321_s30 = sshll.u32 %s7795_s29, 4  ;;  %s7796_s12 = smov [#allocation10]   ;;  %s7921_s30 = int_to_ptr.vmem [resolvable:$true] %s321_s30 }
  0x17   : > { %p7917_p11 = pnand %p7365_p9, %p9523_p1  ;;  %s7923_s13 = sshll.u32 %s7796_s12, 4  ;;  %s335_s13 = int_to_ptr.vmem [resolvable:$true] %s7923_s13 }
  0x18   : > { %s7604_s16 = scalar_lea.hbm %s9511_s1, 1024 }
  0x19   : > { %p7605_p12 = scmp.ne.s32.totalorder %s9511_s1, %s7604_s16  ;;  %p7933_p13 = pneg %p7917_p11 }
  0x1a   : > { %p7611_p5 = scmp.lt.u32.totalorder %s7604_s16, %s9511_s1 }
  0x1b   : > { %p7607_p0 = pnand %p7933_p13, %p7605_p12 }
  0x1d   : > { %p7608_p3 = pneg %p7607_p0 }
  0x1f   : > { %p7613_p7 = pnand %p7611_p5, %p7608_p3 }
  0x21   : > { %7616 = shalt.err (!%p7613_p7)
}
  0x22   : > { %s7617_s14 = scalar_lea.vmem %s7910_s27, 1024  ;;  %p7625_p2 = scmp.lt.s32.totalorder %s7910_s27, %s7910_s27 }
  0x23   : > { %p7618_p9 = scmp.ne.s32.totalorder %s7910_s27, %s7617_s14  ;;  %p7626_p6 = scmp.lt.s32.totalorder %s7617_s14, %s7617_s14 }
  0x25   : > { %p7620_p10 = pnand %p7618_p9, %p7933_p13  ;;  %p7627_p12 = por %p7626_p6, %p7625_p2 }
  0x27   : > { %p7621_p1 = pneg %p7620_p10 }
  0x29   : > { %p7628_p0 = pnand %p7627_p12, %p7621_p1 }
  0x2b   : > { %7631 = shalt.err (!%p7628_p0)
}
  0x2c   : > { %s7797_s15 = smov 64   ;;  %s7798_s16 = smov 4  }
  0x2d   : > { %7368 = dma.hbm_to_vmem [thread:$0]  (!%p7917_p11), %s9511_s1, 1024, %s7910_s27, [#allocation8], %s7797_s15, %s7797_s15, %s7798_s16  }
  0x2e   : > { %s7632_s14 = scalar_lea.hbm %s9512_s2, 9216 }
  0x2f   : > { %p7633_p1 = scmp.ne.s32.totalorder %s9512_s2, %s7632_s14  ;;  %p7639_p10 = scmp.lt.u32.totalorder %s7632_s14, %s9512_s2 }
  0x31   : > { %p7635_p2 = pnand %p7633_p1, %p7933_p13 }
  0x33   : > { %p7636_p6 = pneg %p7635_p2 }
  0x35   : > { %p7641_p3 = pnand %p7639_p10, %p7636_p6 }
  0x37   : > { %7644 = shalt.err (!%p7641_p3)
}
  0x38   : > { %s7645_s27 = scalar_lea.vmem %s7921_s30, 9216  ;;  %p7653_p12 = scmp.lt.s32.totalorder %s7921_s30, %s7921_s30 }
  0x39   : > { %p7646_p5 = scmp.ne.s32.totalorder %s7921_s30, %s7645_s27  ;;  %p7654_p0 = scmp.lt.s32.totalorder %s7645_s27, %s7645_s27 }
  0x3b   : > { %p7648_p7 = pnand %p7646_p5, %p7933_p13  ;;  %p7655_p1 = por %p7654_p0, %p7653_p12 }
  0x3d   : > { %p7649_p9 = pneg %p7648_p7 }
  0x3f   : > { %p7656_p2 = pnand %p7655_p1, %p7649_p9 }
  0x41   : > { %7659 = shalt.err (!%p7656_p2)
}
  0x42   : > { %7371 = dma.hbm_to_vmem [thread:$0]  (!%p7917_p11), %s9512_s2, 9216, %s7921_s30, [#allocation8], %s7797_s15, %s7797_s15, %s7798_s16  }
  0x43   : > { %s7660_s22 = scalar_lea.hbm %s9513_s3, 1024 }
  0x44   : > { %p7661_p6 = scmp.ne.s32.totalorder %s9513_s3, %s7660_s22  ;;  %p7667_p5 = scmp.lt.u32.totalorder %s7660_s22, %s9513_s3 }
  0x46   : > { %p7663_p10 = pnand %p7661_p6, %p7933_p13 }
  0x48   : > { %p7664_p3 = pneg %p7663_p10 }
  0x4a   : > { %p7669_p7 = pnand %p7667_p5, %p7664_p3 }
  0x4c   : > { %7672 = shalt.err (!%p7669_p7)
}
  0x4d   : > { %s7673_s27 = scalar_lea.vmem %s335_s13, 1024  ;;  %p7681_p1 = scmp.lt.s32.totalorder %s335_s13, %s335_s13 }
  0x4e   : > { %p7674_p9 = scmp.ne.s32.totalorder %s335_s13, %s7673_s27  ;;  %p7682_p2 = scmp.lt.s32.totalorder %s7673_s27, %s7673_s27 }
  0x50   : > { %p7676_p12 = pnand %p7674_p9, %p7933_p13  ;;  %p7683_p4 = por %p7682_p2, %p7681_p1 }
  0x52   : > { %p7677_p0 = pneg %p7676_p12 }
  0x54   : > { %p7684_p8 = pnand %p7683_p4, %p7677_p0 }
  0x56   : > { %7687 = shalt.err (!%p7684_p8)
}
  0x57   : > { %7374 = dma.hbm_to_vmem [thread:$0]  (!%p7917_p11), %s9513_s3, 1024, %s335_s13, [#allocation11], %s7797_s15, %s7797_s15, %s7798_s16  }
  0x58   : > { %s8006_s24 = sadd.s32 1, %s7792_s20   ;;  %s36_s9 = sadd.s32 1, %s7788_s19 }
  0x59   : > { %s33_s28 = ssub.s32 %s7792_s20, %s8006_s24  ;;  %p43_p8 = scmp.ne.s32.totalorder %s7788_s19, %s7784_s18 }
  0x5a   : > { %p34_p4 = scmp.eq.s32.totalorder %s33_s28, 0  ;;  %p44_p13 = scmp.eq.s32.totalorder %s7792_s20, 0 }
  0x5b   : > { %p7386_p6 = scmp.lt.s32.totalorder %s7792_s20, 2  ;;  %p9538_p3 = scmp.eq.s32.totalorder %s7887_s21, 1 }
  0x5c   : > { %s8016_s11 = scalar_select %p34_p4, %s7788_s19, %s36_s9  }
  0x5d   : > { %p45_p10 = por %p44_p13, %p43_p8  ;;  %p8020_p5 = por %p9538_p3, %p43_p8 }
  0x5e   : > { %s369_s22 = sand.u32 1, %s7788_s19   ;;  %s6667_s26 = sshll.u32 %s7792_s20, 12 }
  0x5f   : > { %s6316_s13 = sshll.u32 %s369_s22, 8  ;;  %s8029_s29 = scalar_lea.hbm %s9510_s0, %s6667_s26 }
  0x60   : > { %s373_s12 = scalar_lea.vmem [#allocation4], %s6316_s13  ;;  %p8031_p11 = pnand %p7386_p6, %p45_p10 }
  0x61   : > { %s380_s14 = sshll.u32 %s373_s12, 4  ;;  %s8037_s30 = scalar_lea.sflag [#allocation5], %s369_s22  ;;  %s8035_s14 = int_to_ptr.vmem [resolvable:$true] %s380_s14 }
  0x62   : > { %s7688_s8 = scalar_lea.hbm %s8029_s29, 4096  ;;  %p7690_p9 = pneg %p8031_p11 }
  0x63   : > { %p7689_p7 = scmp.ne.s32.totalorder %s8029_s29, %s7688_s8  ;;  %s7693_s26 = scalar_lea.hbm %s9510_s0, 8192 }
  0x64   : > { %p7694_p1 = scmp.lt.u32.totalorder %s8029_s29, %s9510_s0  ;;  %p7695_p2 = scmp.lt.u32.totalorder %s7693_s26, %s7688_s8 }
  0x65   : > { %p7691_p12 = pnand %p7690_p9, %p7689_p7  ;;  %p7697_p8 = scmp.lt.u32.totalorder %s7688_s8, %s8029_s29 }
  0x66   : > { %p7696_p4 = por %p7695_p2, %p7694_p1 }
  0x67   : > { %p7692_p0 = pneg %p7691_p12 }
  0x68   : > { %p7698_p13 = por %p7697_p8, %p7696_p4 }
  0x6a   : > { %p7699_p6 = pnand %p7698_p13, %p7692_p0 }
  0x6c   : > { %7702 = shalt.err (!%p7699_p6)
}
  0x6d   : > { %s7703_s22 = scalar_lea.vmem %s8035_s14, 4096  ;;  %s7799_s16 = smov [#allocation4]  }
  0x6e   : > { %p7704_p10 = scmp.ne.s32.totalorder %s8035_s14, %s7703_s22  ;;  %s7708_s12 = sshll.u32 %s7799_s16, 4  ;;  %s7709_s12 = int_to_ptr.vmem [resolvable:$false] %s7708_s12 }
  0x6f   : > { %s7710_s28 = scalar_lea.vmem %s7709_s12, 8192  ;;  %p7711_p12 = scmp.lt.s32.totalorder %s8035_s14, %s7709_s12 }
  0x70   : > { %p7706_p3 = pnand %p7704_p10, %p7690_p9  ;;  %p7712_p1 = scmp.lt.s32.totalorder %s7710_s28, %s7703_s22 }
  0x72   : > { %p7707_p7 = pneg %p7706_p3  ;;  %p7713_p2 = por %p7712_p1, %p7711_p12 }
  0x74   : > { %p7714_p4 = pnand %p7713_p2, %p7707_p7 }
  0x76   : > { %7717 = shalt.err (!%p7714_p4)
}
  0x77   : > { %s7800_s8 = smov 128   ;;  %s7801_s9 = smov 8  }
  0x78   : > { %7378 = dma.hbm_to_vmem [thread:$0]  (!%p8031_p11), %s8029_s29, 4096, %s8035_s14, %s8037_s30, %s7800_s8, %s7800_s8, %s7801_s9  }
  0x79   : > { %p9541_p9 = scmp.ne.s32.totalorder %s9535_s25, 0 }
  0x7b   : > { %392 = sbr.rel (%p9541_p9) target bundleno = 1248 (0x4e0), region = 64 }
  0x82   : > { %s8068_s26 = sand.u32 1, %s7784_s18   ;;  %p9542_p0 = scmp.ne.s32.totalorder %s9532_s23, 0 }
  0x83   : > { %s6320_s13 = sshll.u32 %s8068_s26, 8  ;;  %s395_s15 = scalar_lea.sflag [#allocation5], %s8068_s26 }
  0x84   : > { %s8074_s22 = scalar_lea.vmem [#allocation4], %s6320_s13 }
  0x85   : > { %7763 = dma.done.wait (%p9542_p0), %s395_s15, 4096  }
  0x86   : > { %7765 = vsyncadd (%p9542_p0), %s395_s15, 4294963200  ;;  %p9543_p11 = scmp.eq.s32.totalorder %s7887_s21, 0 }
  0x88   : > { %7767 = dma.done.wait (%p9543_p11), [#allocation8], 10240   ;;  %p9544_p8 = pmov %p9543_p11 }
  0x8a   : > { %7769 = vsyncadd (%p9544_p8), [#allocation8], 4294957056  ;;  %p9545_p13 = pmov %p9544_p8 }
  0x8b   : > { %p9546_p6 = pmov %p9544_p8 }
  0x8c   : > { %7771 = dma.done.wait (%p9545_p13), [#allocation11], 1024  }
  0x8d   : > { %7773 = vsyncadd (%p9546_p6), [#allocation11], 4294966272  ;;  %v7433_v0 = vld [vmem:[#allocation7] sm:$0xff]   ;;  %v7434_v1 = vld [vmem:[#allocation7 + $0x8] sm:$0xff]   ;;  %vm1457_vm0 = vsmask.f32 3328 }
  0x8e   : > { %7189 = vmatprep.subr.bf16.mxu0 %v7433_v0  ;;  %7333 = vmatprep.subr.bf16.mxu1 %v7433_v0  ;;  %v7435_v2 = vld [vmem:[#allocation7 + $0x10] sm:$0xff]   ;;  %v7436_v3 = vld [vmem:[#allocation7 + $0x18] sm:$0xff]   ;;  %v450_v4 = vld [vmem:[%s8074_s22] sm:$0xff]  ;;  %vm1458_vm1 = vsmask.f32 7440  ;;  %vm2020_vm3 = vcmask 1042432  }
  0x8f   : > { %7190 = vmatpush3.bf16.msra.mxu0 %v7433_v0  ;;  %7341 = vmatpush3.bf16.msra.mxu1 %v7433_v0  ;;  %v451_v5 = vld [vmem:[%s8074_s22 + $0x8] sm:$0xff]  ;;  %v7437_v7 = vld [vmem:[#allocation7 + $0x20] sm:$0xff]   ;;  %v7439_v12 = vld [vmem:[#allocation7 + $0x30] sm:$0xff]   ;;  %vm2021_vm4 = vcmask 1046532   ;;  %vm993_vm6 = vcmask 1040384   ;;  %s9569_s27 = sld [smem:[#allocation27_spill]] }
  0x90   : > { %7191 = vmatprep.subr.bf16.mxu0 %v7434_v1  ;;  %7334 = vmatprep.subr.bf16.mxu1 %v7434_v1  ;;  %v482_v6 = vpack.c.bf16 %v451_v5, %v450_v4  ;;  %v466_v8 = vld [vmem:[%s8074_s22 + $0x80] sm:$0xff]  ;;  %v467_v9 = vld [vmem:[%s8074_s22 + $0x88] sm:$0xff]  ;;  %v7440_v13 = vld [vmem:[#allocation7 + $0x38] sm:$0xff]   ;;  %v7802_v5 = vmov 0   ;;  %vm994_vm7 = vsmask.f32 256 }
  0x91   : > { %v490_v10 = vpack.c.bf16 %v467_v9, %v466_v8  ;;  %v7438_v11 = vld [vmem:[#allocation7 + $0x28] sm:$0xff]   ;;  %v452_v14 = vld [vmem:[%s8074_s22 + $0x10] sm:$0xff]  ;;  %v453_v15 = vld [vmem:[%s8074_s22 + $0x18] sm:$0xff]  ;;  %s9570_s12 = sld [smem:[#allocation28_spill]]  ;;  %s9315_s28 = scalar_lea.vmem [#allocation12], %s6320_s13 }
  0x92   : > { %7205 = vmatprep.mubr.bf16.mxu0 %v482_v6  ;;  %v454_v16 = vld [vmem:[%s8074_s22 + $0x20] sm:$0xff]  ;;  %v455_v17 = vld [vmem:[%s8074_s22 + $0x28] sm:$0xff]  ;;  %v468_v18 = vld [vmem:[%s8074_s22 + $0x90] sm:$0xff]  ;;  %v483_v23 = vpack.c.bf16 %v453_v15, %v452_v14  ;;  %v6335_v6 = vcombine.low %v7802_v5, %v7802_v5  ;;  %s6668_s13 = sshll.u32 %s7887_s21, 12  ;;  %s6208_s8 = sshll.u32 %s9315_s28, 4  ;;  %s9463_s8 = int_to_ptr.vmem [resolvable:$true] %s6208_s8 }
  0x93   : > { %7192 = vmatpush3.bf16.msra.mxu0 %v7434_v1  ;;  %7342 = vmatpush3.bf16.msra.mxu1 %v7434_v1  ;;  %v469_v19 = vld [vmem:[%s8074_s22 + $0x98] sm:$0xff]  ;;  %v470_v20 = vld [vmem:[%s8074_s22 + $0xa0] sm:$0xff]  ;;  %v471_v21 = vld [vmem:[%s8074_s22 + $0xa8] sm:$0xff]  ;;  %v484_v24 = vpack.c.bf16 %v455_v17, %v454_v16  ;;  %s9571_s15 = sld [smem:[#allocation29_spill]]  ;;  %s6195_s21 = scalar_lea.sflag [#allocation6], %s8068_s26 }
  0x94   : > { %7193 = vmatprep.subr.bf16.mxu0 %v7435_v2  ;;  %7335 = vmatprep.subr.bf16.mxu1 %v7435_v2  ;;  %v7441_v22 = vld [vmem:[#allocation9 + $0x40] sm:$0xff]   ;;  %v491_v26 = vpack.c.bf16 %v469_v19, %v468_v18  ;;  %v456_v27 = vld [vmem:[%s8074_s22 + $0x30] sm:$0xff]  ;;  %v457_v28 = vld [vmem:[%s8074_s22 + $0x38] sm:$0xff]  ;;  %v492_v29 = vpack.c.bf16 %v471_v21, %v470_v20  ;;  %1211 = vst [vmem:[#allocation2] sm:$0xf] %v6335_v6  ;;  %s7718_s25 = scalar_lea.vmem %s9463_s8, 4096 }
  0x95   : > { %7221 = vmatprep.mubr.bf16.mxu1 %v490_v10  ;;  %v7442_v25 = vld [vmem:[#allocation9] sm:$0xff]   ;;  %v459_v31 = vld [vmem:[%s8074_s22 + $0x48] sm:$0xff]  ;;  %v472_v32 = vld [vmem:[%s8074_s22 + $0xb0] sm:$0xff]  ;;  %v485_v36 = vpack.c.bf16 %v457_v28, %v456_v27  ;;  %1213 = vst [vmem:[#allocation2 + $0x8] sm:$0x1] %v6335_v6  ;;  %p7719_p10 = scmp.ne.s32.totalorder %s9463_s8, %s7718_s25  ;;  %s7803_s29 = smov [#allocation12]  }
  0x96   : > { %v458_v30 = vld [vmem:[%s8074_s22 + $0x40] sm:$0xff]  ;;  %v473_v33 = vld [vmem:[%s8074_s22 + $0xb8] sm:$0xff]  ;;  %v475_v35 = vld [vmem:[%s8074_s22 + $0xc8] sm:$0xff]  ;;  %1262 = vst [vmem:[#allocation2 + $0xcc] sm:$0xf] %v6335_v6  ;;  %s7722_s14 = sshll.u32 %s7803_s29, 4  ;;  %s7723_s14 = int_to_ptr.vmem [resolvable:$false] %s7722_s14 }
  0x97   : > { %7194 = vmatpush3.bf16.msra.mxu0 %v7435_v2  ;;  %7343 = vmatpush3.bf16.msra.mxu1 %v7435_v2  ;;  %v474_v34 = vld [vmem:[%s8074_s22 + $0xc0] sm:$0xff]  ;;  %v486_v37 = vpack.c.bf16 %v459_v31, %v458_v30  ;;  %v493_v38 = vpack.c.bf16 %v473_v33, %v472_v32  ;;  %v460_v39 = vld [vmem:[%s8074_s22 + $0x50] sm:$0xff]  ;;  %v461_v40 = vld [vmem:[%s8074_s22 + $0x58] sm:$0xff]  ;;  %1264 = vst [vmem:[#allocation2 + $0xd4] sm:$0x1] %v6335_v6  ;;  %p7720_p3 = pnand %p7719_p10, %p8020_p5  ;;  %p7725_p12 = scmp.lt.s32.totalorder %s9463_s8, %s7723_s14 }
  0x98   : > { %7195 = vmatprep.subr.bf16.mxu0 %v7436_v3  ;;  %7336 = vmatprep.subr.bf16.mxu1 %v7436_v3  ;;  %v494_v41 = vpack.c.bf16 %v475_v35, %v474_v34  ;;  %v462_v42 = vld [vmem:[%s8074_s22 + $0x60] sm:$0xff]  ;;  %v463_v43 = vld [vmem:[%s8074_s22 + $0x68] sm:$0xff]  ;;  %v476_v44 = vld [vmem:[%s8074_s22 + $0xd0] sm:$0xff]  ;;  %v487_v48 = vpack.c.bf16 %v461_v40, %v460_v39 }
  0x99   : > { %v477_v45 = vld [vmem:[%s8074_s22 + $0xd8] sm:$0xff]  ;;  %v478_v46 = vld [vmem:[%s8074_s22 + $0xe0] sm:$0xff]  ;;  %v479_v47 = vld [vmem:[%s8074_s22 + $0xe8] sm:$0xff]  ;;  %v488_v49 = vpack.c.bf16 %v463_v43, %v462_v42  ;;  %s9461_s23 = scalar_lea.hbm %s9571_s15, %s6668_s13  ;;  %p7721_p7 = pneg %p7720_p3 }
  0x9a   : > { %v495_v50 = vpack.c.bf16 %v477_v45, %v476_v44  ;;  %v464_v51 = vld [vmem:[%s8074_s22 + $0x70] sm:$0xff]  ;;  %v465_v52 = vld [vmem:[%s8074_s22 + $0x78] sm:$0xff]  ;;  %v496_v53 = vpack.c.bf16 %v479_v47, %v478_v46  ;;  %v7443_v58 = vld [vmem:[#allocation9 + $0xc0] sm:$0xff]  }
  0x9b   : > { %7196 = vmatpush3.bf16.msra.mxu0 %v7436_v3  ;;  %7344 = vmatpush3.bf16.msra.mxu1 %v7436_v3  ;;  %v480_v54 = vld [vmem:[%s8074_s22 + $0xf0] sm:$0xff]  ;;  %v481_v55 = vld [vmem:[%s8074_s22 + $0xf8] sm:$0xff]  ;;  %v489_v56 = vpack.c.bf16 %v465_v52, %v464_v51  ;;  %v7444_v59 = vld [vmem:[#allocation9 + $0x80] sm:$0xff]  }
  0x9c   : > { %7197 = vmatprep.subr.bf16.mxu0 %v7437_v7  ;;  %7337 = vmatprep.subr.bf16.mxu1 %v7437_v7  ;;  %v497_v57 = vpack.c.bf16 %v481_v55, %v480_v54  ;;  %v7445_v60 = vld [vmem:[#allocation9 + $0x48] sm:$0xff]   ;;  %v7449_v0 = vld [vmem:[#allocation9 + $0x50] sm:$0xff]   ;;  %v7453_v4 = vld [vmem:[#allocation9 + $0x58] sm:$0xff]  }
  0x9d   : > { %v7446_v61 = vld [vmem:[#allocation9 + $0x8] sm:$0xff]   ;;  %v7450_v1 = vld [vmem:[#allocation9 + $0x10] sm:$0xff]   ;;  %v7454_v8 = vld [vmem:[#allocation9 + $0x18] sm:$0xff]  }
  0x9e   : > { %v7447_v62 = vld [vmem:[#allocation9 + $0xc8] sm:$0xff]   ;;  %v7451_v2 = vld [vmem:[#allocation9 + $0xd0] sm:$0xff]   ;;  %v7455_v9 = vld [vmem:[#allocation9 + $0xd8] sm:$0xff]  }
  0x9f   : > { %7198 = vmatpush3.bf16.msra.mxu0 %v7437_v7  ;;  %7345 = vmatpush3.bf16.msra.mxu1 %v7437_v7  ;;  %v7448_v63 = vld [vmem:[#allocation9 + $0x88] sm:$0xff]   ;;  %v7452_v3 = vld [vmem:[#allocation9 + $0x90] sm:$0xff]   ;;  %v6336_v7 = vcombine.high %v7802_v5, %v7802_v5  ;;  %v7456_v10 = vld [vmem:[#allocation9 + $0x98] sm:$0xff]  }
  0xa0   : > { %7199 = vmatprep.subr.bf16.mxu0 %v7438_v11  ;;  %7338 = vmatprep.subr.bf16.mxu1 %v7438_v11  ;;  %v7460_v14 = vld [vmem:[#allocation9 + $0xa0] sm:$0xff]   ;;  %v7461_v15 = vld [vmem:[#allocation9 + $0x68] sm:$0xff]   ;;  %v7466_v28 = vld [vmem:[#allocation9 + $0x30] sm:$0xff]  }
  0xa1   : > { %1212 = vst [vmem:[#allocation2 + $0x4] sm:$0xf] %v6336_v7  ;;  %1263 = vst [vmem:[#allocation2 + $0xd0] sm:$0xf] %v6336_v7  ;;  %v7462_v16 = vld [vmem:[#allocation9 + $0x28] sm:$0xff]   ;;  %v7468_v33 = vld [vmem:[#allocation9 + $0xb0] sm:$0xff]  }
  0xa2   : > { %v7463_v17 = vld [vmem:[#allocation9 + $0xe8] sm:$0xff]   ;;  %v1411_v30 = vld [vmem:[#allocation2 + $0x8] sm:$0x1]  ;;  %v7470_v39 = vld [vmem:[#allocation9 + $0x38] sm:$0xff]  }
  0xa3   : > { %7200 = vmatpush3.bf16.msra.mxu0 %v7438_v11  ;;  %7346 = vmatpush3.bf16.msra.mxu1 %v7438_v11  ;;  %v7457_v11 = vld [vmem:[#allocation9 + $0x60] sm:$0xff]   ;;  %v1409_v18 = vld [vmem:[#allocation2] sm:$0xf]  ;;  %v1480_v35 = vshll.u32 %v1411_v30, 16  ;;  %v7471_v40 = vld [vmem:[#allocation9 + $0xf8] sm:$0xff]  }
  0xa4   : > { %7201 = vmatprep.subr.bf16.mxu0 %v7439_v12  ;;  %7339 = vmatprep.subr.bf16.mxu1 %v7439_v12  ;;  %v7464_v19 = vld [vmem:[#allocation9 + $0xa8] sm:$0xff]   ;;  %v1461_v21 = vshrl.u32 %v1409_v18, 16  ;;  %vm8120_vm2 = vmor %vm1457_vm0, %vm1458_vm1  ;;  %v7472_v45 = vld [vmem:[#allocation9 + $0xb8] sm:$0xff]  }
  0xa5   : > { %v1482_v43 = vrot.slane %v1480_v35, 5  ;;  %v7480_v51 = vld [vmem:[#allocation9 + $0x148] sm:$0xff]   ;;  %v7489_v54 = vld [vmem:[#allocation9 + $0x110] sm:$0xff]   ;;  %v7492_v55 = vld [vmem:[#allocation9 + $0x158] sm:$0xff]  }
  0xa6   : > { %v7483_v52 = vld [vmem:[#allocation9 + $0x108] sm:$0xff]   ;;  %vm8139_vm5 = vmor %vm2020_vm3, %vm2021_vm4 }
  0xa7   : > { %7202 = vmatpush3.bf16.msra.mxu0 %v7439_v12  ;;  %7347 = vmatpush3.bf16.msra.mxu1 %v7439_v12  ;;  %v7458_v12 = vld [vmem:[#allocation9 + $0x20] sm:$0xff]   ;;  %vm8178_vm8 = vmand %vm993_vm6, %vm994_vm7 }
  0xa8   : > { %7203 = vmatprep.subr.bf16.mxu0 %v7440_v13  ;;  %7340 = vmatprep.subr.bf16.mxu1 %v7440_v13  ;;  %v1410_v20 = vld [vmem:[#allocation2 + $0x4] sm:$0xf] }
  0xab   : > { %7204 = vmatpush3.bf16.msra.mxu0 %v7440_v13  ;;  %7348 = vmatpush3.bf16.msra.mxu1 %v7440_v13  ;;  %v7459_v13 = vld [vmem:[#allocation9 + $0xe0] sm:$0xff]  }
  0xac   : > { %6693 = vmatprep.subr.bf16.mxu1 %v7441_v22  ;;  %6805 = vmatprep.subr.bf16.mxu0 %v7443_v58  ;;  %v1464_v22 = vshll.u32 %v1409_v18, 16  ;;  %v7500_v58 = vld [vmem:[#allocation9 + $0x160] sm:$0xff]  }
  0xae   : > { %7206 = vmatmul.mubr.bf16.vlgmr.msra.gmra.mrb[0].mxu0 %v483_v23  ;;  %7222 = vmatmul.mubr.bf16.vlgmr.msra.gmra.mrb[0].mxu1 %v491_v26  ;;  %v1470_v23 = vshll.u32 %v1410_v20, 16  ;;  %v1463_v26 = vrot.slane %v1461_v21, 4  ;;  %v1466_v27 = vrot.slane %v1464_v22, 5 }
  0xaf   : > { %7209 = vmatprep.mubr.bf16.mxu0 %v484_v24  ;;  %7225 = vmatprep.mubr.bf16.mxu1 %v492_v29  ;;  %v1474_v24 = vshrl.u32 %v1410_v20, 16  ;;  %v7467_v29 = vld [vmem:[#allocation9 + $0xf0] sm:$0xff]  }
  0xb0   : > { %6694 = vmatpush3.bf16.msra.mxu1 %v7442_v25  ;;  %6806 = vmatpush3.bf16.msra.mxu0 %v7444_v59  ;;  %v7465_v25 = vld [vmem:[#allocation9 + $0x70] sm:$0xff]   ;;  %v1472_v31 = vrot.slane %v1470_v23, 5  ;;  %v1467_v34 = vor.u32 %v1466_v27, %v1463_v26  ;;  %v7503_v59 = vld [vmem:[#allocation9 + $0x120] sm:$0xff]   ;;  %v7511_v23 = vld [vmem:[#allocation9 + $0x128] sm:$0xff]  }
  0xb1   : > { %6695 = vmatprep.subr.bf16.mxu1 %v7445_v60  ;;  %6807 = vmatprep.subr.bf16.mxu0 %v7447_v62  ;;  %v1476_v32 = vrot.slane %v1474_v24, 4  ;;  %v1925_v60 = vld [vmem:[#allocation2 + $0x4] sm:$0xf] }
  0xb2   : > { %v2025_v62 = vrot.slane %v1925_v60, 5 }
  0xb4   : > { %6696 = vmatpush3.bf16.msra.mxu1 %v7446_v61  ;;  %6808 = vmatpush3.bf16.msra.mxu0 %v7448_v63  ;;  %v1924_v61 = vld [vmem:[#allocation2] sm:$0xe]  ;;  %v8131_v63 = vld [vmem:[%s9514_s4] ss:$0 sm:$0xff]  ;;  %v2027_v7 = vrot.slane %v2025_v62, 4 }
  0xb5   : > { %6697 = vmatprep.subr.bf16.mxu1 %v7449_v0  ;;  %6809 = vmatprep.subr.bf16.mxu0 %v7451_v2  ;;  %v1926_v0 = vld [vmem:[#allocation2 + $0x8] sm:$0x1]  ;;  %v8136_v2 = vld [vmem:[%s9515_s5] ss:$0 sm:$0xff] }
  0xb6   : > { %7210 = vmatmul.mubr.bf16.gmra.mrb[4].mxu0 %v485_v36  ;;  %7226 = vmatmul.mubr.bf16.gmra.mrb[4].mxu1 %v493_v38  ;;  %v1477_v36 = vor.u32 %v1476_v32, %v1472_v31  ;;  %v1468_v38 = vrot.slane %v1467_v34, 4 }
  0xb7   : > { %7213 = vmatprep.mubr.bf16.mxu0 %v486_v37  ;;  %7229 = vmatprep.mubr.bf16.mxu1 %v494_v41  ;;  %v7469_v37 = vld [vmem:[#allocation9 + $0x78] sm:$0xff]  }
  0xb8   : > { %6698 = vmatpush3.bf16.msra.mxu1 %v7450_v1  ;;  %6810 = vmatpush3.bf16.msra.mxu0 %v7452_v3  ;;  %v1478_v42 = vrot.slane %v1477_v36, 4  ;;  %v1473_v44 = vsel %vm8120_vm2, %v1468_v38, %v1472_v31  ;;  %v6417_v3 = vrot.slane %v1924_v61, 9 }
  0xb9   : > { %6699 = vmatprep.subr.bf16.mxu1 %v7453_v4  ;;  %6811 = vmatprep.subr.bf16.mxu0 %v7455_v9 }
  0xba   : > { %v1483_v46 = vsel %vm8120_vm2, %v1478_v42, %v1482_v43  ;;  %v8151_v20 = vsel %vm8139_vm5, %v6417_v3, %v2025_v62 }
  0xbb   : > { %v6401_v47 = vcombine.low %v1473_v44, %v1483_v46 }
  0xbc   : > { %6700 = vmatpush3.bf16.msra.mxu1 %v7454_v8  ;;  %6812 = vmatpush3.bf16.msra.mxu0 %v7456_v10  ;;  %v2028_v8 = vrot.slane %v1926_v0, 5 }
  0xbd   : > { %6701 = vmatprep.subr.bf16.mxu1 %v7457_v11  ;;  %6813 = vmatprep.subr.bf16.mxu0 %v7459_v13 }
  0xbe   : > { %7214 = vmatmul.mubr.bf16.gmra.mrb[8].mxu0 %v487_v48  ;;  %7230 = vmatmul.mubr.bf16.gmra.mrb[8].mxu1 %v495_v50  ;;  %v7473_v48 = vld [vmem:[#allocation2] sm:$0xff]   ;;  %v7477_v50 = vld [vmem:[#allocation9 + $0x100] sm:$0xff]  }
  0xbf   : > { %7217 = vmatprep.mubr.bf16.mxu0 %v488_v49  ;;  %7233 = vmatprep.mubr.bf16.mxu1 %v496_v53  ;;  %v7475_v49 = vld [vmem:[#allocation9 + $0x140] sm:$0xff]   ;;  %v7486_v53 = vld [vmem:[#allocation9 + $0x150] sm:$0xff]  }
  0xc0   : > { %6702 = vmatpush3.bf16.msra.mxu1 %v7458_v12  ;;  %6814 = vmatpush3.bf16.msra.mxu0 %v7460_v14 }
  0xc1   : > { %6703 = vmatprep.subr.bf16.mxu1 %v7461_v15  ;;  %6815 = vmatprep.subr.bf16.mxu0 %v7463_v17  ;;  %v7508_v17 = vld [vmem:[#allocation9 + $0x168] sm:$0xff]  }
  0xc4   : > { %6704 = vmatpush3.bf16.msra.mxu1 %v7462_v16  ;;  %6816 = vmatpush3.bf16.msra.mxu0 %v7464_v19 }
  0xc5   : > { %6705 = vmatprep.subr.bf16.mxu1 %v7465_v25  ;;  %6817 = vmatprep.subr.bf16.mxu0 %v7467_v29  ;;  %v8157_v25 = vsel %vm8139_vm5, %v2027_v7, %v2028_v8 }
  0xc6   : > { %7218 = vmatmul.mubr.bf16.gmra.mrb[12].mxu0 %v489_v56  ;;  %7234 = vmatmul.mubr.bf16.gmra.mrb[12].mxu1 %v497_v57  ;;  %v7495_v56 = vld [vmem:[#allocation9 + $0x118] sm:$0xff]   ;;  %v7498_v57 = vld [vmem:[#allocation9 + $0x1c0] sm:$0xff]   ;;  %v6433_v38 = vcombine.low %v8151_v20, %v8157_v25 }
  0xc7   : > { %4857 = vmatprep.mubr.bf16.mxu1 %v6401_v47 }
  0xc8   : > { %6706 = vmatpush3.bf16.msra.mxu1 %v7466_v28  ;;  %6818 = vmatpush3.bf16.msra.mxu0 %v7468_v33 }
  0xc9   : > { %6707 = vmatprep.subr.bf16.mxu1 %v7469_v37  ;;  %6819 = vmatprep.subr.bf16.mxu0 %v7471_v40 }
  0xcc   : > { %6708 = vmatpush3.bf16.msra.mxu1 %v7470_v39  ;;  %6820 = vmatpush3.bf16.msra.mxu0 %v7472_v45 }
  0xcd   : > { %6917 = vmatprep.subr.bf16.mxu1 %v7475_v49  ;;  %7029 = vmatprep.subr.bf16.mxu0 %v7498_v57 }
  0xcf   : > { %4858 = vmatmul.mubr.bf16.vlgmr.msra.gmra.mrb[16].mxu1 %v7473_v48 }
  0xd0   : > { %6918 = vmatpush3.bf16.msra.mxu1 %v7477_v50 }
  0xd1   : > { %6919 = vmatprep.subr.bf16.mxu1 %v7480_v51 }
  0xd4   : > { %6920 = vmatpush3.bf16.msra.mxu1 %v7483_v52 }
  0xd5   : > { %6921 = vmatprep.subr.bf16.mxu1 %v7486_v53 }
  0xd8   : > { %6922 = vmatpush3.bf16.msra.mxu1 %v7489_v54 }
  0xd9   : > { %6923 = vmatprep.subr.bf16.mxu1 %v7492_v55 }
  0xdc   : > { %6924 = vmatpush3.bf16.msra.mxu1 %v7495_v56 }
  0xdd   : > { %6925 = vmatprep.subr.bf16.mxu1 %v7500_v58 }
  0xe0   : > { %6926 = vmatpush3.bf16.msra.mxu1 %v7503_v59 }
  0xe1   : > { %6927 = vmatprep.subr.bf16.mxu1 %v7508_v17 }
  0xe4   : > { %6928 = vmatpush3.bf16.msra.mxu1 %v7511_v23 }
 0x181   : > { %v7207_v1 = vpop.f32.mrb[0].mxu0  ;;  %v7223_v11 = vpop.f32.mrb[0].mxu1 }
 0x182   : > { %v732_v4 = vmul.f32 %v7207_v1, %v8131_v63  ;;  %v596_v5 = vpop.f32.mrb[1].mxu0  ;;  %v748_v15 = vmul.f32 %v7223_v11, %v8131_v63  ;;  %v660_v16 = vpop.f32.mrb[1].mxu1 }
 0x183   : > { %v730_v9 = vmul.f32 %v8131_v63, %v596_v5  ;;  %v7208_v10 = vpop.f32.mrb[2].mxu0  ;;  %v746_v21 = vmul.f32 %v8131_v63, %v660_v16  ;;  %v7224_v22 = vpop.f32.mrb[2].mxu1 }
 0x184   : > { %v771_v12 = vadd.f32 %v8136_v2, %v732_v4  ;;  %v733_v13 = vmul.f32 %v7208_v10, %v8131_v63  ;;  %v599_v14 = vpop.f32.mrb[3].mxu0  ;;  %v787_v26 = vadd.f32 %v8136_v2, %v748_v15  ;;  %v749_v27 = vmul.f32 %v7224_v22, %v8131_v63  ;;  %v663_v28 = vpop.f32.mrb[3].mxu1 }
 0x185   : > { %v769_v18 = vadd.f32 %v8136_v2, %v730_v9  ;;  %v731_v19 = vmul.f32 %v8131_v63, %v599_v14  ;;  %v785_v30 = vadd.f32 %v8136_v2, %v746_v21  ;;  %v747_v31 = vmul.f32 %v8131_v63, %v663_v28  ;;  %v7516_v28 = vld [vmem:[#allocation9 + $0x170] sm:$0xff]  }
 0x186   : > { %v772_v24 = vadd.f32 %v8136_v2, %v733_v13  ;;  %v803_v32 = vmax.f32 %v771_v12, 0.0  ;;  %v788_v34 = vadd.f32 %v8136_v2, %v749_v27  ;;  %v819_v44 = vmax.f32 %v787_v26, 0.0  ;;  %6929 = vmatprep.subr.bf16.mxu1 %v7516_v28 }
 0x187   : > { %v770_v29 = vadd.f32 %v8136_v2, %v731_v19  ;;  %v801_v35 = vmax.f32 %v769_v18, 0.0  ;;  %v786_v39 = vadd.f32 %v8136_v2, %v747_v31  ;;  %v817_v49 = vmax.f32 %v785_v30, 0.0 }
 0x188   : > { %v804_v33 = vmax.f32 %v772_v24, 0.0  ;;  %v820_v45 = vmax.f32 %v788_v34, 0.0 }
 0x189   : > { %v802_v36 = vmax.f32 %v770_v29, 0.0  ;;  %v7211_v37 = vpop.f32.mrb[4].mxu0  ;;  %v818_v50 = vmax.f32 %v786_v39, 0.0  ;;  %v8170_v51 = vpop.f32.mrb[4].mxu1 }
 0x18a   : > { %v834_v40 = vpack.c.bf16 %v804_v33, %v803_v32  ;;  %v736_v42 = vmul.f32 %v7211_v37, %v8131_v63  ;;  %v612_v43 = vpop.f32.mrb[5].mxu0  ;;  %v8174_v57 = vpop.f32.mrb[5].mxu1  ;;  %v8187_v5 = vpack.c.bf16 %v820_v45, %v819_v44 }
 0x18b   : > { %v833_v46 = vpack.c.bf16 %v802_v36, %v801_v35  ;;  %v734_v47 = vmul.f32 %v8131_v63, %v612_v43  ;;  %v7212_v48 = vpop.f32.mrb[6].mxu0  ;;  %v8184_v0 = vpop.f32.mrb[6].mxu1  ;;  %v8192_v11 = vpack.c.bf16 %v818_v50, %v817_v49 }
 0x18c   : > { %v857_v52 = vshrl.u32 %v834_v40, 16  ;;  %v860_v53 = vshll.u32 %v834_v40, 16  ;;  %v775_v54 = vadd.f32 %v8136_v2, %v736_v42  ;;  %v737_v55 = vmul.f32 %v7212_v48, %v8131_v63  ;;  %v615_v56 = vpop.f32.mrb[7].mxu0  ;;  %v8189_v7 = vpop.f32.mrb[7].mxu1  ;;  %v7519_v48 = vld [vmem:[#allocation9 + $0x130] sm:$0xff]  }
 0x18d   : > { %v850_v59 = vshrl.u32 %v833_v46, 16  ;;  %v853_v60 = vshll.u32 %v833_v46, 16  ;;  %v773_v61 = vadd.f32 %v8136_v2, %v734_v47  ;;  %v735_v62 = vmul.f32 %v8131_v63, %v615_v56  ;;  %6930 = vmatpush3.bf16.msra.mxu1 %v7519_v48 }
 0x18e   : > { %v859_v1 = vrot.slane %v857_v52, 7  ;;  %v807_v3 = vmax.f32 %v775_v54, 0.0  ;;  %v776_v4 = vadd.f32 %v8136_v2, %v737_v55  ;;  %v913_v15 = vshrl.u32 %v8187_v5, 16 }
 0x18f   : > { %v852_v8 = vrot.slane %v850_v59, 7  ;;  %v805_v9 = vmax.f32 %v773_v61, 0.0  ;;  %v774_v10 = vadd.f32 %v8136_v2, %v735_v62 }
 0x190   : > { %v862_v12 = vor.u32 %v860_v53, %v859_v1  ;;  %v1013_v13 = vsel %vm8178_vm8, %v859_v1, 0  ;;  %v808_v14 = vmax.f32 %v776_v4, 0.0  ;;  %v8214_v53 = vrot.slane %v913_v15, 7 }
 0x191   : > { %v6342_v16 = vcombine.low %v1013_v13, %v1013_v13  ;;  %v855_v17 = vor.u32 %v853_v60, %v852_v8  ;;  %v1012_v18 = vsel %vm8178_vm8, %v852_v8, 0  ;;  %v806_v19 = vmax.f32 %v774_v10, 0.0  ;;  %v7215_v21 = vpop.f32.mrb[8].mxu0  ;;  %v8204_v34 = vpop.f32.mrb[8].mxu1 }
 0x192   : > { %v997_v22 = vsel %vm8178_vm8, 0, %v862_v12  ;;  %v6339_v23 = vcombine.low %v1012_v18, %v1012_v18  ;;  %v836_v24 = vpack.c.bf16 %v808_v14, %v807_v3  ;;  %v740_v26 = vmul.f32 %v7215_v21, %v8131_v63  ;;  %v628_v27 = vpop.f32.mrb[9].mxu0  ;;  %v8206_v42 = vpop.f32.mrb[9].mxu1 }
 0x193   : > { %v6340_v29 = vcombine.low %v997_v22, %v997_v22  ;;  %v6341_v30 = vcombine.high %v997_v22, %v997_v22  ;;  %1219 = vst [vmem:[#allocation2 + $0x20] sm:$0x1] %v6342_v16  ;;  %v996_v31 = vsel %vm8178_vm8, 0, %v855_v17  ;;  %v835_v32 = vpack.c.bf16 %v806_v19, %v805_v9  ;;  %v7216_v33 = vpop.f32.mrb[10].mxu0  ;;  %v8210_v47 = vpop.f32.mrb[10].mxu1 }
 0x194   : > { %v6337_v35 = vcombine.low %v996_v31, %v996_v31  ;;  %v6338_v36 = vcombine.high %v996_v31, %v996_v31  ;;  %1216 = vst [vmem:[#allocation2 + $0x14] sm:$0x1] %v6339_v23  ;;  %v871_v37 = vshrl.u32 %v836_v24, 16  ;;  %v874_v39 = vshll.u32 %v836_v24, 16  ;;  %v631_v40 = vpop.f32.mrb[11].mxu0  ;;  %v8216_v54 = vpop.f32.mrb[11].mxu1 }
 0x195   : > { %1217 = vst [vmem:[#allocation2 + $0x18] sm:$0xf] %v6340_v29  ;;  %1218 = vst [vmem:[#allocation2 + $0x1c] sm:$0xf] %v6341_v30  ;;  %v864_v43 = vshrl.u32 %v835_v32, 16  ;;  %v867_v44 = vshll.u32 %v835_v32, 16  ;;  %v779_v45 = vadd.f32 %v8136_v2, %v740_v26  ;;  %v738_v46 = vmul.f32 %v8131_v63, %v628_v27 }
 0x196   : > { %1214 = vst [vmem:[#allocation2 + $0xc] sm:$0xf] %v6337_v35  ;;  %1215 = vst [vmem:[#allocation2 + $0x10] sm:$0xf] %v6338_v36  ;;  %v873_v49 = vrot.slane %v871_v37, 7  ;;  %v741_v50 = vmul.f32 %v7216_v33, %v8131_v63  ;;  %v739_v52 = vmul.f32 %v8131_v63, %v631_v40  ;;  %v916_v60 = vshll.u32 %v8187_v5, 16 }
 0x197   : > { %v866_v55 = vrot.slane %v864_v43, 7  ;;  %v811_v56 = vmax.f32 %v779_v45, 0.0  ;;  %v777_v59 = vadd.f32 %v8136_v2, %v738_v46  ;;  %v7499_v26 = vld [vmem:[#allocation9 + $0x180] sm:$0xff]   ;;  %v7506_v32 = vld [vmem:[#allocation9 + $0x1c8] sm:$0xff]   ;;  %v906_v5 = vshrl.u32 %v8192_v11, 16 }
 0x198   : > { %v876_v61 = vor.u32 %v874_v39, %v873_v49  ;;  %v1015_v62 = vsel %vm8178_vm8, %v873_v49, 0  ;;  %v780_v1 = vadd.f32 %v8136_v2, %v741_v50  ;;  %v778_v3 = vadd.f32 %v8136_v2, %v739_v52 }
 0x199   : > { %v6348_v4 = vcombine.low %v1015_v62, %v1015_v62  ;;  %v869_v8 = vor.u32 %v867_v44, %v866_v55  ;;  %v1014_v9 = vsel %vm8178_vm8, %v866_v55, 0  ;;  %v809_v10 = vmax.f32 %v777_v59, 0.0  ;;  %v7219_v12 = vpop.f32.mrb[12].mxu0 }
 0x19a   : > { %v999_v13 = vsel %vm8178_vm8, 0, %v876_v61  ;;  %v6345_v14 = vcombine.low %v1014_v9, %v1014_v9  ;;  %v812_v15 = vmax.f32 %v780_v1, 0.0  ;;  %v810_v16 = vmax.f32 %v778_v3, 0.0  ;;  %v644_v17 = vpop.f32.mrb[13].mxu0  ;;  %v7507_v3 = vld [vmem:[#allocation9 + $0x188] sm:$0xff]  }
 0x19b   : > { %v6346_v18 = vcombine.low %v999_v13, %v999_v13  ;;  %v6347_v19 = vcombine.high %v999_v13, %v999_v13  ;;  %1225 = vst [vmem:[#allocation2 + $0x38] sm:$0x1] %v6348_v4  ;;  %v998_v21 = vsel %vm8178_vm8, 0, %v869_v8  ;;  %v744_v22 = vmul.f32 %v7219_v12, %v8131_v63  ;;  %v1414_v23 = vld [vmem:[#allocation2 + $0x14] sm:$0x1]  ;;  %v7220_v24 = vpop.f32.mrb[14].mxu0 }
 0x19c   : > { %v6343_v27 = vcombine.low %v998_v21, %v998_v21  ;;  %v6344_v28 = vcombine.high %v998_v21, %v998_v21  ;;  %1222 = vst [vmem:[#allocation2 + $0x2c] sm:$0x1] %v6345_v14  ;;  %v838_v29 = vpack.c.bf16 %v812_v15, %v811_v56  ;;  %v837_v30 = vpack.c.bf16 %v810_v16, %v809_v10  ;;  %v8231_v31 = vpop.f32.mrb[15].mxu0  ;;  %v7476_v48 = vld [vmem:[#allocation2 + $0x18] sm:$0xff]   ;;  %v7514_v4 = vld [vmem:[#allocation9 + $0x1d0] sm:$0xff]  }
 0x19d   : > { %1223 = vst [vmem:[#allocation2 + $0x30] sm:$0xf] %v6346_v18  ;;  %1224 = vst [vmem:[#allocation2 + $0x34] sm:$0xf] %v6347_v19  ;;  %v7474_v33 = vld [vmem:[#allocation2 + $0xc] sm:$0xff]   ;;  %v8234_v35 = vadd.f32 %v8136_v2, %v744_v22  ;;  %v742_v36 = vmul.f32 %v8131_v63, %v644_v17  ;;  %v1504_v37 = vshll.u32 %v1414_v23, 16  ;;  %v8238_v39 = vmul.f32 %v7220_v24, %v8131_v63 }
 0x19e   : > { %1220 = vst [vmem:[#allocation2 + $0x24] sm:$0xf] %v6343_v27  ;;  %1221 = vst [vmem:[#allocation2 + $0x28] sm:$0xf] %v6344_v28  ;;  %v885_v40 = vshrl.u32 %v838_v29, 16  ;;  %v888_v43 = vshll.u32 %v838_v29, 16  ;;  %5018 = vmatprep.mubr.bf16.mxu0 %v7474_v33 }
 0x19f   : > { %v878_v44 = vshrl.u32 %v837_v30, 16  ;;  %v881_v45 = vshll.u32 %v837_v30, 16  ;;  %v1412_v46 = vld [vmem:[#allocation2 + $0xc] sm:$0xf]  ;;  %v815_v49 = vmax.f32 %v8234_v35, 0.0  ;;  %v8242_v50 = vadd.f32 %v8136_v2, %v742_v36  ;;  %5019 = vmatmul.mubr.bf16.vlgmr.msra.gmra.mrb[16].mxu0 %v6433_v38  ;;  %v8256_v33 = vpop.f32.mrb[12].mxu1 }
 0x1a0   : > { %v1413_v52 = vld [vmem:[#allocation2 + $0x10] sm:$0xf]  ;;  %v1485_v55 = vshrl.u32 %v1412_v46, 16  ;;  %v1488_v56 = vshll.u32 %v1412_v46, 16  ;;  %v887_v59 = vrot.slane %v885_v40, 7  ;;  %5026 = vmatprep.mubr.bf16.mxu0 %v7476_v48  ;;  %v1506_v12 = vrot.slane %v1504_v37, 5  ;;  %7030 = vmatpush3.bf16.msra.mxu0 %v7499_v26 }
 0x1a1   : > { %v880_v61 = vrot.slane %v878_v44, 7  ;;  %v1494_v62 = vshll.u32 %v1413_v52, 16  ;;  %v1498_v1 = vshrl.u32 %v1413_v52, 16  ;;  %v813_v8 = vmax.f32 %v8242_v50, 0.0  ;;  %v1927_v13 = vld [vmem:[#allocation2 + $0xc] sm:$0xe]  ;;  %7031 = vmatprep.subr.bf16.mxu0 %v7506_v32 }
 0x1a2   : > { %v1487_v9 = vrot.slane %v1485_v55, 4  ;;  %v1490_v10 = vrot.slane %v1488_v56, 5  ;;  %v890_v14 = vor.u32 %v888_v43, %v887_v59  ;;  %v1017_v15 = vsel %vm8178_vm8, %v887_v59, 0  ;;  %v1928_v19 = vld [vmem:[#allocation2 + $0x10] sm:$0xf]  ;;  %v7515_v36 = vld [vmem:[#allocation9 + $0x190] sm:$0xff]  }
 0x1a3   : > { %v883_v16 = vor.u32 %v881_v45, %v880_v61  ;;  %v1016_v20 = vsel %vm8178_vm8, %v880_v61, 0  ;;  %v6354_v25 = vcombine.low %v1017_v15, %v1017_v15  ;;  %v1496_v18 = vrot.slane %v1494_v62, 5  ;;  %v1929_v21 = vld [vmem:[#allocation2 + $0x14] sm:$0x1]  ;;  %v1415_v27 = vld [vmem:[#allocation2 + $0x18] sm:$0xf] }
 0x1a4   : > { %v6351_v38 = vcombine.low %v1016_v20, %v1016_v20  ;;  %v1491_v17 = vor.u32 %v1490_v10, %v1487_v9  ;;  %v1001_v22 = vsel %vm8178_vm8, 0, %v890_v14  ;;  %v1500_v24 = vrot.slane %v1498_v1, 4  ;;  %7032 = vmatpush3.bf16.msra.mxu0 %v7507_v3  ;;  %v1416_v48 = vld [vmem:[#allocation2 + $0x1c] sm:$0xf]  ;;  %v1417_v52 = vld [vmem:[#allocation2 + $0x20] sm:$0x1] }
 0x1a5   : > { %v1000_v23 = vsel %vm8178_vm8, 0, %v883_v16  ;;  %v6418_v26 = vrot.slane %v1927_v13, 9  ;;  %v6352_v28 = vcombine.low %v1001_v22, %v1001_v22  ;;  %v6353_v29 = vcombine.high %v1001_v22, %v1001_v22  ;;  %1231 = vst [vmem:[#allocation2 + $0x50] sm:$0x1] %v6354_v25  ;;  %7033 = vmatprep.subr.bf16.mxu0 %v7514_v4  ;;  %v7479_v15 = vld [vmem:[#allocation2 + $0x24] sm:$0xff]  }
 0x1a6   : > { %v6349_v30 = vcombine.low %v1000_v23, %v1000_v23  ;;  %v6350_v32 = vcombine.high %v1000_v23, %v1000_v23  ;;  %1228 = vst [vmem:[#allocation2 + $0x44] sm:$0x1] %v6351_v38  ;;  %v1492_v37 = vrot.slane %v1491_v17, 4  ;;  %v1501_v40 = vor.u32 %v1500_v24, %v1496_v18  ;;  %v1930_v16 = vld [vmem:[#allocation2 + $0x18] sm:$0xe]  ;;  %v7478_v17 = vld [vmem:[#allocation2 + $0xc] sm:$0xff]  }
 0x1a7   : > { %v2032_v43 = vrot.slane %v1928_v19, 5  ;;  %v2035_v44 = vrot.slane %v1929_v21, 5  ;;  %1229 = vst [vmem:[#allocation2 + $0x48] sm:$0xf] %v6352_v28  ;;  %1230 = vst [vmem:[#allocation2 + $0x4c] sm:$0xf] %v6353_v29  ;;  %v784_v45 = vadd.f32 %v8136_v2, %v8238_v39  ;;  %v743_v46 = vmul.f32 %v8131_v63, %v8231_v31 }
 0x1a8   : > { %1226 = vst [vmem:[#allocation2 + $0x3c] sm:$0xf] %v6349_v30  ;;  %1227 = vst [vmem:[#allocation2 + $0x40] sm:$0xf] %v6350_v32  ;;  %v1509_v55 = vshrl.u32 %v1415_v27, 16  ;;  %v1512_v56 = vshll.u32 %v1415_v27, 16  ;;  %v1497_v59 = vsel %vm8120_vm2, %v1492_v37, %v1496_v18  ;;  %7034 = vmatpush3.bf16.msra.mxu0 %v7515_v36 }
 0x1a9   : > { %v1502_v61 = vrot.slane %v1501_v40, 4  ;;  %v2033_v62 = vsel %vm8139_vm5, %v6418_v26, %v2032_v43  ;;  %v2034_v1 = vrot.slane %v2032_v43, 4  ;;  %v816_v3 = vmax.f32 %v784_v45, 0.0  ;;  %v1931_v19 = vld [vmem:[#allocation2 + $0x1c] sm:$0xf]  ;;  %v8273_v26 = vpop.f32.mrb[13].mxu1 }
 0x1aa   : > { %v782_v4 = vadd.f32 %v8136_v2, %v743_v46  ;;  %v1511_v9 = vrot.slane %v1509_v55, 4  ;;  %v1514_v39 = vrot.slane %v1512_v56, 5  ;;  %v1518_v13 = vshll.u32 %v1416_v48, 16  ;;  %v1418_v35 = vld [vmem:[#allocation2 + $0x24] sm:$0xf] }
 0x1ab   : > { %v1507_v31 = vsel %vm8120_vm2, %v1502_v61, %v1506_v12  ;;  %v2036_v10 = vsel %vm8139_vm5, %v2034_v1, %v2035_v44  ;;  %v1522_v14 = vshrl.u32 %v1416_v48, 16  ;;  %v840_v38 = vpack.c.bf16 %v816_v3, %v815_v49  ;;  %v1932_v12 = vld [vmem:[#allocation2 + $0x20] sm:$0x1]  ;;  %v8277_v49 = vpop.f32.mrb[14].mxu1  ;;  %v1419_v55 = vld [vmem:[#allocation2 + $0x28] sm:$0xf] }
 0x1ac   : > { %v6402_v20 = vcombine.low %v1497_v59, %v1507_v31  ;;  %v6434_v25 = vcombine.low %v2033_v62, %v2036_v10  ;;  %v814_v18 = vmax.f32 %v782_v4, 0.0  ;;  %v1515_v21 = vor.u32 %v1514_v39, %v1511_v9  ;;  %v1420_v62 = vld [vmem:[#allocation2 + $0x2c] sm:$0x1]  ;;  %v7481_v39 = vld [vmem:[#allocation2 + $0x18] sm:$0xff]  }
 0x1ad   : > { %v1520_v22 = vrot.slane %v1518_v13, 5  ;;  %v1524_v23 = vrot.slane %v1522_v14, 4  ;;  %v1528_v24 = vshll.u32 %v1417_v52, 16  ;;  %v899_v27 = vshrl.u32 %v840_v38, 16 }
 0x1ae   : > { %4865 = vmatprep.mubr.bf16.mxu1 %v6402_v20  ;;  %5027 = vmatmul.mubr.bf16.gmra.mrb[20].mxu0 %v6434_v25  ;;  %v902_v28 = vshll.u32 %v840_v38, 16  ;;  %v839_v29 = vpack.c.bf16 %v814_v18, %v813_v8  ;;  %v6419_v30 = vrot.slane %v1930_v16, 9  ;;  %v1516_v32 = vrot.slane %v1515_v21, 4  ;;  %v7482_v16 = vld [vmem:[#allocation2 + $0x30] sm:$0xff]   ;;  %v1933_v20 = vld [vmem:[#allocation2 + $0x24] sm:$0xe] }
 0x1af   : > { %4866 = vmatmul.mubr.bf16.gmra.mrb[20].mxu1 %v7478_v17  ;;  %v1525_v36 = vor.u32 %v1524_v23, %v1520_v22  ;;  %v1530_v37 = vrot.slane %v1528_v24, 5  ;;  %5034 = vmatprep.mubr.bf16.mxu0 %v7479_v15  ;;  %v2039_v40 = vrot.slane %v1931_v19, 5  ;;  %v901_v43 = vrot.slane %v899_v27, 7  ;;  %v1934_v25 = vld [vmem:[#allocation2 + $0x28] sm:$0xf] }
 0x1b0   : > { %v892_v44 = vshrl.u32 %v839_v29, 16  ;;  %v895_v45 = vshll.u32 %v839_v29, 16  ;;  %v2042_v46 = vrot.slane %v1932_v12, 5  ;;  %v1521_v48 = vsel %vm8120_vm2, %v1516_v32, %v1520_v22  ;;  %v1935_v21 = vld [vmem:[#allocation2 + $0x2c] sm:$0x1] }
 0x1b1   : > { %v1526_v52 = vrot.slane %v1525_v36, 4  ;;  %v2040_v50 = vsel %vm8139_vm5, %v6419_v30, %v2039_v40  ;;  %v2041_v8 = vrot.slane %v2039_v40, 4  ;;  %v904_v56 = vor.u32 %v902_v28, %v901_v43 }
 0x1b2   : > { %v1019_v59 = vsel %vm8178_vm8, %v901_v43, 0  ;;  %v894_v61 = vrot.slane %v892_v44, 7  ;;  %v1533_v1 = vshrl.u32 %v1418_v35, 16  ;;  %v1536_v31 = vshll.u32 %v1418_v35, 16 }
 0x1b3   : > { %v6360_v3 = vcombine.low %v1019_v59, %v1019_v59  ;;  %v1531_v4 = vsel %vm8120_vm2, %v1526_v52, %v1530_v37  ;;  %v2043_v9 = vsel %vm8139_vm5, %v2041_v8, %v2042_v46  ;;  %v1003_v10 = vsel %vm8178_vm8, 0, %v904_v56  ;;  %v8298_v46 = vpop.f32.mrb[15].mxu1  ;;  %v7522_v56 = vld [vmem:[#allocation9 + $0x1d8] sm:$0xff]  }
 0x1b4   : > { %v897_v13 = vor.u32 %v895_v45, %v894_v61  ;;  %v1018_v14 = vsel %vm8178_vm8, %v894_v61, 0  ;;  %v6403_v15 = vcombine.low %v1521_v48, %v1531_v4  ;;  %v6358_v38 = vcombine.low %v1003_v10, %v1003_v10  ;;  %7035 = vmatprep.subr.bf16.mxu0 %v7522_v56 }
 0x1b5   : > { %v6359_v17 = vcombine.high %v1003_v10, %v1003_v10  ;;  %1237 = vst [vmem:[#allocation2 + $0x68] sm:$0x1] %v6360_v3  ;;  %v6357_v18 = vcombine.low %v1018_v14, %v1018_v14  ;;  %v6435_v19 = vcombine.low %v2040_v50, %v2043_v9  ;;  %v1535_v23 = vrot.slane %v1533_v1, 4  ;;  %v1422_v1 = vld [vmem:[#allocation2 + $0x34] sm:$0xf] }
 0x1b6   : > { %v1002_v22 = vsel %vm8178_vm8, 0, %v897_v13  ;;  %4873 = vmatprep.mubr.bf16.mxu1 %v6403_v15  ;;  %v1538_v24 = vrot.slane %v1536_v31, 5  ;;  %v1542_v12 = vshll.u32 %v1419_v55, 16  ;;  %1235 = vst [vmem:[#allocation2 + $0x60] sm:$0xf] %v6358_v38  ;;  %v1546_v29 = vshrl.u32 %v1419_v55, 16 }
 0x1b7   : > { %1236 = vst [vmem:[#allocation2 + $0x64] sm:$0xf] %v6359_v17  ;;  %v6355_v27 = vcombine.low %v1002_v22, %v1002_v22  ;;  %v6356_v28 = vcombine.high %v1002_v22, %v1002_v22  ;;  %1234 = vst [vmem:[#allocation2 + $0x5c] sm:$0x1] %v6357_v18  ;;  %5035 = vmatmul.mubr.bf16.gmra.mrb[24].mxu0 %v6435_v19  ;;  %4874 = vmatmul.mubr.bf16.gmra.mrb[24].mxu1 %v7481_v39  ;;  %v1552_v30 = vshll.u32 %v1420_v62, 16  ;;  %v7485_v55 = vld [vmem:[#allocation2 + $0x3c] sm:$0xff]  }
 0x1b8   : > { %5042 = vmatprep.mubr.bf16.mxu0 %v7482_v16  ;;  %v1539_v35 = vor.u32 %v1538_v24, %v1535_v23  ;;  %v1544_v32 = vrot.slane %v1542_v12, 5  ;;  %v6420_v36 = vrot.slane %v1933_v20, 9  ;;  %v2046_v37 = vrot.slane %v1934_v25, 5  ;;  %v1936_v15 = vld [vmem:[#allocation2 + $0x30] sm:$0xe] }
 0x1b9   : > { %1232 = vst [vmem:[#allocation2 + $0x54] sm:$0xf] %v6355_v27  ;;  %1233 = vst [vmem:[#allocation2 + $0x58] sm:$0xf] %v6356_v28  ;;  %v1548_v40 = vrot.slane %v1546_v29, 4  ;;  %v1554_v43 = vrot.slane %v1552_v30, 5  ;;  %v918_v45 = vor.u32 %v916_v60, %v8214_v53 }
 0x1ba   : > { %v2049_v44 = vrot.slane %v1935_v21, 5  ;;  %v1540_v48 = vrot.slane %v1539_v35, 4  ;;  %v2047_v52 = vsel %vm8139_vm5, %v6420_v36, %v2046_v37  ;;  %v2048_v50 = vrot.slane %v2046_v37, 4  ;;  %v1421_v60 = vld [vmem:[#allocation2 + $0x30] sm:$0xf]  ;;  %v7484_v21 = vld [vmem:[#allocation2 + $0x24] sm:$0xff]  }
 0x1bb   : > { %v1021_v8 = vsel %vm8178_vm8, %v8214_v53, 0  ;;  %v1549_v59 = vor.u32 %v1548_v40, %v1544_v32  ;;  %v1005_v61 = vsel %vm8178_vm8, 0, %v918_v45  ;;  %v1423_v53 = vld [vmem:[#allocation2 + $0x38] sm:$0x1]  ;;  %v908_v13 = vrot.slane %v906_v5, 7  ;;  %v7523_v16 = vld [vmem:[#allocation9 + $0x198] sm:$0xff]  }
 0x1bc   : > { %v6366_v62 = vcombine.low %v1021_v8, %v1021_v8  ;;  %v1545_v3 = vsel %vm8120_vm2, %v1540_v48, %v1544_v32  ;;  %v2050_v4 = vsel %vm8139_vm5, %v2048_v50, %v2049_v44  ;;  %v6364_v9 = vcombine.low %v1005_v61, %v1005_v61  ;;  %v1937_v18 = vld [vmem:[#allocation2 + $0x34] sm:$0xf]  ;;  %v1424_v12 = vld [vmem:[#allocation2 + $0x3c] sm:$0xf]  ;;  %7036 = vmatpush3.bf16.msra.mxu0 %v7523_v16  ;;  %v1425_v40 = vld [vmem:[#allocation2 + $0x40] sm:$0xf] }
 0x1bd   : > { %v6365_v39 = vcombine.high %v1005_v61, %v1005_v61  ;;  %v1550_v31 = vrot.slane %v1549_v59, 4  ;;  %v6436_v10 = vcombine.low %v2047_v52, %v2050_v4  ;;  %v909_v14 = vshll.u32 %v8192_v11, 16  ;;  %v1938_v11 = vld [vmem:[#allocation2 + $0x38] sm:$0x1]  ;;  %v1426_v52 = vld [vmem:[#allocation2 + $0x44] sm:$0x1] }
 0x1be   : > { %1243 = vst [vmem:[#allocation2 + $0x80] sm:$0x1] %v6366_v62  ;;  %1241 = vst [vmem:[#allocation2 + $0x78] sm:$0xf] %v6364_v9  ;;  %v1557_v20 = vshrl.u32 %v1421_v60, 16  ;;  %v1560_v25 = vshll.u32 %v1421_v60, 16  ;;  %v752_v16 = vmul.f32 %v8170_v51, %v8131_v63 }
 0x1bf   : > { %1242 = vst [vmem:[#allocation2 + $0x7c] sm:$0xf] %v6365_v39  ;;  %v1566_v38 = vshll.u32 %v1422_v1, 16  ;;  %v1570_v17 = vshrl.u32 %v1422_v1, 16  ;;  %v1555_v19 = vsel %vm8120_vm2, %v1550_v31, %v1554_v43  ;;  %5043 = vmatmul.mubr.bf16.gmra.mrb[28].mxu0 %v6436_v10  ;;  %v911_v22 = vor.u32 %v909_v14, %v908_v13  ;;  %v1939_v10 = vld [vmem:[#allocation2 + $0x3c] sm:$0xe] }
 0x1c0   : > { %v1020_v23 = vsel %vm8178_vm8, %v908_v13, 0  ;;  %v1576_v24 = vshll.u32 %v1423_v53, 16  ;;  %v6404_v27 = vcombine.low %v1545_v3, %v1555_v19  ;;  %v1559_v29 = vrot.slane %v1557_v20, 4  ;;  %5050 = vmatprep.mubr.bf16.mxu0 %v7485_v55  ;;  %v1940_v20 = vld [vmem:[#allocation2 + $0x40] sm:$0xf]  ;;  %v7487_v19 = vld [vmem:[#allocation2 + $0x30] sm:$0xff]  }
 0x1c1   : > { %v6363_v28 = vcombine.low %v1020_v23, %v1020_v23  ;;  %v1562_v30 = vrot.slane %v1560_v25, 5  ;;  %v1004_v35 = vsel %vm8178_vm8, 0, %v911_v22  ;;  %v1568_v32 = vrot.slane %v1566_v38, 5  ;;  %v1941_v25 = vld [vmem:[#allocation2 + $0x44] sm:$0x1]  ;;  %v7524_v38 = vld [vmem:[#allocation9 + $0x178] sm:$0xff]  }
 0x1c2   : > { %v1572_v36 = vrot.slane %v1570_v17, 4  ;;  %v1578_v37 = vrot.slane %v1576_v24, 5  ;;  %4881 = vmatprep.mubr.bf16.mxu1 %v6404_v27  ;;  %v6361_v43 = vcombine.low %v1004_v35, %v1004_v35  ;;  %v6362_v44 = vcombine.high %v1004_v35, %v1004_v35  ;;  %6931 = vmatprep.subr.bf16.mxu1 %v7524_v38  ;;  %v1427_v35 = vld [vmem:[#allocation2 + $0x48] sm:$0xf] }
 0x1c3   : > { %1240 = vst [vmem:[#allocation2 + $0x74] sm:$0x1] %v6363_v28  ;;  %v1563_v45 = vor.u32 %v1562_v30, %v1559_v29  ;;  %v6421_v48 = vrot.slane %v1936_v15, 9  ;;  %4882 = vmatmul.mubr.bf16.gmra.mrb[28].mxu1 %v7484_v21  ;;  %v2053_v8 = vrot.slane %v1937_v18, 5  ;;  %v2056_v56 = vrot.slane %v1938_v11, 5  ;;  %v7488_v21 = vld [vmem:[#allocation2 + $0x48] sm:$0xff]  }
 0x1c4   : > { %v1573_v50 = vor.u32 %v1572_v36, %v1568_v32  ;;  %v1581_v55 = vshrl.u32 %v1424_v12, 16  ;;  %1238 = vst [vmem:[#allocation2 + $0x6c] sm:$0xf] %v6361_v43  ;;  %1239 = vst [vmem:[#allocation2 + $0x70] sm:$0xf] %v6362_v44  ;;  %v1584_v61 = vshll.u32 %v1424_v12, 16  ;;  %v791_v11 = vadd.f32 %v8136_v2, %v752_v16 }
 0x1c5   : > { %v1564_v59 = vrot.slane %v1563_v45, 4  ;;  %v1590_v62 = vshll.u32 %v1425_v40, 16  ;;  %v1594_v5 = vshrl.u32 %v1425_v40, 16  ;;  %v2054_v1 = vsel %vm8139_vm5, %v6421_v48, %v2053_v8  ;;  %v1428_v40 = vld [vmem:[#allocation2 + $0x4c] sm:$0xf] }
 0x1c6   : > { %v1574_v60 = vrot.slane %v1573_v50, 4  ;;  %v2055_v3 = vrot.slane %v2053_v8, 4  ;;  %v1583_v4 = vrot.slane %v1581_v55, 4  ;;  %v1586_v39 = vrot.slane %v1584_v61, 5  ;;  %v1429_v43 = vld [vmem:[#allocation2 + $0x50] sm:$0x1] }
 0x1c7   : > { %v1569_v9 = vsel %vm8120_vm2, %v1564_v59, %v1568_v32  ;;  %v1592_v53 = vrot.slane %v1590_v62, 5  ;;  %v1596_v31 = vrot.slane %v1594_v5, 4  ;;  %v1600_v15 = vshll.u32 %v1426_v52, 16  ;;  %v1942_v50 = vld [vmem:[#allocation2 + $0x48] sm:$0xe]  ;;  %v7525_v59 = vld [vmem:[#allocation9 + $0x1e0] sm:$0xff]  }
 0x1c8   : > { %v1579_v13 = vsel %vm8120_vm2, %v1574_v60, %v1578_v37  ;;  %v2057_v14 = vsel %vm8139_vm5, %v2055_v3, %v2056_v56  ;;  %v1587_v22 = vor.u32 %v1586_v39, %v1583_v4  ;;  %v750_v12 = vmul.f32 %v8131_v63, %v8174_v57  ;;  %v7528_v3 = vld [vmem:[#allocation9 + $0x138] sm:$0xff]   ;;  %v7490_v39 = vld [vmem:[#allocation2 + $0x3c] sm:$0xff]   ;;  %7037 = vmatprep.subr.bf16.mxu0 %v7525_v59 }
 0x1c9   : > { %v6405_v17 = vcombine.low %v1569_v9, %v1579_v13  ;;  %v6437_v18 = vcombine.low %v2054_v1, %v2057_v14  ;;  %v1597_v23 = vor.u32 %v1596_v31, %v1592_v53  ;;  %v1602_v24 = vrot.slane %v1600_v15, 5  ;;  %v1944_v1 = vld [vmem:[#allocation2 + $0x50] sm:$0x1]  ;;  %6932 = vmatpush3.bf16.msra.mxu1 %v7528_v3  ;;  %v7494_v59 = vld [vmem:[#allocation2 + $0x60] sm:$0xff]  }
 0x1ca   : > { %v6422_v27 = vrot.slane %v1939_v10, 9  ;;  %v1588_v51 = vrot.slane %v1587_v22, 4  ;;  %v2060_v29 = vrot.slane %v1940_v20, 5  ;;  %v2063_v30 = vrot.slane %v1941_v25, 5  ;;  %v7529_v10 = vld [vmem:[#allocation9 + $0x1a0] sm:$0xff]  }
 0x1cb   : > { %4889 = vmatprep.mubr.bf16.mxu1 %v6405_v17  ;;  %5051 = vmatmul.mubr.bf16.gmra.mrb[32].mxu0 %v6437_v18  ;;  %v1598_v28 = vrot.slane %v1597_v23, 4  ;;  %v823_v32 = vmax.f32 %v791_v11, 0.0  ;;  %v789_v36 = vadd.f32 %v8136_v2, %v750_v12  ;;  %v753_v37 = vmul.f32 %v8184_v0, %v8131_v63  ;;  %v1430_v22 = vld [vmem:[#allocation2 + $0x54] sm:$0xf]  ;;  %v7530_v23 = vld [vmem:[#allocation9 + $0x1e8] sm:$0xff]  }
 0x1cc   : > { %4890 = vmatmul.mubr.bf16.gmra.mrb[32].mxu1 %v7487_v19  ;;  %5058 = vmatprep.mubr.bf16.mxu0 %v7488_v21  ;;  %v751_v57 = vmul.f32 %v8131_v63, %v8189_v7  ;;  %v1593_v44 = vsel %vm8120_vm2, %v1588_v51, %v1592_v53  ;;  %v2061_v48 = vsel %vm8139_vm5, %v6422_v27, %v2060_v29  ;;  %v2062_v52 = vrot.slane %v2060_v29, 4  ;;  %v7491_v63 = vld [vmem:[#allocation2 + $0x54] sm:$0xff]   ;;  %v1943_v7 = vld [vmem:[#allocation2 + $0x4c] sm:$0xf] }
 0x1cd   : > { %v1603_v45 = vsel %vm8120_vm2, %v1598_v28, %v1602_v24  ;;  %v821_v56 = vmax.f32 %v789_v36, 0.0  ;;  %v792_v0 = vadd.f32 %v8136_v2, %v753_v37  ;;  %v1605_v62 = vshrl.u32 %v1427_v35, 16  ;;  %7038 = vmatpush3.bf16.msra.mxu0 %v7529_v10  ;;  %v1431_v51 = vld [vmem:[#allocation2 + $0x58] sm:$0xf] }
 0x1ce   : > { %v6406_v8 = vcombine.low %v1593_v44, %v1603_v45  ;;  %v790_v55 = vadd.f32 %v8136_v2, %v751_v57  ;;  %v2064_v61 = vsel %vm8139_vm5, %v2062_v52, %v2063_v30  ;;  %v1608_v5 = vshll.u32 %v1427_v35, 16  ;;  %7039 = vmatprep.subr.bf16.mxu0 %v7530_v23 }
 0x1cf   : > { %v1614_v60 = vshll.u32 %v1428_v40, 16  ;;  %v6438_v4 = vcombine.low %v2061_v48, %v2064_v61  ;;  %v824_v9 = vmax.f32 %v792_v0, 0.0  ;;  %v1618_v31 = vshrl.u32 %v1428_v40, 16  ;;  %v1432_v61 = vld [vmem:[#allocation2 + $0x5c] sm:$0x1] }
 0x1d0   : > { %4897 = vmatprep.mubr.bf16.mxu1 %v6406_v8  ;;  %v822_v53 = vmax.f32 %v790_v55, 0.0  ;;  %v1607_v2 = vrot.slane %v1605_v62, 4  ;;  %v1610_v13 = vrot.slane %v1608_v5, 5  ;;  %v1624_v15 = vshll.u32 %v1429_v43, 16  ;;  %v1945_v62 = vld [vmem:[#allocation2 + $0x54] sm:$0xe] }
 0x1d1   : > { %v1616_v14 = vrot.slane %v1614_v60, 5  ;;  %v844_v16 = vpack.c.bf16 %v824_v9, %v823_v32  ;;  %v1620_v25 = vrot.slane %v1618_v31, 4  ;;  %v6423_v38 = vrot.slane %v1942_v50, 9  ;;  %v7531_v9 = vld [vmem:[#allocation9 + $0x1a8] sm:$0xff]  }
 0x1d2   : > { %v843_v20 = vpack.c.bf16 %v822_v53, %v821_v56  ;;  %v1611_v17 = vor.u32 %v1610_v13, %v1607_v2  ;;  %v1626_v18 = vrot.slane %v1624_v15, 5  ;;  %v2067_v19 = vrot.slane %v1943_v7, 5  ;;  %v7493_v7 = vld [vmem:[#allocation2 + $0x48] sm:$0xff]   ;;  %v1947_v2 = vld [vmem:[#allocation2 + $0x5c] sm:$0x1]  ;;  %7040 = vmatpush3.bf16.msra.mxu0 %v7531_v9 }
 0x1d3   : > { %5059 = vmatmul.mubr.bf16.gmra.mrb[36].mxu0 %v6438_v4  ;;  %v2070_v21 = vrot.slane %v1944_v1, 5  ;;  %v927_v24 = vshrl.u32 %v844_v16, 16  ;;  %v930_v11 = vshll.u32 %v844_v16, 16  ;;  %v1621_v29 = vor.u32 %v1620_v25, %v1616_v14  ;;  %v1946_v4 = vld [vmem:[#allocation2 + $0x58] sm:$0xf] }
 0x1d4   : > { %4898 = vmatmul.mubr.bf16.gmra.mrb[36].mxu1 %v7490_v39  ;;  %v920_v12 = vshrl.u32 %v843_v20, 16  ;;  %v923_v27 = vshll.u32 %v843_v20, 16  ;;  %5066 = vmatprep.mubr.bf16.mxu0 %v7491_v63  ;;  %v1612_v28 = vrot.slane %v1611_v17, 4  ;;  %v2068_v30 = vsel %vm8139_vm5, %v6423_v38, %v2067_v19  ;;  %v7532_v20 = vld [vmem:[#allocation9 + $0x1f0] sm:$0xff]   ;;  %v8366_v25 = vld [vmem:[%s9514_s4] ss:$0 sm:$0xff] }
 0x1d5   : > { %v2069_v35 = vrot.slane %v2067_v19, 4  ;;  %v929_v32 = vrot.slane %v927_v24, 7  ;;  %v1629_v37 = vshrl.u32 %v1430_v22, 16  ;;  %v1632_v57 = vshll.u32 %v1430_v22, 16  ;;  %7041 = vmatprep.subr.bf16.mxu0 %v7532_v20 }
 0x1d6   : > { %v922_v36 = vrot.slane %v920_v12, 7  ;;  %v1617_v40 = vsel %vm8120_vm2, %v1612_v28, %v1616_v14  ;;  %v1622_v43 = vrot.slane %v1621_v29, 4  ;;  %v1638_v45 = vshll.u32 %v1431_v51, 16  ;;  %v1433_v12 = vld [vmem:[#allocation2 + $0x60] sm:$0xf] }
 0x1d7   : > { %v2071_v44 = vsel %vm8139_vm5, %v2069_v35, %v2070_v21  ;;  %v932_v48 = vor.u32 %v930_v11, %v929_v32  ;;  %v1023_v52 = vsel %vm8178_vm8, %v929_v32, 0  ;;  %v1631_v3 = vrot.slane %v1629_v37, 4  ;;  %v7534_v21 = vld [vmem:[#allocation9 + $0x1b0] sm:$0xff]  }
 0x1d8   : > { %v925_v50 = vor.u32 %v923_v27, %v922_v36  ;;  %v1022_v8 = vsel %vm8178_vm8, %v922_v36, 0  ;;  %v6372_v56 = vcombine.low %v1023_v52, %v1023_v52  ;;  %v1627_v55 = vsel %vm8120_vm2, %v1622_v43, %v1626_v18  ;;  %v7535_v27 = vld [vmem:[#allocation9 + $0x1f8] sm:$0xff]   ;;  %v1435_v35 = vld [vmem:[#allocation2 + $0x68] sm:$0x1]  ;;  %7042 = vmatpush3.bf16.msra.mxu0 %v7534_v21 }
 0x1d9   : > { %v6369_v0 = vcombine.low %v1022_v8, %v1022_v8  ;;  %v6439_v63 = vcombine.low %v2068_v30, %v2071_v44  ;;  %v1007_v5 = vsel %vm8178_vm8, 0, %v932_v48  ;;  %v6407_v1 = vcombine.low %v1617_v40, %v1627_v55  ;;  %v1434_v30 = vld [vmem:[#allocation2 + $0x64] sm:$0xf]  ;;  %v7497_v40 = vld [vmem:[#allocation2 + $0x6c] sm:$0xff]   ;;  %v7538_v8 = vld [vmem:[#allocation9 + $0x200] sm:$0xff]   ;;  %7043 = vmatprep.subr.bf16.mxu0 %v7535_v27 }
 0x1da   : > { %v1006_v60 = vsel %vm8178_vm8, 0, %v925_v50  ;;  %v6370_v39 = vcombine.low %v1007_v5, %v1007_v5  ;;  %v6371_v53 = vcombine.high %v1007_v5, %v1007_v5  ;;  %1249 = vst [vmem:[#allocation2 + $0x98] sm:$0x1] %v6372_v56  ;;  %v1634_v13 = vrot.slane %v1632_v57, 5  ;;  %v7536_v43 = vld [vmem:[#allocation9 + $0x1b8] sm:$0xff]   ;;  %7237 = vmatprep.subr.bf16.mxu1 %v7538_v8  ;;  %v7502_v8 = vld [vmem:[#allocation2 + $0x78] sm:$0xff]  }
 0x1db   : > { %v6367_v31 = vcombine.low %v1006_v60, %v1006_v60  ;;  %v6368_v10 = vcombine.high %v1006_v60, %v1006_v60  ;;  %1246 = vst [vmem:[#allocation2 + $0x8c] sm:$0x1] %v6369_v0  ;;  %5067 = vmatmul.mubr.bf16.gmra.mrb[40].mxu0 %v6439_v63  ;;  %4905 = vmatprep.mubr.bf16.mxu1 %v6407_v1  ;;  %v1640_v14 = vrot.slane %v1638_v45, 5  ;;  %v1642_v15 = vshrl.u32 %v1431_v51, 16  ;;  %v8375_v51 = vld [vmem:[%s9515_s5] ss:$0 sm:$0xff] }
 0x1dc   : > { %5074 = vmatprep.mubr.bf16.mxu0 %v7494_v59  ;;  %v1648_v16 = vshll.u32 %v1432_v61, 16  ;;  %1247 = vst [vmem:[#allocation2 + $0x90] sm:$0xf] %v6370_v39  ;;  %1248 = vst [vmem:[#allocation2 + $0x94] sm:$0xf] %v6371_v53  ;;  %4906 = vmatmul.mubr.bf16.gmra.mrb[40].mxu1 %v7493_v7  ;;  %v756_v38 = vmul.f32 %v8366_v25, %v8204_v34  ;;  %v754_v17 = vmul.f32 %v8366_v25, %v8206_v42 }
 0x1dd   : > { %1244 = vst [vmem:[#allocation2 + $0x84] sm:$0xf] %v6367_v31  ;;  %1245 = vst [vmem:[#allocation2 + $0x88] sm:$0xf] %v6368_v10  ;;  %v6424_v18 = vrot.slane %v1945_v62, 9  ;;  %v2074_v19 = vrot.slane %v1946_v4, 5  ;;  %v1635_v22 = vor.u32 %v1634_v13, %v1631_v3  ;;  %v757_v37 = vmul.f32 %v8366_v25, %v8210_v47  ;;  %7044 = vmatpush3.bf16.msra.mxu0 %v7536_v43 }
 0x1de   : > { %v1644_v23 = vrot.slane %v1642_v15, 4  ;;  %v1650_v24 = vrot.slane %v1648_v16, 5  ;;  %v2077_v11 = vrot.slane %v1947_v2, 5  ;;  %v795_v34 = vadd.f32 %v8375_v51, %v756_v38  ;;  %v1948_v50 = vld [vmem:[#allocation2 + $0x60] sm:$0xe]  ;;  %v7496_v2 = vld [vmem:[#allocation2 + $0x54] sm:$0xff]  }
 0x1df   : > { %v793_v42 = vadd.f32 %v8375_v51, %v754_v17  ;;  %v2075_v28 = vsel %vm8139_vm5, %v6424_v18, %v2074_v19  ;;  %v2076_v29 = vrot.slane %v2074_v19, 4  ;;  %v1636_v32 = vrot.slane %v1635_v22, 4  ;;  %v1949_v63 = vld [vmem:[#allocation2 + $0x64] sm:$0xf]  ;;  %v1436_v5 = vld [vmem:[#allocation2 + $0x6c] sm:$0xf] }
 0x1e0   : > { %v1645_v36 = vor.u32 %v1644_v23, %v1640_v14  ;;  %v755_v57 = vmul.f32 %v8366_v25, %v8216_v54  ;;  %v827_v44 = vmax.f32 %v795_v34, 0.0  ;;  %v1653_v52 = vshrl.u32 %v1433_v12, 16  ;;  %v1950_v54 = vld [vmem:[#allocation2 + $0x68] sm:$0x1]  ;;  %v1437_v22 = vld [vmem:[#allocation2 + $0x70] sm:$0xf] }
 0x1e1   : > { %v825_v45 = vmax.f32 %v793_v42, 0.0  ;;  %v2078_v48 = vsel %vm8139_vm5, %v2076_v29, %v2077_v11  ;;  %v1641_v56 = vsel %vm8120_vm2, %v1636_v32, %v1640_v14  ;;  %v796_v47 = vadd.f32 %v8375_v51, %v757_v37 }
 0x1e2   : > { %v1646_v0 = vrot.slane %v1645_v36, 4  ;;  %v6440_v55 = vcombine.low %v2075_v28, %v2078_v48  ;;  %v794_v7 = vadd.f32 %v8375_v51, %v755_v57  ;;  %v1655_v59 = vrot.slane %v1653_v52, 4 }
 0x1e3   : > { %v1656_v61 = vshll.u32 %v1433_v12, 16  ;;  %v1662_v62 = vshll.u32 %v1434_v30, 16  ;;  %v828_v1 = vmax.f32 %v796_v47, 0.0  ;;  %v1666_v3 = vshrl.u32 %v1434_v30, 16 }
 0x1e4   : > { %v1651_v60 = vsel %vm8120_vm2, %v1646_v0, %v1650_v24  ;;  %5075 = vmatmul.mubr.bf16.gmra.mrb[44].mxu0 %v6440_v55  ;;  %v1672_v4 = vshll.u32 %v1435_v35, 16  ;;  %v826_v39 = vmax.f32 %v794_v7, 0.0  ;;  %v6425_v15 = vrot.slane %v1948_v50, 9  ;;  %v1951_v0 = vld [vmem:[#allocation2 + $0x6c] sm:$0xe] }
 0x1e5   : > { %v6408_v9 = vcombine.low %v1641_v56, %v1651_v60  ;;  %v1658_v53 = vrot.slane %v1656_v61, 5  ;;  %v1664_v31 = vrot.slane %v1662_v62, 5  ;;  %5082 = vmatprep.mubr.bf16.mxu0 %v7497_v40  ;;  %v846_v10 = vpack.c.bf16 %v828_v1, %v827_v44  ;;  %v7501_v44 = vld [vmem:[#allocation2 + $0x60] sm:$0xff]   ;;  %v1438_v56 = vld [vmem:[#allocation2 + $0x74] sm:$0x1] }
 0x1e6   : > { %v1668_v13 = vrot.slane %v1666_v3, 4  ;;  %v1674_v14 = vrot.slane %v1672_v4, 5  ;;  %v845_v16 = vpack.c.bf16 %v826_v39, %v825_v45  ;;  %v2081_v38 = vrot.slane %v1949_v63, 5  ;;  %v1952_v7 = vld [vmem:[#allocation2 + $0x70] sm:$0xf] }
 0x1e7   : > { %4913 = vmatprep.mubr.bf16.mxu1 %v6408_v9  ;;  %v1659_v20 = vor.u32 %v1658_v53, %v1655_v59  ;;  %v2084_v17 = vrot.slane %v1950_v54, 5  ;;  %v941_v18 = vshrl.u32 %v846_v10, 16  ;;  %v944_v19 = vshll.u32 %v846_v10, 16  ;;  %v1953_v59 = vld [vmem:[#allocation2 + $0x74] sm:$0x1] }
 0x1e8   : > { %4914 = vmatmul.mubr.bf16.gmra.mrb[44].mxu1 %v7496_v2  ;;  %v1669_v21 = vor.u32 %v1668_v13, %v1664_v31  ;;  %v1677_v23 = vshrl.u32 %v1436_v5, 16  ;;  %v934_v24 = vshrl.u32 %v845_v16, 16  ;;  %v937_v11 = vshll.u32 %v845_v16, 16 }
 0x1e9   : > { %v1660_v12 = vrot.slane %v1659_v20, 4  ;;  %v2082_v27 = vsel %vm8139_vm5, %v6425_v15, %v2081_v38  ;;  %v943_v34 = vrot.slane %v941_v18, 7  ;;  %v2083_v28 = vrot.slane %v2081_v38, 4  ;;  %v1439_v18 = vld [vmem:[#allocation2 + $0x78] sm:$0xf] }
 0x1ea   : > { %v1670_v42 = vrot.slane %v1669_v21, 4  ;;  %v1679_v29 = vrot.slane %v1677_v23, 4  ;;  %v936_v30 = vrot.slane %v934_v24, 7  ;;  %v1680_v32 = vshll.u32 %v1436_v5, 16 }
 0x1eb   : > { %v1665_v35 = vsel %vm8120_vm2, %v1660_v12, %v1664_v31  ;;  %v1686_v36 = vshll.u32 %v1437_v22, 16  ;;  %v946_v37 = vor.u32 %v944_v19, %v943_v34  ;;  %v1025_v57 = vsel %vm8178_vm8, %v943_v34, 0 }
 0x1ec   : > { %v1675_v40 = vsel %vm8120_vm2, %v1670_v42, %v1674_v14  ;;  %v2085_v43 = vsel %vm8139_vm5, %v2083_v28, %v2084_v17  ;;  %v6378_v45 = vcombine.low %v1025_v57, %v1025_v57  ;;  %v939_v48 = vor.u32 %v937_v11, %v936_v30  ;;  %v1955_v57 = vld [vmem:[#allocation2 + $0x7c] sm:$0xf] }
 0x1ed   : > { %v1024_v52 = vsel %vm8178_vm8, %v936_v30, 0  ;;  %v6409_v50 = vcombine.low %v1665_v35, %v1675_v40  ;;  %v1009_v55 = vsel %vm8178_vm8, 0, %v946_v37  ;;  %v6441_v63 = vcombine.low %v2082_v27, %v2085_v43  ;;  %v1441_v27 = vld [vmem:[#allocation2 + $0x80] sm:$0x1]  ;;  %v1954_v30 = vld [vmem:[#allocation2 + $0x78] sm:$0xe] }
 0x1ee   : > { %v6375_v47 = vcombine.low %v1024_v52, %v1024_v52  ;;  %v1682_v54 = vrot.slane %v1680_v32, 5  ;;  %v6376_v61 = vcombine.low %v1009_v55, %v1009_v55  ;;  %v6377_v62 = vcombine.high %v1009_v55, %v1009_v55  ;;  %1255 = vst [vmem:[#allocation2 + $0xb0] sm:$0x1] %v6378_v45  ;;  %v1956_v40 = vld [vmem:[#allocation2 + $0x80] sm:$0x1] }
 0x1ef   : > { %v1008_v5 = vsel %vm8178_vm8, 0, %v939_v48  ;;  %4921 = vmatprep.mubr.bf16.mxu1 %v6409_v50  ;;  %v1688_v60 = vrot.slane %v1686_v36, 5  ;;  %5083 = vmatmul.mubr.bf16.gmra.mrb[48].mxu0 %v6441_v63  ;;  %v1690_v9 = vshrl.u32 %v1437_v22, 16  ;;  %v1696_v39 = vshll.u32 %v1438_v56, 16  ;;  %v1440_v22 = vld [vmem:[#allocation2 + $0x7c] sm:$0xf] }
 0x1f0   : > { %v6373_v1 = vcombine.low %v1008_v5, %v1008_v5  ;;  %v6374_v3 = vcombine.high %v1008_v5, %v1008_v5  ;;  %1252 = vst [vmem:[#allocation2 + $0xa4] sm:$0x1] %v6375_v47  ;;  %4922 = vmatmul.mubr.bf16.gmra.mrb[48].mxu1 %v7501_v44  ;;  %v1683_v4 = vor.u32 %v1682_v54, %v1679_v29  ;;  %1253 = vst [vmem:[#allocation2 + $0xa8] sm:$0xf] %v6376_v61  ;;  %v7505_v29 = vld [vmem:[#allocation2 + $0x84] sm:$0xff]  }
 0x1f1   : > { %1254 = vst [vmem:[#allocation2 + $0xac] sm:$0xf] %v6377_v62  ;;  %5090 = vmatprep.mubr.bf16.mxu0 %v7502_v8  ;;  %v760_v53 = vmul.f32 %v8366_v25, %v8256_v33  ;;  %v758_v31 = vmul.f32 %v8366_v25, %v8273_v26  ;;  %v6426_v10 = vrot.slane %v1951_v0, 9  ;;  %v1692_v13 = vrot.slane %v1690_v9, 4  ;;  %v7504_v8 = vld [vmem:[#allocation2 + $0x6c] sm:$0xff]  }
 0x1f2   : > { %1250 = vst [vmem:[#allocation2 + $0x9c] sm:$0xf] %v6373_v1  ;;  %1251 = vst [vmem:[#allocation2 + $0xa0] sm:$0xf] %v6374_v3  ;;  %v1684_v2 = vrot.slane %v1683_v4, 4  ;;  %v2088_v14 = vrot.slane %v1952_v7, 5  ;;  %v761_v17 = vmul.f32 %v8366_v25, %v8277_v49  ;;  %v759_v12 = vmul.f32 %v8366_v25, %v8298_v46 }
 0x1f3   : > { %v2091_v15 = vrot.slane %v1953_v59, 5  ;;  %v1698_v16 = vrot.slane %v1696_v39, 5  ;;  %v799_v20 = vadd.f32 %v8375_v51, %v760_v53  ;;  %v797_v38 = vadd.f32 %v8375_v51, %v758_v31  ;;  %v1442_v59 = vld [vmem:[#allocation2 + $0x84] sm:$0xf] }
 0x1f4   : > { %v1689_v33 = vsel %vm8120_vm2, %v1684_v2, %v1688_v60  ;;  %v1693_v26 = vor.u32 %v1692_v13, %v1688_v60  ;;  %v2089_v19 = vsel %vm8139_vm5, %v6426_v10, %v2088_v14  ;;  %v2090_v21 = vrot.slane %v2088_v14, 4 }
 0x1f5   : > { %v831_v23 = vmax.f32 %v799_v20, 0.0  ;;  %v829_v24 = vmax.f32 %v797_v38, 0.0  ;;  %v800_v11 = vadd.f32 %v8375_v51, %v761_v17  ;;  %v1701_v42 = vshrl.u32 %v1439_v18, 16 }
 0x1f6   : > { %v1694_v34 = vrot.slane %v1693_v26, 4  ;;  %v2092_v49 = vsel %vm8139_vm5, %v2090_v21, %v2091_v15  ;;  %v1704_v28 = vshll.u32 %v1439_v18, 16  ;;  %v798_v36 = vadd.f32 %v8375_v51, %v759_v12  ;;  %v1444_v15 = vld [vmem:[#allocation2 + $0x8c] sm:$0x1]  ;;  %v1443_v18 = vld [vmem:[#allocation2 + $0x88] sm:$0xf] }
 0x1f7   : > { %v6442_v35 = vcombine.low %v2089_v19, %v2092_v49  ;;  %v832_v32 = vmax.f32 %v800_v11, 0.0  ;;  %v1710_v37 = vshll.u32 %v1440_v22, 16  ;;  %v1703_v46 = vrot.slane %v1701_v42, 4  ;;  %v1957_v11 = vld [vmem:[#allocation2 + $0x84] sm:$0xe] }
 0x1f8   : > { %v1699_v43 = vsel %vm8120_vm2, %v1694_v34, %v1698_v16  ;;  %v1706_v25 = vrot.slane %v1704_v28, 5  ;;  %v1714_v44 = vshrl.u32 %v1440_v22, 16  ;;  %v830_v52 = vmax.f32 %v798_v36, 0.0  ;;  %v1959_v12 = vld [vmem:[#allocation2 + $0x8c] sm:$0x1] }
 0x1f9   : > { %v6410_v45 = vcombine.low %v1689_v33, %v1699_v43  ;;  %5091 = vmatmul.mubr.bf16.gmra.mrb[52].mxu0 %v6442_v35  ;;  %v848_v48 = vpack.c.bf16 %v832_v32, %v831_v23  ;;  %v1712_v50 = vrot.slane %v1710_v37, 5  ;;  %v1720_v55 = vshll.u32 %v1441_v27, 16  ;;  %v7509_v23 = vld [vmem:[#allocation2 + $0x78] sm:$0xff]   ;;  %v1958_v28 = vld [vmem:[#allocation2 + $0x88] sm:$0xf] }
 0x1fa   : > { %v1707_v56 = vor.u32 %v1706_v25, %v1703_v46  ;;  %v1716_v0 = vrot.slane %v1714_v44, 4  ;;  %5098 = vmatprep.mubr.bf16.mxu0 %v7505_v29  ;;  %v6427_v51 = vrot.slane %v1954_v30, 9  ;;  %v847_v54 = vpack.c.bf16 %v830_v52, %v829_v24  ;;  %v7510_v24 = vld [vmem:[#allocation2 + $0x90] sm:$0xff]   ;;  %v1447_v46 = vld [vmem:[#allocation2 + $0x98] sm:$0x1] }
 0x1fb   : > { %4929 = vmatprep.mubr.bf16.mxu1 %v6410_v45  ;;  %v955_v47 = vshrl.u32 %v848_v48, 16  ;;  %v958_v63 = vshll.u32 %v848_v48, 16  ;;  %v2095_v7 = vrot.slane %v1955_v57, 5  ;;  %v1722_v5 = vrot.slane %v1720_v55, 5  ;;  %v1445_v29 = vld [vmem:[#allocation2 + $0x90] sm:$0xf] }
 0x1fc   : > { %4930 = vmatmul.mubr.bf16.gmra.mrb[52].mxu1 %v7504_v8  ;;  %v1708_v61 = vrot.slane %v1707_v56, 4  ;;  %v1717_v62 = vor.u32 %v1716_v0, %v1712_v50  ;;  %v2098_v60 = vrot.slane %v1956_v40, 5  ;;  %v948_v3 = vshrl.u32 %v847_v54, 16  ;;  %v1446_v48 = vld [vmem:[#allocation2 + $0x94] sm:$0xf] }
 0x1fd   : > { %v957_v1 = vrot.slane %v955_v47, 7  ;;  %v951_v4 = vshll.u32 %v847_v54, 16  ;;  %v2096_v9 = vsel %vm8139_vm5, %v6427_v51, %v2095_v7  ;;  %v2097_v31 = vrot.slane %v2095_v7, 4  ;;  %v1960_v0 = vld [vmem:[#allocation2 + $0x90] sm:$0xe] }
 0x1fe   : > { %v1713_v39 = vsel %vm8120_vm2, %v1708_v61, %v1712_v50  ;;  %v1718_v53 = vrot.slane %v1717_v62, 4  ;;  %v1725_v10 = vshrl.u32 %v1442_v59, 16  ;;  %v950_v14 = vrot.slane %v948_v3, 7  ;;  %v1961_v54 = vld [vmem:[#allocation2 + $0x94] sm:$0xf] }
 0x1ff   : > { %v960_v2 = vor.u32 %v958_v63, %v957_v1  ;;  %v1027_v13 = vsel %vm8178_vm8, %v957_v1, 0  ;;  %v1728_v16 = vshll.u32 %v1442_v59, 16  ;;  %v2099_v17 = vsel %vm8139_vm5, %v2097_v31, %v2098_v60  ;;  %v1962_v7 = vld [vmem:[#allocation2 + $0x98] sm:$0x1]  ;;  %v7513_v60 = vld [vmem:[#allocation2 + $0x9c] sm:$0xff]  }
 0x200   : > { %v6384_v20 = vcombine.low %v1027_v13, %v1027_v13  ;;  %v1723_v38 = vsel %vm8120_vm2, %v1718_v53, %v1722_v5  ;;  %v1727_v33 = vrot.slane %v1725_v10, 4  ;;  %v953_v19 = vor.u32 %v951_v4, %v950_v14  ;;  %v1449_v53 = vld [vmem:[#allocation2 + $0xa0] sm:$0xf] }
 0x201   : > { %v1011_v26 = vsel %vm8178_vm8, 0, %v960_v2  ;;  %v1026_v21 = vsel %vm8178_vm8, %v950_v14, 0  ;;  %v6411_v22 = vcombine.low %v1713_v39, %v1723_v38  ;;  %v6443_v42 = vcombine.low %v2096_v9, %v2099_v17  ;;  %v1448_v39 = vld [vmem:[#allocation2 + $0x9c] sm:$0xf]  ;;  %v1450_v14 = vld [vmem:[#allocation2 + $0xa4] sm:$0x1] }
 0x202   : > { %v6382_v27 = vcombine.low %v1011_v26, %v1011_v26  ;;  %v6383_v34 = vcombine.high %v1011_v26, %v1011_v26  ;;  %1261 = vst [vmem:[#allocation2 + $0xc8] sm:$0x1] %v6384_v20  ;;  %v6381_v49 = vcombine.low %v1026_v21, %v1026_v21  ;;  %v1010_v30 = vsel %vm8178_vm8, 0, %v953_v19  ;;  %v1963_v19 = vld [vmem:[#allocation2 + $0x9c] sm:$0xe]  ;;  %v7512_v21 = vld [vmem:[#allocation2 + $0x84] sm:$0xff]  }
 0x203   : > { %4937 = vmatprep.mubr.bf16.mxu1 %v6411_v22  ;;  %v1730_v35 = vrot.slane %v1728_v16, 5  ;;  %v1734_v32 = vshll.u32 %v1443_v18, 16  ;;  %v1738_v36 = vshrl.u32 %v1443_v18, 16  ;;  %v6379_v37 = vcombine.low %v1010_v30, %v1010_v30  ;;  %5099 = vmatmul.mubr.bf16.gmra.mrb[56].mxu0 %v6443_v42 }
 0x204   : > { %1259 = vst [vmem:[#allocation2 + $0xc0] sm:$0xf] %v6382_v27  ;;  %1260 = vst [vmem:[#allocation2 + $0xc4] sm:$0xf] %v6383_v34  ;;  %v6380_v57 = vcombine.high %v1010_v30, %v1010_v30  ;;  %4938 = vmatmul.mubr.bf16.gmra.mrb[56].mxu1 %v7509_v23  ;;  %v1744_v40 = vshll.u32 %v1444_v15, 16  ;;  %v6428_v43 = vrot.slane %v1957_v11, 9  ;;  %5106 = vmatprep.mubr.bf16.mxu0 %v7510_v24 }
 0x205   : > { %1258 = vst [vmem:[#allocation2 + $0xbc] sm:$0x1] %v6381_v49  ;;  %v1731_v25 = vor.u32 %v1730_v35, %v1727_v33  ;;  %v1736_v44 = vrot.slane %v1734_v32, 5  ;;  %v1740_v45 = vrot.slane %v1738_v36, 4  ;;  %v2102_v58 = vrot.slane %v1958_v28, 5 }
 0x206   : > { %1256 = vst [vmem:[#allocation2 + $0xb4] sm:$0xf] %v6379_v37  ;;  %1257 = vst [vmem:[#allocation2 + $0xb8] sm:$0xf] %v6380_v57  ;;  %v1746_v52 = vrot.slane %v1744_v40, 5  ;;  %v2105_v50 = vrot.slane %v1959_v12, 5 }
 0x207   : > { %v1749_v8 = vshrl.u32 %v1445_v29, 16  ;;  %v1752_v56 = vshll.u32 %v1445_v29, 16  ;;  %v1732_v55 = vrot.slane %v1731_v25, 4  ;;  %v1741_v51 = vor.u32 %v1740_v45, %v1736_v44  ;;  %v1964_v12 = vld [vmem:[#allocation2 + $0xa0] sm:$0xf] }
 0x208   : > { %v2103_v47 = vsel %vm8139_vm5, %v6428_v43, %v2102_v58  ;;  %v2104_v63 = vrot.slane %v2102_v58, 4  ;;  %v1758_v62 = vshll.u32 %v1446_v48, 16  ;;  %v1762_v5 = vshrl.u32 %v1446_v48, 16  ;;  %v1965_v27 = vld [vmem:[#allocation2 + $0xa4] sm:$0x1] }
 0x209   : > { %v1751_v59 = vrot.slane %v1749_v8, 4  ;;  %v1754_v61 = vrot.slane %v1752_v56, 5  ;;  %v1737_v1 = vsel %vm8120_vm2, %v1732_v55, %v1736_v44  ;;  %v1742_v3 = vrot.slane %v1741_v51, 4  ;;  %v1451_v36 = vld [vmem:[#allocation2 + $0xa8] sm:$0xf] }
 0x20a   : > { %v2106_v4 = vsel %vm8139_vm5, %v2104_v63, %v2105_v50  ;;  %v1768_v9 = vshll.u32 %v1447_v46, 16  ;;  %v1760_v2 = vrot.slane %v1758_v62, 5  ;;  %v1764_v13 = vrot.slane %v1762_v5, 4  ;;  %v1452_v46 = vld [vmem:[#allocation2 + $0xac] sm:$0xf] }
 0x20b   : > { %v6444_v31 = vcombine.low %v2103_v47, %v2106_v4  ;;  %v1755_v10 = vor.u32 %v1754_v61, %v1751_v59  ;;  %v1747_v15 = vsel %vm8120_vm2, %v1742_v3, %v1746_v52  ;;  %v6429_v20 = vrot.slane %v1960_v0, 9  ;;  %v1453_v48 = vld [vmem:[#allocation2 + $0xb0] sm:$0x1]  ;;  %v1966_v52 = vld [vmem:[#allocation2 + $0xa8] sm:$0xe] }
 0x20c   : > { %v1770_v16 = vrot.slane %v1768_v9, 5  ;;  %v2109_v38 = vrot.slane %v1961_v54, 5  ;;  %v6412_v17 = vcombine.low %v1737_v1, %v1747_v15  ;;  %v1765_v33 = vor.u32 %v1764_v13, %v1760_v2  ;;  %v7518_v50 = vld [vmem:[#allocation2 + $0xa8] sm:$0xff]   ;;  %v7517_v59 = vld [vmem:[#allocation2 + $0x90] sm:$0xff]  }
 0x20d   : > { %5107 = vmatmul.mubr.bf16.gmra.mrb[60].mxu0 %v6444_v31  ;;  %v1756_v18 = vrot.slane %v1755_v10, 4  ;;  %v2112_v26 = vrot.slane %v1962_v7, 5  ;;  %v1773_v24 = vshrl.u32 %v1448_v39, 16  ;;  %v1776_v11 = vshll.u32 %v1448_v39, 16  ;;  %v1967_v7 = vld [vmem:[#allocation2 + $0xac] sm:$0xf] }
 0x20e   : > { %5114 = vmatprep.mubr.bf16.mxu0 %v7513_v60  ;;  %v2110_v22 = vsel %vm8139_vm5, %v6429_v20, %v2109_v38  ;;  %v2111_v23 = vrot.slane %v2109_v38, 4  ;;  %4945 = vmatprep.mubr.bf16.mxu1 %v6412_v17  ;;  %v1766_v49 = vrot.slane %v1765_v33, 4  ;;  %v1782_v42 = vshll.u32 %v1449_v53, 16  ;;  %v1968_v1 = vld [vmem:[#allocation2 + $0xb0] sm:$0x1]  ;;  %v8465_v31 = vpop.f32.mrb[16].mxu1 }
 0x20f   : > { %v1761_v34 = vsel %vm8120_vm2, %v1756_v18, %v1760_v2  ;;  %v1786_v28 = vshrl.u32 %v1449_v53, 16  ;;  %4946 = vmatmul.mubr.bf16.gmra.mrb[60].mxu1 %v7512_v21  ;;  %v1775_v30 = vrot.slane %v1773_v24, 4  ;;  %v1778_v35 = vrot.slane %v1776_v11, 5  ;;  %v1454_v53 = vld [vmem:[#allocation2 + $0xb4] sm:$0xf] }
 0x210   : > { %v2113_v29 = vsel %vm8139_vm5, %v2111_v23, %v2112_v26  ;;  %v1792_v32 = vshll.u32 %v1450_v14, 16  ;;  %v1771_v37 = vsel %vm8120_vm2, %v1766_v49, %v1770_v16  ;;  %v1784_v40 = vrot.slane %v1782_v42, 5  ;;  %v1455_v15 = vld [vmem:[#allocation2 + $0xb8] sm:$0xf]  ;;  %v1456_v33 = vld [vmem:[#allocation2 + $0xbc] sm:$0x1] }
 0x211   : > { %v6445_v57 = vcombine.low %v2110_v22, %v2113_v29  ;;  %v1788_v43 = vrot.slane %v1786_v28, 4  ;;  %v6413_v25 = vcombine.low %v1761_v34, %v1771_v37  ;;  %v1779_v44 = vor.u32 %v1778_v35, %v1775_v30  ;;  %v7521_v18 = vld [vmem:[#allocation2 + $0xb4] sm:$0xff]  }
 0x212   : > { %v1794_v45 = vrot.slane %v1792_v32, 5  ;;  %v6430_v58 = vrot.slane %v1963_v19, 9  ;;  %v2116_v56 = vrot.slane %v1964_v12, 5  ;;  %v2119_v0 = vrot.slane %v1965_v27, 5  ;;  %v1969_v23 = vld [vmem:[#allocation2 + $0xb4] sm:$0xe] }
 0x213   : > { %v1789_v8 = vor.u32 %v1788_v43, %v1784_v40  ;;  %v1797_v55 = vshrl.u32 %v1451_v36, 16  ;;  %4953 = vmatprep.mubr.bf16.mxu1 %v6413_v25  ;;  %v1780_v51 = vrot.slane %v1779_v44, 4  ;;  %v1800_v47 = vshll.u32 %v1451_v36, 16  ;;  %v1970_v34 = vld [vmem:[#allocation2 + $0xb8] sm:$0xf] }
 0x214   : > { %v1806_v63 = vshll.u32 %v1452_v46, 16  ;;  %v1810_v54 = vshrl.u32 %v1452_v46, 16  ;;  %v2117_v62 = vsel %vm8139_vm5, %v6430_v58, %v2116_v56  ;;  %v2118_v5 = vrot.slane %v2116_v56, 4  ;;  %v3305_v49 = vld [vmem:[#allocation2 + $0x18] sm:$0xf] }
 0x215   : > { %5115 = vmatmul.mubr.bf16.gmra.mrb[64].mxu0 %v6445_v57  ;;  %v1790_v61 = vrot.slane %v1789_v8, 4  ;;  %v1799_v60 = vrot.slane %v1797_v55, 4  ;;  %v1785_v3 = vsel %vm8120_vm2, %v1780_v51, %v1784_v40  ;;  %v1802_v4 = vrot.slane %v1800_v47, 5  ;;  %v1971_v57 = vld [vmem:[#allocation2 + $0xbc] sm:$0x1] }
 0x216   : > { %5122 = vmatprep.mubr.bf16.mxu0 %v7518_v50  ;;  %v1808_v9 = vrot.slane %v1806_v63, 5  ;;  %v1812_v39 = vrot.slane %v1810_v54, 4  ;;  %v2120_v2 = vsel %vm8139_vm5, %v2118_v5, %v2119_v0  ;;  %v1816_v13 = vshll.u32 %v1453_v48, 16  ;;  %v3306_v44 = vld [vmem:[#allocation2 + $0x1c] sm:$0xf]  ;;  %v8479_v63 = vpop.f32.mrb[17].mxu1 }
 0x217   : > { %v1795_v10 = vsel %vm8120_vm2, %v1790_v61, %v1794_v45  ;;  %v6431_v14 = vrot.slane %v1966_v52, 9  ;;  %4954 = vmatmul.mubr.bf16.gmra.mrb[64].mxu1 %v7517_v59  ;;  %v6446_v20 = vcombine.low %v2117_v62, %v2120_v2  ;;  %v1803_v38 = vor.u32 %v1802_v4, %v1799_v60  ;;  %v7520_v45 = vld [vmem:[#allocation2 + $0x9c] sm:$0xff]   ;;  %v2872_v47 = vld [vmem:[#allocation2 + $0xc] sm:$0xe]  ;;  %v2873_v62 = vld [vmem:[#allocation2 + $0x10] sm:$0xf] }
 0x218   : > { %v6414_v16 = vcombine.low %v1785_v3, %v1795_v10  ;;  %v1813_v17 = vor.u32 %v1812_v39, %v1808_v9  ;;  %v1818_v26 = vrot.slane %v1816_v13, 5  ;;  %v2123_v19 = vrot.slane %v1967_v7, 5  ;;  %v3307_v8 = vld [vmem:[#allocation2 + $0x20] sm:$0x1]  ;;  %v8485_v5 = vpop.f32.mrb[18].mxu1 }
 0x219   : > { %v2126_v21 = vrot.slane %v1968_v1, 5  ;;  %v1821_v22 = vshrl.u32 %v1454_v53, 16  ;;  %v1804_v24 = vrot.slane %v1803_v38, 4  ;;  %v1824_v12 = vshll.u32 %v1454_v53, 16  ;;  %v2360_v13 = vld [vmem:[#allocation2 + $0xc] sm:$0xf] }
 0x21a   : > { %4961 = vmatprep.mubr.bf16.mxu1 %v6414_v16  ;;  %v1814_v11 = vrot.slane %v1813_v17, 4  ;;  %v1830_v27 = vshll.u32 %v1455_v15, 16  ;;  %v2124_v42 = vsel %vm8139_vm5, %v6431_v14, %v2123_v19  ;;  %v2125_v28 = vrot.slane %v2123_v19, 4  ;;  %v2361_v38 = vld [vmem:[#allocation2 + $0x10] sm:$0xf]  ;;  %v7527_v17 = vld [vmem:[#allocation2 + $0xc0] sm:$0xff]  }
 0x21b   : > { %v1823_v29 = vrot.slane %v1821_v22, 4  ;;  %v1834_v30 = vshrl.u32 %v1455_v15, 16  ;;  %v1809_v35 = vsel %vm8120_vm2, %v1804_v24, %v1808_v9  ;;  %v1826_v36 = vrot.slane %v1824_v12, 5  ;;  %v2874_v9 = vld [vmem:[#allocation2 + $0x14] sm:$0x1] }
 0x21c   : > { %v1819_v32 = vsel %vm8120_vm2, %v1814_v11, %v1818_v26  ;;  %v1832_v37 = vrot.slane %v1830_v27, 5  ;;  %v2127_v43 = vsel %vm8139_vm5, %v2125_v28, %v2126_v21  ;;  %v1840_v25 = vshll.u32 %v1456_v33, 16  ;;  %v2362_v21 = vld [vmem:[#allocation2 + $0x14] sm:$0x1]  ;;  %v3308_v12 = vld [vmem:[#allocation2 + $0x24] sm:$0xf] }
 0x21d   : > { %5123 = vmatmul.mubr.bf16.gmra.mrb[68].mxu0 %v6446_v20  ;;  %v6415_v40 = vcombine.low %v1809_v35, %v1819_v32  ;;  %v1836_v46 = vrot.slane %v1834_v30, 4  ;;  %v6447_v58 = vcombine.low %v2124_v42, %v2127_v43  ;;  %v1827_v48 = vor.u32 %v1826_v36, %v1823_v29  ;;  %v8494_v27 = vpop.f32.mrb[19].mxu1 }
 0x21e   : > { %5130 = vmatprep.mubr.bf16.mxu0 %v7521_v18  ;;  %v6432_v52 = vrot.slane %v1969_v23, 9  ;;  %v2130_v50 = vrot.slane %v1970_v34, 5  ;;  %v1842_v0 = vrot.slane %v1840_v25, 5  ;;  %v2133_v55 = vrot.slane %v1971_v57, 5  ;;  %v7526_v34 = vld [vmem:[#allocation2 + $0xa8] sm:$0xff]  }
 0x21f   : > { %v1837_v56 = vor.u32 %v1836_v46, %v1832_v37  ;;  %v3354_v51 = vshrl.u32 %v3305_v49, 16  ;;  %4962 = vmatmul.mubr.bf16.gmra.mrb[68].mxu1 %v7520_v45  ;;  %v1828_v54 = vrot.slane %v1827_v48, 4  ;;  %v3357_v61 = vshll.u32 %v3305_v49, 16  ;;  %v3309_v46 = vld [vmem:[#allocation2 + $0x28] sm:$0xf] }
 0x220   : > { %v8483_v7 = vsel %vm8139_vm5, %v6432_v52, %v2130_v50  ;;  %v2132_v59 = vrot.slane %v2130_v50, 4  ;;  %4969 = vmatprep.mubr.bf16.mxu1 %v6415_v40  ;;  %v3363_v3 = vshll.u32 %v3306_v44, 16  ;;  %v3367_v4 = vshrl.u32 %v3306_v44, 16  ;;  %v2875_v52 = vld [vmem:[#allocation2 + $0x18] sm:$0xe] }
 0x221   : > { %v1838_v60 = vrot.slane %v1837_v56, 4  ;;  %v3356_v1 = vrot.slane %v3354_v51, 4  ;;  %v1833_v39 = vsel %vm8120_vm2, %v1828_v54, %v1832_v37  ;;  %v3359_v10 = vrot.slane %v3357_v61, 5 }
 0x222   : > { %v2134_v53 = vsel %vm8139_vm5, %v2132_v59, %v2133_v55  ;;  %v3373_v2 = vshll.u32 %v3307_v8, 16  ;;  %v3365_v16 = vrot.slane %v3363_v3, 5  ;;  %v3369_v20 = vrot.slane %v3367_v4, 4  ;;  %v2876_v55 = vld [vmem:[#allocation2 + $0x1c] sm:$0xf] }
 0x223   : > { %v1843_v14 = vsel %vm8120_vm2, %v1838_v60, %v1842_v0  ;;  %v6448_v15 = vcombine.low %v8483_v7, %v2134_v53  ;;  %v3360_v33 = vor.u32 %v3359_v10, %v3356_v1  ;;  %v6481_v19 = vrot.slane %v2872_v47, 9  ;;  %v2877_v59 = vld [vmem:[#allocation2 + $0x20] sm:$0x1]  ;;  %v2363_v3 = vld [vmem:[#allocation2 + $0x18] sm:$0xf] }
 0x224   : > { %v6416_v18 = vcombine.low %v1833_v39, %v1843_v14  ;;  %v3375_v26 = vrot.slane %v3373_v2, 5  ;;  %v3370_v22 = vor.u32 %v3369_v20, %v3365_v16  ;;  %v2970_v23 = vrot.slane %v2873_v62, 5  ;;  %v2364_v10 = vld [vmem:[#allocation2 + $0x1c] sm:$0xf]  ;;  %v7533_v2 = vld [vmem:[#allocation2 + $0xb4] sm:$0xff]  }
 0x225   : > { %5131 = vmatmul.mubr.bf16.gmra.mrb[72].mxu0 %v6447_v58  ;;  %v2973_v24 = vrot.slane %v2874_v9, 5  ;;  %v2409_v11 = vshrl.u32 %v2360_v13, 16  ;;  %v3361_v49 = vrot.slane %v3360_v33, 4  ;;  %v2412_v42 = vshll.u32 %v2360_v13, 16  ;;  %v3310_v58 = vld [vmem:[#allocation2 + $0x2c] sm:$0x1] }
 0x226   : > { %5138 = vmatprep.mubr.bf16.mxu0 %v7527_v17  ;;  %v2418_v28 = vshll.u32 %v2361_v38, 16  ;;  %v2422_v29 = vshrl.u32 %v2361_v38, 16  ;;  %v3371_v30 = vrot.slane %v3370_v22, 4  ;;  %v2971_v35 = vsel %vm8139_vm5, %v6481_v19, %v2970_v23  ;;  %v2365_v38 = vld [vmem:[#allocation2 + $0x20] sm:$0x1] }
 0x227   : > { %v2972_v32 = vrot.slane %v2970_v23, 4  ;;  %v2411_v36 = vrot.slane %v2409_v11, 4  ;;  %4970 = vmatmul.mubr.bf16.gmra.mrb[72].mxu1 %v7526_v34  ;;  %v3366_v37 = vsel %vm8120_vm2, %v3361_v49, %v3365_v16  ;;  %v2414_v57 = vrot.slane %v2412_v42, 5 }
 0x228   : > { %v2420_v40 = vrot.slane %v2418_v28, 5  ;;  %v2424_v43 = vrot.slane %v2422_v29, 4  ;;  %4977 = vmatprep.mubr.bf16.mxu1 %v6416_v18  ;;  %v3376_v25 = vsel %vm8120_vm2, %v3371_v30, %v3375_v26  ;;  %v2428_v45 = vshll.u32 %v2362_v21, 16  ;;  %v3311_v26 = vld [vmem:[#allocation2 + $0x30] sm:$0xf] }
 0x229   : > { %v2974_v44 = vsel %vm8139_vm5, %v2972_v32, %v2973_v24  ;;  %v3378_v48 = vshrl.u32 %v3308_v12, 16  ;;  %v6529_v50 = vcombine.low %v3366_v37, %v3376_v25  ;;  %v2415_v56 = vor.u32 %v2414_v57, %v2411_v36  ;;  %v3312_v24 = vld [vmem:[#allocation2 + $0x34] sm:$0xf] }
 0x22a   : > { %v6497_v8 = vcombine.low %v2971_v35, %v2974_v44  ;;  %v2425_v0 = vor.u32 %v2424_v43, %v2420_v40  ;;  %v2430_v51 = vrot.slane %v2428_v45, 5  ;;  %v3381_v54 = vshll.u32 %v3308_v12, 16  ;;  %v7537_v35 = vld [vmem:[#allocation2 + $0x18] sm:$0xff]   ;;  %v2878_v45 = vld [vmem:[#allocation2 + $0x24] sm:$0xe] }
 0x22b   : > { %v3380_v47 = vrot.slane %v3378_v48, 4  ;;  %v3387_v7 = vshll.u32 %v3309_v46, 16  ;;  %v2416_v61 = vrot.slane %v2415_v56, 4  ;;  %v3391_v60 = vshrl.u32 %v3309_v46, 16  ;;  %v2879_v56 = vld [vmem:[#allocation2 + $0x28] sm:$0xf] }
 0x22c   : > { %v2426_v62 = vrot.slane %v2425_v0, 4  ;;  %v3397_v1 = vshll.u32 %v3310_v58, 16  ;;  %v3383_v4 = vrot.slane %v3381_v54, 5  ;;  %v6482_v39 = vrot.slane %v2875_v52, 9  ;;  %v7541_v58 = vld [vmem:[#allocation9 + $0x208] sm:$0xff]  }
 0x22d   : > { %5139 = vmatmul.mubr.bf16.gmra.mrb[76].mxu0 %v6448_v15  ;;  %v3389_v9 = vrot.slane %v3387_v7, 5  ;;  %v2977_v53 = vrot.slane %v2876_v55, 5  ;;  %v2421_v13 = vsel %vm8120_vm2, %v2416_v61, %v2420_v40  ;;  %v3393_v16 = vrot.slane %v3391_v60, 4  ;;  %v3313_v40 = vld [vmem:[#allocation2 + $0x38] sm:$0x1] }
 0x22e   : > { %5340 = vmatprep.mubr.bf16.mxu0 %v6529_v50  ;;  %v2431_v14 = vsel %vm8120_vm2, %v2426_v62, %v2430_v51  ;;  %v3399_v20 = vrot.slane %v3397_v1, 5  ;;  %v3384_v18 = vor.u32 %v3383_v4, %v3380_v47  ;;  %v2980_v21 = vrot.slane %v2877_v59, 5  ;;  %v2880_v0 = vld [vmem:[#allocation2 + $0x2c] sm:$0x1]  ;;  %v2366_v7 = vld [vmem:[#allocation2 + $0x24] sm:$0xf] }
 0x22f   : > { %v6465_v17 = vcombine.low %v2421_v13, %v2431_v14  ;;  %v2978_v15 = vsel %vm8139_vm5, %v6482_v39, %v2977_v53  ;;  %v2979_v33 = vrot.slane %v2977_v53, 4  ;;  %4978 = vmatmul.mubr.bf16.gmra.mrb[76].mxu1 %v7533_v2  ;;  %v3394_v19 = vor.u32 %v3393_v16, %v3389_v9  ;;  %v2367_v1 = vld [vmem:[#allocation2 + $0x28] sm:$0xf]  ;;  %v2368_v53 = vld [vmem:[#allocation2 + $0x2c] sm:$0x1] }
 0x230   : > { %v2433_v22 = vshrl.u32 %v2363_v3, 16  ;;  %v2436_v23 = vshll.u32 %v2363_v3, 16  ;;  %5179 = vmatprep.mubr.bf16.mxu1 %v6497_v8  ;;  %v3385_v11 = vrot.slane %v3384_v18, 4  ;;  %v2442_v12 = vshll.u32 %v2364_v10, 16 }
 0x231   : > { %v2446_v34 = vshrl.u32 %v2364_v10, 16  ;;  %v2452_v49 = vshll.u32 %v2365_v38, 16  ;;  %v3395_v42 = vrot.slane %v3394_v19, 4  ;;  %v2981_v28 = vsel %vm8139_vm5, %v2979_v33, %v2980_v21  ;;  %v7571_v10 = vld [vmem:[#allocation9 + $0x200] sm:$0xff]   ;;  %v7544_v33 = vld [vmem:[#allocation9 + $0x210] sm:$0xff]  }
 0x232   : > { %v2435_v29 = vrot.slane %v2433_v22, 4  ;;  %v2438_v30 = vrot.slane %v2436_v23, 5  ;;  %v3390_v32 = vsel %vm8120_vm2, %v3385_v11, %v3389_v9  ;;  %v6498_v36 = vcombine.low %v2978_v15, %v2981_v28  ;;  %v3314_v23 = vld [vmem:[#allocation2 + $0x3c] sm:$0xf] }
 0x233   : > { %v2444_v37 = vrot.slane %v2442_v12, 5  ;;  %v2448_v57 = vrot.slane %v2446_v34, 4  ;;  %v3400_v43 = vsel %vm8120_vm2, %v3395_v42, %v3399_v20  ;;  %v2454_v25 = vrot.slane %v2452_v49, 5  ;;  %v7539_v20 = vld [vmem:[#allocation2 + $0x24] sm:$0xff]   ;;  %v3315_v49 = vld [vmem:[#allocation2 + $0x40] sm:$0xf] }
 0x234   : > { %v2439_v46 = vor.u32 %v2438_v30, %v2435_v29  ;;  %v3402_v44 = vshrl.u32 %v3311_v26, 16  ;;  %v6530_v48 = vcombine.low %v3390_v32, %v3400_v43  ;;  %v3405_v50 = vshll.u32 %v3311_v26, 16  ;;  %v2881_v32 = vld [vmem:[#allocation2 + $0x30] sm:$0xe]  ;;  %v2882_v43 = vld [vmem:[#allocation2 + $0x34] sm:$0xf] }
 0x235   : > { %5341 = vmatmul.mubr.bf16.vlgmr.msra.gmra.mrb[80].mxu0 %v7537_v35  ;;  %v2449_v52 = vor.u32 %v2448_v57, %v2444_v37  ;;  %v3411_v8 = vshll.u32 %v3312_v24, 16  ;;  %v3415_v47 = vshrl.u32 %v3312_v24, 16  ;;  %v3421_v54 = vshll.u32 %v3313_v40, 16  ;;  %v3316_v35 = vld [vmem:[#allocation2 + $0x44] sm:$0x1] }
 0x236   : > { %v2440_v55 = vrot.slane %v2439_v46, 4  ;;  %v3404_v51 = vrot.slane %v3402_v44, 4  ;;  %5348 = vmatprep.mubr.bf16.mxu0 %v6530_v48  ;;  %v3407_v61 = vrot.slane %v3405_v50, 5  ;;  %v6483_v60 = vrot.slane %v2878_v45, 9  ;;  %v7547_v46 = vld [vmem:[#allocation9 + $0x218] sm:$0xff]  }
 0x237   : > { %v2450_v59 = vrot.slane %v2449_v52, 4  ;;  %v3413_v62 = vrot.slane %v3411_v8, 5  ;;  %5180 = vmatmul.mubr.bf16.vlgmr.msra.gmra.mrb[80].mxu1 %v6465_v17  ;;  %v3417_v4 = vrot.slane %v3415_v47, 4  ;;  %v3423_v9 = vrot.slane %v3421_v54, 5  ;;  %v2883_v52 = vld [vmem:[#allocation2 + $0x38] sm:$0x1] }
 0x238   : > { %v2445_v3 = vsel %vm8120_vm2, %v2440_v55, %v2444_v37  ;;  %v2984_v39 = vrot.slane %v2879_v56, 5  ;;  %7238 = vmatpush3.bf16.msra.mxu1 %v7571_v10  ;;  %5187 = vmatprep.mubr.bf16.mxu1 %v6498_v36  ;;  %v3408_v13 = vor.u32 %v3407_v61, %v3404_v51  ;;  %v2987_v14 = vrot.slane %v2880_v0, 5  ;;  %v2369_v50 = vld [vmem:[#allocation2 + $0x30] sm:$0xf] }
 0x239   : > { %v2455_v2 = vsel %vm8120_vm2, %v2450_v59, %v2454_v25  ;;  %v2457_v16 = vshrl.u32 %v2366_v7, 16  ;;  %v3418_v18 = vor.u32 %v3417_v4, %v3413_v62  ;;  %7239 = vmatprep.subr.bf16.mxu1 %v7541_v58  ;;  %v2460_v21 = vshll.u32 %v2366_v7, 16 }
 0x23a   : > { %v6466_v38 = vcombine.low %v2445_v3, %v2455_v2  ;;  %v2985_v17 = vsel %vm8139_vm5, %v6483_v60, %v2984_v39  ;;  %v2986_v15 = vrot.slane %v2984_v39, 4  ;;  %v3409_v26 = vrot.slane %v3408_v13, 4  ;;  %v7540_v60 = vld [vmem:[#allocation2 + $0x30] sm:$0xff]  }
 0x23b   : > { %v2459_v19 = vrot.slane %v2457_v16, 4  ;;  %v2466_v22 = vshll.u32 %v2367_v1, 16  ;;  %v3419_v24 = vrot.slane %v3418_v18, 4  ;;  %v2470_v12 = vshrl.u32 %v2367_v1, 16  ;;  %v2371_v16 = vld [vmem:[#allocation2 + $0x38] sm:$0x1] }
 0x23c   : > { %v2988_v11 = vsel %vm8139_vm5, %v2986_v15, %v2987_v14  ;;  %v2476_v34 = vshll.u32 %v2368_v53, 16  ;;  %v3414_v42 = vsel %vm8120_vm2, %v3409_v26, %v3413_v62  ;;  %v2462_v29 = vrot.slane %v2460_v21, 5  ;;  %7240 = vmatpush3.bf16.msra.mxu1 %v7541_v58  ;;  %v7550_v53 = vld [vmem:[#allocation9 + $0x220] sm:$0xff]   ;;  %v3317_v15 = vld [vmem:[#allocation2 + $0x48] sm:$0xf] }
 0x23d   : > { %5349 = vmatmul.mubr.bf16.gmra.mrb[84].mxu0 %v7539_v20  ;;  %v6499_v28 = vcombine.low %v2985_v17, %v2988_v11  ;;  %v2468_v30 = vrot.slane %v2466_v22, 5  ;;  %v3424_v36 = vsel %vm8120_vm2, %v3419_v24, %v3423_v9  ;;  %v2472_v37 = vrot.slane %v2470_v12, 4  ;;  %7241 = vmatprep.subr.bf16.mxu1 %v7544_v33  ;;  %v2370_v9 = vld [vmem:[#allocation2 + $0x34] sm:$0xf]  ;;  %v3318_v22 = vld [vmem:[#allocation2 + $0x4c] sm:$0xf] }
 0x23e   : > { %v2478_v57 = vrot.slane %v2476_v34, 5  ;;  %v3426_v40 = vshrl.u32 %v3314_v23, 16  ;;  %v6531_v25 = vcombine.low %v3414_v42, %v3424_v36  ;;  %v2463_v44 = vor.u32 %v2462_v29, %v2459_v19  ;;  %v2884_v42 = vld [vmem:[#allocation2 + $0x3c] sm:$0xe] }
 0x23f   : > { %v3429_v45 = vshll.u32 %v3314_v23, 16  ;;  %v3435_v48 = vshll.u32 %v3315_v49, 16  ;;  %5188 = vmatmul.mubr.bf16.gmra.mrb[84].mxu1 %v6466_v38  ;;  %v2473_v8 = vor.u32 %v2472_v37, %v2468_v30  ;;  %v3439_v58 = vshrl.u32 %v3315_v49, 16  ;;  %v7553_v23 = vld [vmem:[#allocation9 + $0x228] sm:$0xff]   ;;  %v3319_v49 = vld [vmem:[#allocation2 + $0x50] sm:$0x1] }
 0x240   : > { %v3428_v56 = vrot.slane %v3426_v40, 4  ;;  %v3445_v0 = vshll.u32 %v3316_v35, 16  ;;  %5356 = vmatprep.mubr.bf16.mxu0 %v6531_v25  ;;  %5195 = vmatprep.mubr.bf16.mxu1 %v6499_v28  ;;  %v2464_v55 = vrot.slane %v2463_v44, 4  ;;  %v6484_v54 = vrot.slane %v2881_v32, 9  ;;  %v2885_v40 = vld [vmem:[#allocation2 + $0x40] sm:$0xf] }
 0x241   : > { %v3431_v51 = vrot.slane %v3429_v45, 5  ;;  %v3437_v47 = vrot.slane %v3435_v48, 5  ;;  %v2474_v7 = vrot.slane %v2473_v8, 4  ;;  %v3441_v59 = vrot.slane %v3439_v58, 4  ;;  %7242 = vmatpush3.bf16.msra.mxu1 %v7544_v33  ;;  %v2886_v45 = vld [vmem:[#allocation2 + $0x44] sm:$0x1] }
 0x242   : > { %v3447_v61 = vrot.slane %v3445_v0, 5  ;;  %v2991_v62 = vrot.slane %v2882_v43, 5  ;;  %v2469_v1 = vsel %vm8120_vm2, %v2464_v55, %v2468_v30  ;;  %v2994_v4 = vrot.slane %v2883_v52, 5  ;;  %7243 = vmatprep.subr.bf16.mxu1 %v7547_v46  ;;  %v7542_v48 = vld [vmem:[#allocation2 + $0x3c] sm:$0xff]   ;;  %v7556_v58 = vld [vmem:[#allocation9 + $0x230] sm:$0xff]  }
 0x243   : > { %v3432_v3 = vor.u32 %v3431_v51, %v3428_v56  ;;  %v2481_v39 = vshrl.u32 %v2369_v50, 16  ;;  %v2479_v10 = vsel %vm8120_vm2, %v2474_v7, %v2478_v57  ;;  %v3442_v2 = vor.u32 %v3441_v59, %v3437_v47 }
 0x244   : > { %v2992_v13 = vsel %vm8139_vm5, %v6484_v54, %v2991_v62  ;;  %v2993_v14 = vrot.slane %v2991_v62, 4  ;;  %v6467_v20 = vcombine.low %v2469_v1, %v2479_v10  ;;  %v2484_v17 = vshll.u32 %v2369_v50, 16  ;;  %v2372_v54 = vld [vmem:[#allocation2 + $0x3c] sm:$0xf] }
 0x245   : > { %5357 = vmatmul.mubr.bf16.gmra.mrb[88].mxu0 %v7540_v60  ;;  %v3433_v38 = vrot.slane %v3432_v3, 4  ;;  %v2483_v18 = vrot.slane %v2481_v39, 4  ;;  %v3443_v33 = vrot.slane %v3442_v2, 4  ;;  %v2490_v19 = vshll.u32 %v2370_v9, 16  ;;  %7244 = vmatpush3.bf16.msra.mxu1 %v7547_v46  ;;  %v2373_v60 = vld [vmem:[#allocation2 + $0x40] sm:$0xf] }
 0x246   : > { %v2995_v26 = vsel %vm8139_vm5, %v2993_v14, %v2994_v4  ;;  %v2494_v21 = vshrl.u32 %v2370_v9, 16  ;;  %v2486_v12 = vrot.slane %v2484_v17, 5  ;;  %v2500_v34 = vshll.u32 %v2371_v16, 16  ;;  %7245 = vmatprep.subr.bf16.mxu1 %v7550_v53  ;;  %v2374_v39 = vld [vmem:[#allocation2 + $0x44] sm:$0x1]  ;;  %v7559_v16 = vld [vmem:[#allocation9 + $0x238] sm:$0xff]  }
 0x247   : > { %v3438_v24 = vsel %vm8120_vm2, %v3433_v38, %v3437_v47  ;;  %v6500_v11 = vcombine.low %v2992_v13, %v2995_v26  ;;  %5196 = vmatmul.mubr.bf16.gmra.mrb[88].mxu1 %v6467_v20  ;;  %v3448_v28 = vsel %vm8120_vm2, %v3443_v33, %v3447_v61  ;;  %v2492_v29 = vrot.slane %v2490_v19, 5  ;;  %v3320_v14 = vld [vmem:[#allocation2 + $0x54] sm:$0xf] }
 0x248   : > { %v2496_v30 = vrot.slane %v2494_v21, 4  ;;  %v3450_v35 = vshrl.u32 %v3317_v15, 16  ;;  %v6532_v32 = vcombine.low %v3438_v24, %v3448_v28  ;;  %v2487_v36 = vor.u32 %v2486_v12, %v2483_v18  ;;  %v3321_v21 = vld [vmem:[#allocation2 + $0x58] sm:$0xf]  ;;  %v3322_v12 = vld [vmem:[#allocation2 + $0x5c] sm:$0x1] }
 0x249   : > { %5203 = vmatprep.mubr.bf16.mxu1 %v6500_v11  ;;  %v2502_v37 = vrot.slane %v2500_v34, 5  ;;  %v3453_v57 = vshll.u32 %v3317_v15, 16  ;;  %v3459_v25 = vshll.u32 %v3318_v22, 16  ;;  %v3463_v44 = vshrl.u32 %v3318_v22, 16  ;;  %7246 = vmatpush3.bf16.msra.mxu1 %v7550_v53 }
 0x24a   : > { %v2497_v43 = vor.u32 %v2496_v30, %v2492_v29  ;;  %v3452_v46 = vrot.slane %v3450_v35, 4  ;;  %5364 = vmatprep.mubr.bf16.mxu0 %v6532_v32  ;;  %v2488_v52 = vrot.slane %v2487_v36, 4  ;;  %v3469_v8 = vshll.u32 %v3319_v49, 16  ;;  %7247 = vmatprep.subr.bf16.mxu1 %v7553_v23  ;;  %v2888_v30 = vld [vmem:[#allocation2 + $0x4c] sm:$0xf] }
 0x24b   : > { %v3455_v50 = vrot.slane %v3453_v57, 5  ;;  %v6485_v56 = vrot.slane %v2884_v42, 9  ;;  %v3461_v55 = vrot.slane %v3459_v25, 5  ;;  %v3465_v51 = vrot.slane %v3463_v44, 4  ;;  %v7543_v35 = vld [vmem:[#allocation2 + $0x48] sm:$0xff]  }
 0x24c   : > { %v2498_v0 = vrot.slane %v2497_v43, 4  ;;  %v2998_v47 = vrot.slane %v2885_v40, 5  ;;  %v2493_v7 = vsel %vm8120_vm2, %v2488_v52, %v2492_v29  ;;  %v3471_v61 = vrot.slane %v3469_v8, 5  ;;  %v2887_v29 = vld [vmem:[#allocation2 + $0x48] sm:$0xe] }
 0x24d   : > { %5365 = vmatmul.mubr.bf16.gmra.mrb[92].mxu0 %v7542_v48  ;;  %v3456_v59 = vor.u32 %v3455_v50, %v3452_v46  ;;  %v3001_v62 = vrot.slane %v2886_v45, 5  ;;  %v3466_v3 = vor.u32 %v3465_v51, %v3461_v55  ;;  %7248 = vmatpush3.bf16.msra.mxu1 %v7553_v23  ;;  %v2505_v2 = vshrl.u32 %v2372_v54, 16  ;;  %v2889_v40 = vld [vmem:[#allocation2 + $0x50] sm:$0x1]  ;;  %v2375_v45 = vld [vmem:[#allocation2 + $0x48] sm:$0xf] }
 0x24e   : > { %v2503_v1 = vsel %vm8120_vm2, %v2498_v0, %v2502_v37  ;;  %v2999_v4 = vsel %vm8139_vm5, %v6485_v56, %v2998_v47  ;;  %v3000_v9 = vrot.slane %v2998_v47, 4  ;;  %v2508_v13 = vshll.u32 %v2372_v54, 16  ;;  %7249 = vmatprep.subr.bf16.mxu1 %v7556_v58  ;;  %v2376_v51 = vld [vmem:[#allocation2 + $0x4c] sm:$0xf]  ;;  %v2377_v47 = vld [vmem:[#allocation2 + $0x50] sm:$0x1] }
 0x24f   : > { %v6468_v53 = vcombine.low %v2493_v7, %v2503_v1  ;;  %v3457_v10 = vrot.slane %v3456_v59, 4  ;;  %v3467_v20 = vrot.slane %v3466_v3, 4  ;;  %v2514_v18 = vshll.u32 %v2373_v60, 16 }
 0x250   : > { %v3002_v38 = vsel %vm8139_vm5, %v3000_v9, %v3001_v62  ;;  %v2518_v17 = vshrl.u32 %v2373_v60, 16  ;;  %v2507_v26 = vrot.slane %v2505_v2, 4  ;;  %v2510_v19 = vrot.slane %v2508_v13, 5 }
 0x251   : > { %5204 = vmatmul.mubr.bf16.gmra.mrb[92].mxu1 %v6468_v53  ;;  %v3462_v15 = vsel %vm8120_vm2, %v3457_v10, %v3461_v55  ;;  %v6501_v33 = vcombine.low %v2999_v4, %v3002_v38  ;;  %v3472_v22 = vsel %vm8120_vm2, %v3467_v20, %v3471_v61  ;;  %v2516_v23 = vrot.slane %v2514_v18, 5  ;;  %v3323_v10 = vld [vmem:[#allocation2 + $0x60] sm:$0xf]  ;;  %v3324_v20 = vld [vmem:[#allocation2 + $0x64] sm:$0xf] }
 0x252   : > { %v2520_v24 = vrot.slane %v2518_v17, 4  ;;  %v2524_v11 = vshll.u32 %v2374_v39, 16  ;;  %7250 = vmatpush3.bf16.msra.mxu1 %v7556_v58  ;;  %v6533_v34 = vcombine.low %v3462_v15, %v3472_v22  ;;  %v2511_v49 = vor.u32 %v2510_v19, %v2507_v26  ;;  %v3325_v38 = vld [vmem:[#allocation2 + $0x68] sm:$0x1]  ;;  %v2890_v26 = vld [vmem:[#allocation2 + $0x54] sm:$0xe] }
 0x253   : > { %5211 = vmatprep.mubr.bf16.mxu1 %v6501_v33  ;;  %v3474_v42 = vshrl.u32 %v3320_v14, 16  ;;  %v3477_v28 = vshll.u32 %v3320_v14, 16  ;;  %7251 = vmatprep.subr.bf16.mxu1 %v7559_v16  ;;  %v3483_v37 = vshll.u32 %v3321_v21, 16  ;;  %v3487_v57 = vshrl.u32 %v3321_v21, 16  ;;  %v2891_v19 = vld [vmem:[#allocation2 + $0x58] sm:$0xf] }
 0x254   : > { %v2521_v32 = vor.u32 %v2520_v24, %v2516_v23  ;;  %v2526_v36 = vrot.slane %v2524_v11, 5  ;;  %5372 = vmatprep.mubr.bf16.mxu0 %v6533_v34  ;;  %v2512_v43 = vrot.slane %v2511_v49, 4  ;;  %v3493_v44 = vshll.u32 %v3322_v12, 16  ;;  %v2892_v11 = vld [vmem:[#allocation2 + $0x5c] sm:$0x1]  ;;  %v7545_v12 = vld [vmem:[#allocation2 + $0x54] sm:$0xff]  }
 0x255   : > { %v3476_v46 = vrot.slane %v3474_v42, 4  ;;  %v3479_v25 = vrot.slane %v3477_v28, 5  ;;  %5373 = vmatmul.mubr.bf16.gmra.mrb[96].mxu0 %v7543_v35  ;;  %v3485_v52 = vrot.slane %v3483_v37, 5  ;;  %v3489_v50 = vrot.slane %v3487_v57, 4 }
 0x256   : > { %v2522_v48 = vrot.slane %v2521_v32, 4  ;;  %v6486_v8 = vrot.slane %v2887_v29, 9  ;;  %7252 = vmatpush3.bf16.msra.mxu1 %v7559_v16  ;;  %v2517_v56 = vsel %vm8120_vm2, %v2512_v43, %v2516_v23  ;;  %v3495_v0 = vrot.slane %v3493_v44, 5  ;;  %v2378_v29 = vld [vmem:[#allocation2 + $0x54] sm:$0xf] }
 0x257   : > { %v3480_v58 = vor.u32 %v3479_v25, %v3476_v46  ;;  %v3005_v55 = vrot.slane %v2888_v30, 5  ;;  %v3490_v7 = vor.u32 %v3489_v50, %v3485_v52  ;;  %v3008_v59 = vrot.slane %v2889_v40, 5 }
 0x258   : > { %v2527_v54 = vsel %vm8120_vm2, %v2522_v48, %v2526_v36  ;;  %v2529_v61 = vshrl.u32 %v2375_v45, 16  ;;  %v2532_v39 = vshll.u32 %v2375_v45, 16  ;;  %v2538_v53 = vshll.u32 %v2376_v51, 16 }
 0x259   : > { %v6469_v62 = vcombine.low %v2517_v56, %v2527_v54  ;;  %v3481_v60 = vrot.slane %v3480_v58, 4  ;;  %v3006_v1 = vsel %vm8139_vm5, %v6486_v8, %v3005_v55  ;;  %v3007_v3 = vrot.slane %v3005_v55, 4  ;;  %v2379_v8 = vld [vmem:[#allocation2 + $0x58] sm:$0xf] }
 0x25a   : > { %v3491_v4 = vrot.slane %v3490_v7, 4  ;;  %v2531_v9 = vrot.slane %v2529_v61, 4  ;;  %v2542_v14 = vshrl.u32 %v2376_v51, 16  ;;  %v2548_v16 = vshll.u32 %v2377_v47, 16  ;;  %v2380_v51 = vld [vmem:[#allocation2 + $0x5c] sm:$0x1] }
 0x25b   : > { %5212 = vmatmul.mubr.bf16.gmra.mrb[96].mxu1 %v6469_v62  ;;  %v3486_v2 = vsel %vm8120_vm2, %v3481_v60, %v3485_v52  ;;  %v3009_v13 = vsel %vm8139_vm5, %v3007_v3, %v3008_v59  ;;  %v2534_v15 = vrot.slane %v2532_v39, 5  ;;  %v2540_v33 = vrot.slane %v2538_v53, 5  ;;  %v3326_v62 = vld [vmem:[#allocation2 + $0x6c] sm:$0xf] }
 0x25c   : > { %v3496_v18 = vsel %vm8120_vm2, %v3491_v4, %v3495_v0  ;;  %v6502_v17 = vcombine.low %v3006_v1, %v3009_v13  ;;  %v2544_v22 = vrot.slane %v2542_v14, 4  ;;  %v2550_v23 = vrot.slane %v2548_v16, 5  ;;  %v3328_v14 = vld [vmem:[#allocation2 + $0x74] sm:$0x1]  ;;  %v2893_v16 = vld [vmem:[#allocation2 + $0x60] sm:$0xe] }
 0x25d   : > { %v6534_v21 = vcombine.low %v3486_v2, %v3496_v18  ;;  %v3498_v24 = vshrl.u32 %v3323_v10, 16  ;;  %v2535_v34 = vor.u32 %v2534_v15, %v2531_v9  ;;  %v3501_v49 = vshll.u32 %v3323_v10, 16  ;;  %v3327_v9 = vld [vmem:[#allocation2 + $0x70] sm:$0xf]  ;;  %v7546_v2 = vld [vmem:[#allocation2 + $0x60] sm:$0xff]  }
 0x25e   : > { %5219 = vmatprep.mubr.bf16.mxu1 %v6502_v17  ;;  %v3507_v42 = vshll.u32 %v3324_v20, 16  ;;  %v3511_v28 = vshrl.u32 %v3324_v20, 16  ;;  %v2545_v30 = vor.u32 %v2544_v22, %v2540_v33  ;;  %v3517_v32 = vshll.u32 %v3325_v38, 16  ;;  %v2894_v15 = vld [vmem:[#allocation2 + $0x64] sm:$0xf] }
 0x25f   : > { %5380 = vmatprep.mubr.bf16.mxu0 %v6534_v21  ;;  %v3500_v35 = vrot.slane %v3498_v24, 4  ;;  %v6487_v36 = vrot.slane %v2890_v26, 9  ;;  %v2536_v37 = vrot.slane %v2535_v34, 4  ;;  %v3503_v57 = vrot.slane %v3501_v49, 5  ;;  %v2895_v22 = vld [vmem:[#allocation2 + $0x68] sm:$0x1] }
 0x260   : > { %5381 = vmatmul.mubr.bf16.gmra.mrb[100].mxu0 %v7545_v12  ;;  %v3509_v40 = vrot.slane %v3507_v42, 5  ;;  %v3513_v43 = vrot.slane %v3511_v28, 4  ;;  %v2546_v46 = vrot.slane %v2545_v30, 4  ;;  %v3519_v25 = vrot.slane %v3517_v32, 5  ;;  %v2381_v34 = vld [vmem:[#allocation2 + $0x60] sm:$0xf] }
 0x261   : > { %v3012_v44 = vrot.slane %v2891_v19, 5  ;;  %v3015_v45 = vrot.slane %v2892_v11, 5  ;;  %v2541_v48 = vsel %vm8120_vm2, %v2536_v37, %v2540_v33  ;;  %v3504_v52 = vor.u32 %v3503_v57, %v3500_v35  ;;  %v2382_v30 = vld [vmem:[#allocation2 + $0x64] sm:$0xf] }
 0x262   : > { %v3514_v50 = vor.u32 %v3513_v43, %v3509_v40  ;;  %v2553_v56 = vshrl.u32 %v2378_v29, 16  ;;  %v2551_v58 = vsel %vm8120_vm2, %v2546_v46, %v2550_v23  ;;  %v2556_v47 = vshll.u32 %v2378_v29, 16 }
 0x263   : > { %v3013_v0 = vsel %vm8139_vm5, %v6487_v36, %v3012_v44  ;;  %v3014_v55 = vrot.slane %v3012_v44, 4  ;;  %v6470_v54 = vcombine.low %v2541_v48, %v2551_v58  ;;  %v3505_v7 = vrot.slane %v3504_v52, 4 }
 0x264   : > { %v3515_v59 = vrot.slane %v3514_v50, 4  ;;  %v2555_v61 = vrot.slane %v2553_v56, 4  ;;  %v2558_v1 = vrot.slane %v2556_v47, 5  ;;  %v2562_v3 = vshll.u32 %v2379_v8, 16 }
 0x265   : > { %v3016_v60 = vsel %vm8139_vm5, %v3014_v55, %v3015_v45  ;;  %v2566_v4 = vshrl.u32 %v2379_v8, 16  ;;  %5220 = vmatmul.mubr.bf16.gmra.mrb[100].mxu1 %v6470_v54  ;;  %v3510_v39 = vsel %vm8120_vm2, %v3505_v7, %v3509_v40  ;;  %v2572_v13 = vshll.u32 %v2380_v51, 16  ;;  %v2383_v45 = vld [vmem:[#allocation2 + $0x68] sm:$0x1] }
 0x266   : > { %v3520_v53 = vsel %vm8120_vm2, %v3515_v59, %v3519_v25  ;;  %v6503_v10 = vcombine.low %v3013_v0, %v3016_v60  ;;  %v2559_v38 = vor.u32 %v2558_v1, %v2555_v61  ;;  %v2564_v18 = vrot.slane %v2562_v3, 5  ;;  %v3329_v0 = vld [vmem:[#allocation2 + $0x78] sm:$0xf]  ;;  %v3330_v60 = vld [vmem:[#allocation2 + $0x7c] sm:$0xf] }
 0x267   : > { %v6535_v20 = vcombine.low %v3510_v39, %v3520_v53  ;;  %v2568_v17 = vrot.slane %v2566_v4, 4  ;;  %v2574_v33 = vrot.slane %v2572_v13, 5  ;;  %v3522_v26 = vshrl.u32 %v3326_v62, 16  ;;  %v2896_v53 = vld [vmem:[#allocation2 + $0x6c] sm:$0xe] }
 0x268   : > { %5227 = vmatprep.mubr.bf16.mxu1 %v6503_v10  ;;  %v3525_v19 = vshll.u32 %v3326_v62, 16  ;;  %v3531_v21 = vshll.u32 %v3327_v9, 16  ;;  %v2560_v23 = vrot.slane %v2559_v38, 4  ;;  %v3535_v11 = vshrl.u32 %v3327_v9, 16  ;;  %v3331_v9 = vld [vmem:[#allocation2 + $0x80] sm:$0x1] }
 0x269   : > { %5388 = vmatprep.mubr.bf16.mxu0 %v6535_v20  ;;  %v2569_v24 = vor.u32 %v2568_v17, %v2564_v18  ;;  %v3541_v12 = vshll.u32 %v3328_v14, 16  ;;  %v3524_v49 = vrot.slane %v3522_v26, 4  ;;  %v6488_v29 = vrot.slane %v2893_v16, 9  ;;  %v2897_v20 = vld [vmem:[#allocation2 + $0x70] sm:$0xf] }
 0x26a   : > { %5389 = vmatmul.mubr.bf16.gmra.mrb[104].mxu0 %v7546_v2  ;;  %v3527_v42 = vrot.slane %v3525_v19, 5  ;;  %v3533_v28 = vrot.slane %v3531_v21, 5  ;;  %v2565_v35 = vsel %vm8120_vm2, %v2560_v23, %v2564_v18  ;;  %v3537_v36 = vrot.slane %v3535_v11, 4  ;;  %v7548_v2 = vld [vmem:[#allocation2 + $0x6c] sm:$0xff]  }
 0x26b   : > { %v2570_v32 = vrot.slane %v2569_v24, 4  ;;  %v3543_v37 = vrot.slane %v3541_v12, 5  ;;  %v3019_v40 = vrot.slane %v2894_v15, 5  ;;  %v3022_v43 = vrot.slane %v2895_v22, 5  ;;  %v2384_v23 = vld [vmem:[#allocation2 + $0x6c] sm:$0xf] }
 0x26c   : > { %v3528_v57 = vor.u32 %v3527_v42, %v3524_v49  ;;  %v2577_v46 = vshrl.u32 %v2381_v34, 16  ;;  %v3538_v44 = vor.u32 %v3537_v36, %v3533_v28  ;;  %v2580_v48 = vshll.u32 %v2381_v34, 16  ;;  %v2385_v49 = vld [vmem:[#allocation2 + $0x70] sm:$0xf] }
 0x26d   : > { %v2575_v25 = vsel %vm8120_vm2, %v2570_v32, %v2574_v33  ;;  %v2586_v52 = vshll.u32 %v2382_v30, 16  ;;  %v3020_v56 = vsel %vm8139_vm5, %v6488_v29, %v3019_v40  ;;  %v3021_v58 = vrot.slane %v3019_v40, 4  ;;  %v2898_v33 = vld [vmem:[#allocation2 + $0x74] sm:$0x1] }
 0x26e   : > { %v6471_v50 = vcombine.low %v2565_v35, %v2575_v25  ;;  %v3529_v8 = vrot.slane %v3528_v57, 4  ;;  %v3539_v55 = vrot.slane %v3538_v44, 4  ;;  %v2579_v51 = vrot.slane %v2577_v46, 4  ;;  %v2386_v57 = vld [vmem:[#allocation2 + $0x74] sm:$0x1] }
 0x26f   : > { %v2582_v47 = vrot.slane %v2580_v48, 5  ;;  %v2588_v54 = vrot.slane %v2586_v52, 5  ;;  %v3023_v59 = vsel %vm8139_vm5, %v3021_v58, %v3022_v43  ;;  %v2590_v61 = vshrl.u32 %v2382_v30, 16  ;;  %v3332_v48 = vld [vmem:[#allocation2 + $0x84] sm:$0xf] }
 0x270   : > { %5228 = vmatmul.mubr.bf16.gmra.mrb[104].mxu1 %v6471_v50  ;;  %v3534_v7 = vsel %vm8120_vm2, %v3529_v8, %v3533_v28  ;;  %v2596_v62 = vshll.u32 %v2383_v45, 16  ;;  %v3544_v1 = vsel %vm8120_vm2, %v3539_v55, %v3543_v37  ;;  %v6504_v3 = vcombine.low %v3020_v56, %v3023_v59 }
 0x271   : > { %v2583_v4 = vor.u32 %v2582_v47, %v2579_v51  ;;  %v3546_v39 = vshrl.u32 %v3329_v0, 16  ;;  %v6536_v10 = vcombine.low %v3534_v7, %v3544_v1  ;;  %v2592_v13 = vrot.slane %v2590_v61, 4  ;;  %v7549_v61 = vld [vmem:[#allocation2 + $0x78] sm:$0xff]   ;;  %v3334_v1 = vld [vmem:[#allocation2 + $0x8c] sm:$0x1] }
 0x272   : > { %v2598_v14 = vrot.slane %v2596_v62, 5  ;;  %v3549_v16 = vshll.u32 %v3329_v0, 16  ;;  %5235 = vmatprep.mubr.bf16.mxu1 %v6504_v3  ;;  %v3555_v17 = vshll.u32 %v3330_v60, 16  ;;  %v3559_v15 = vshrl.u32 %v3330_v60, 16  ;;  %v8590_v35 = vpop.f32.mrb[16].mxu0 }
 0x273   : > { %v2584_v38 = vrot.slane %v2583_v4, 4  ;;  %v3548_v18 = vrot.slane %v3546_v39, 4  ;;  %5396 = vmatprep.mubr.bf16.mxu0 %v6536_v10  ;;  %v2593_v26 = vor.u32 %v2592_v13, %v2588_v54  ;;  %v3565_v21 = vshll.u32 %v3331_v9, 16  ;;  %v8594_v43 = vpop.f32.mrb[17].mxu0  ;;  %v3333_v0 = vld [vmem:[#allocation2 + $0x88] sm:$0xf] }
 0x274   : > { %v3551_v19 = vrot.slane %v3549_v16, 5  ;;  %v6489_v22 = vrot.slane %v2896_v53, 9  ;;  %5397 = vmatmul.mubr.bf16.gmra.mrb[108].mxu0 %v7548_v2  ;;  %v3557_v11 = vrot.slane %v3555_v17, 5  ;;  %v3561_v12 = vrot.slane %v3559_v15, 4  ;;  %v8598_v52 = vpop.f32.mrb[18].mxu0 }
 0x275   : > { %v2589_v24 = vsel %vm8120_vm2, %v2584_v38, %v2588_v54  ;;  %v3026_v34 = vrot.slane %v2897_v20, 5  ;;  %v2594_v42 = vrot.slane %v2593_v26, 4  ;;  %v3567_v29 = vrot.slane %v3565_v21, 5  ;;  %v8602_v55 = vpop.f32.mrb[19].mxu0  ;;  %v2899_v10 = vld [vmem:[#allocation2 + $0x78] sm:$0xe] }
 0x276   : > { %v3552_v28 = vor.u32 %v3551_v19, %v3548_v18  ;;  %v3029_v30 = vrot.slane %v2898_v33, 5  ;;  %v3562_v32 = vor.u32 %v3561_v12, %v3557_v11  ;;  %v2601_v40 = vshrl.u32 %v2384_v23, 16  ;;  %v2900_v2 = vld [vmem:[#allocation2 + $0x7c] sm:$0xf]  ;;  %v2901_v38 = vld [vmem:[#allocation2 + $0x80] sm:$0x1] }
 0x277   : > { %v3027_v36 = vsel %vm8139_vm5, %v6489_v22, %v3026_v34  ;;  %v3028_v37 = vrot.slane %v3026_v34, 4  ;;  %v2599_v46 = vsel %vm8120_vm2, %v2594_v42, %v2598_v14  ;;  %v2604_v44 = vshll.u32 %v2384_v23, 16  ;;  %v2387_v26 = vld [vmem:[#allocation2 + $0x78] sm:$0xf] }
 0x278   : > { %v3553_v25 = vrot.slane %v3552_v28, 4  ;;  %v2610_v45 = vshll.u32 %v2385_v49, 16  ;;  %v6472_v50 = vcombine.low %v2589_v24, %v2599_v46  ;;  %v3563_v8 = vrot.slane %v3562_v32, 4  ;;  %v2388_v24 = vld [vmem:[#allocation2 + $0x7c] sm:$0xf] }
 0x279   : > { %v3030_v56 = vsel %vm8139_vm5, %v3028_v37, %v3029_v30  ;;  %v2603_v58 = vrot.slane %v2601_v40, 4  ;;  %v2606_v54 = vrot.slane %v2604_v44, 5  ;;  %v2614_v62 = vshrl.u32 %v2385_v49, 16  ;;  %v2389_v32 = vld [vmem:[#allocation2 + $0x80] sm:$0x1] }
 0x27a   : > { %v3558_v51 = vsel %vm8120_vm2, %v3553_v25, %v3557_v11  ;;  %v6505_v47 = vcombine.low %v3027_v36, %v3030_v56  ;;  %v2612_v7 = vrot.slane %v2610_v45, 5  ;;  %5236 = vmatmul.mubr.bf16.gmra.mrb[108].mxu1 %v6472_v50  ;;  %v3568_v59 = vsel %vm8120_vm2, %v3563_v8, %v3567_v29  ;;  %v3335_v46 = vld [vmem:[#allocation2 + $0x90] sm:$0xf]  ;;  %v3336_v50 = vld [vmem:[#allocation2 + $0x94] sm:$0xf] }
 0x27b   : > { %v2620_v60 = vshll.u32 %v2386_v57, 16  ;;  %v3570_v3 = vshrl.u32 %v3332_v48, 16  ;;  %v6537_v4 = vcombine.low %v3558_v51, %v3568_v59  ;;  %v2607_v9 = vor.u32 %v2606_v54, %v2603_v58 }
 0x27c   : > { %5243 = vmatprep.mubr.bf16.mxu1 %v6505_v47  ;;  %v3573_v39 = vshll.u32 %v3332_v48, 16  ;;  %v3579_v53 = vshll.u32 %v3333_v0, 16  ;;  %v2616_v13 = vrot.slane %v2614_v62, 4  ;;  %v3583_v20 = vshrl.u32 %v3333_v0, 16  ;;  %v3337_v47 = vld [vmem:[#allocation2 + $0x98] sm:$0x1] }
 0x27d   : > { %v2622_v14 = vrot.slane %v2620_v60, 5  ;;  %v3572_v16 = vrot.slane %v3570_v3, 4  ;;  %5404 = vmatprep.mubr.bf16.mxu0 %v6537_v4  ;;  %v2608_v18 = vrot.slane %v2607_v9, 4  ;;  %v3589_v33 = vshll.u32 %v3334_v1, 16  ;;  %v2902_v1 = vld [vmem:[#allocation2 + $0x84] sm:$0xe] }
 0x27e   : > { %v3575_v17 = vrot.slane %v3573_v39, 5  ;;  %v3581_v15 = vrot.slane %v3579_v53, 5  ;;  %5405 = vmatmul.mubr.bf16.gmra.mrb[112].mxu0 %v7549_v61  ;;  %v2617_v19 = vor.u32 %v2616_v13, %v2612_v7  ;;  %v3585_v21 = vrot.slane %v3583_v20, 4 }
 0x27f   : > { %v6490_v22 = vrot.slane %v2899_v10, 9  ;;  %v3033_v23 = vrot.slane %v2900_v2, 5  ;;  %v2613_v11 = vsel %vm8120_vm2, %v2608_v18, %v2612_v7  ;;  %v3591_v34 = vrot.slane %v3589_v33, 5 }
 0x280   : > { %v3576_v12 = vor.u32 %v3575_v17, %v3572_v16  ;;  %v3036_v49 = vrot.slane %v2901_v38, 5  ;;  %v2618_v42 = vrot.slane %v2617_v19, 4  ;;  %v3586_v28 = vor.u32 %v3585_v21, %v3581_v15  ;;  %v2903_v17 = vld [vmem:[#allocation2 + $0x88] sm:$0xf] }
 0x281   : > { %v3034_v29 = vsel %vm8139_vm5, %v6490_v22, %v3033_v23  ;;  %v3035_v30 = vrot.slane %v3033_v23, 4  ;;  %v2625_v37 = vshrl.u32 %v2387_v26, 16  ;;  %v2628_v57 = vshll.u32 %v2387_v26, 16  ;;  %v8616_v8 = vpop.f32.mrb[20].mxu0  ;;  %v2904_v22 = vld [vmem:[#allocation2 + $0x8c] sm:$0x1] }
 0x282   : > { %v3577_v36 = vrot.slane %v3576_v12, 4  ;;  %v2634_v40 = vshll.u32 %v2388_v24, 16  ;;  %v2623_v25 = vsel %vm8120_vm2, %v2618_v42, %v2622_v14  ;;  %v3587_v44 = vrot.slane %v3586_v28, 4  ;;  %v8620_v54 = vpop.f32.mrb[20].mxu1  ;;  %v8622_v7 = vpop.f32.mrb[21].mxu0  ;;  %v7551_v14 = vld [vmem:[#allocation2 + $0x84] sm:$0xff]  }
 0x283   : > { %v3037_v45 = vsel %vm8139_vm5, %v3035_v30, %v3036_v49  ;;  %v2638_v48 = vshrl.u32 %v2388_v24, 16  ;;  %v6473_v56 = vcombine.low %v2613_v11, %v2623_v25  ;;  %v2627_v51 = vrot.slane %v2625_v37, 4  ;;  %v8626_v3 = vpop.f32.mrb[21].mxu1  ;;  %v8628_v4 = vpop.f32.mrb[22].mxu0  ;;  %v2391_v30 = vld [vmem:[#allocation2 + $0x88] sm:$0xf] }
 0x284   : > { %v3582_v58 = vsel %vm8120_vm2, %v3577_v36, %v3581_v15  ;;  %v6506_v0 = vcombine.low %v3034_v29, %v3037_v45  ;;  %v3592_v59 = vsel %vm8120_vm2, %v3587_v44, %v3591_v34  ;;  %v2630_v61 = vrot.slane %v2628_v57, 5  ;;  %v8630_v2 = vpop.f32.mrb[22].mxu1  ;;  %v8632_v13 = vpop.f32.mrb[23].mxu0  ;;  %v2390_v34 = vld [vmem:[#allocation2 + $0x84] sm:$0xf] }
 0x285   : > { %v2636_v62 = vrot.slane %v2634_v40, 5  ;;  %v2640_v60 = vrot.slane %v2638_v48, 4  ;;  %5244 = vmatmul.mubr.bf16.gmra.mrb[112].mxu1 %v6473_v56  ;;  %v6538_v9 = vcombine.low %v3582_v58, %v3592_v59  ;;  %v2644_v39 = vshll.u32 %v2389_v32, 16  ;;  %v8634_v15 = vpop.f32.mrb[23].mxu1  ;;  %v2392_v40 = vld [vmem:[#allocation2 + $0x8c] sm:$0x1] }
 0x286   : > { %v3594_v53 = vshrl.u32 %v3335_v46, 16  ;;  %v3597_v10 = vshll.u32 %v3335_v46, 16  ;;  %5251 = vmatprep.mubr.bf16.mxu1 %v6506_v0  ;;  %v2631_v16 = vor.u32 %v2630_v61, %v2627_v51  ;;  %v3603_v38 = vshll.u32 %v3336_v50, 16  ;;  %v3338_v48 = vld [vmem:[#allocation2 + $0x9c] sm:$0xf] }
 0x287   : > { %v2641_v20 = vor.u32 %v2640_v60, %v2636_v62  ;;  %v3607_v18 = vshrl.u32 %v3336_v50, 16  ;;  %5412 = vmatprep.mubr.bf16.mxu0 %v6538_v9  ;;  %v2646_v33 = vrot.slane %v2644_v39, 5  ;;  %v3613_v21 = vshll.u32 %v3337_v47, 16  ;;  %v3339_v39 = vld [vmem:[#allocation2 + $0xa0] sm:$0xf] }
 0x288   : > { %v3596_v26 = vrot.slane %v3594_v53, 4  ;;  %v3599_v19 = vrot.slane %v3597_v10, 5  ;;  %5413 = vmatmul.mubr.bf16.gmra.mrb[116].mxu0 %v7551_v14  ;;  %v2632_v23 = vrot.slane %v2631_v16, 4  ;;  %v3605_v11 = vrot.slane %v3603_v38, 5 }
 0x289   : > { %v2642_v24 = vrot.slane %v2641_v20, 4  ;;  %v3609_v12 = vrot.slane %v3607_v18, 4  ;;  %v3615_v42 = vrot.slane %v3613_v21, 5  ;;  %v6491_v28 = vrot.slane %v2902_v1, 9  ;;  %v3340_v18 = vld [vmem:[#allocation2 + $0xa4] sm:$0x1] }
 0x28a   : > { %v3600_v49 = vor.u32 %v3599_v19, %v3596_v26  ;;  %v3040_v29 = vrot.slane %v2903_v17, 5  ;;  %v2637_v32 = vsel %vm8120_vm2, %v2632_v23, %v2636_v62  ;;  %v3043_v57 = vrot.slane %v2904_v22, 5  ;;  %v8642_v50 = vpop.f32.mrb[24].mxu0  ;;  %v8644_v56 = vpop.f32.mrb[24].mxu1  ;;  %v7552_v23 = vld [vmem:[#allocation2 + $0x90] sm:$0xff]  }
 0x28b   : > { %v2647_v36 = vsel %vm8120_vm2, %v2642_v24, %v2646_v33  ;;  %v3610_v37 = vor.u32 %v3609_v12, %v3605_v11  ;;  %v2649_v0 = vshrl.u32 %v2390_v34, 16  ;;  %v2652_v51 = vshll.u32 %v2390_v34, 16  ;;  %v8646_v59 = vpop.f32.mrb[25].mxu0  ;;  %v8648_v61 = vpop.f32.mrb[25].mxu1 }
 0x28c   : > { %v6474_v46 = vcombine.low %v2637_v32, %v2647_v36  ;;  %v3601_v25 = vrot.slane %v3600_v49, 4  ;;  %v3041_v44 = vsel %vm8139_vm5, %v6491_v28, %v3040_v29  ;;  %v3042_v45 = vrot.slane %v3040_v29, 4  ;;  %v8654_v53 = vpop.f32.mrb[26].mxu0  ;;  %v8656_v10 = vpop.f32.mrb[26].mxu1  ;;  %v2905_v49 = vld [vmem:[#allocation2 + $0x90] sm:$0xe] }
 0x28d   : > { %v3611_v58 = vrot.slane %v3610_v37, 4  ;;  %v2658_v47 = vshll.u32 %v2391_v30, 16  ;;  %v2662_v1 = vshrl.u32 %v2391_v30, 16  ;;  %v2668_v9 = vshll.u32 %v2392_v40, 16  ;;  %v8660_v17 = vpop.f32.mrb[27].mxu0  ;;  %v8662_v33 = vpop.f32.mrb[27].mxu1 }
 0x28e   : > { %5252 = vmatmul.mubr.bf16.gmra.mrb[116].mxu1 %v6474_v46  ;;  %v3606_v62 = vsel %vm8120_vm2, %v3601_v25, %v3605_v11  ;;  %v3044_v60 = vsel %vm8139_vm5, %v3042_v45, %v3043_v57  ;;  %v2651_v20 = vrot.slane %v2649_v0, 4  ;;  %v2654_v38 = vrot.slane %v2652_v51, 5  ;;  %v2906_v32 = vld [vmem:[#allocation2 + $0x94] sm:$0xf]  ;;  %v2907_v36 = vld [vmem:[#allocation2 + $0x98] sm:$0x1] }
 0x28f   : > { %v3616_v14 = vsel %vm8120_vm2, %v3611_v58, %v3615_v42  ;;  %v6507_v16 = vcombine.low %v3041_v44, %v3044_v60  ;;  %v2660_v19 = vrot.slane %v2658_v47, 5  ;;  %v2664_v21 = vrot.slane %v2662_v1, 4 }
 0x290   : > { %v6539_v26 = vcombine.low %v3606_v62, %v3616_v14  ;;  %v2670_v22 = vrot.slane %v2668_v9, 5  ;;  %v2655_v24 = vor.u32 %v2654_v38, %v2651_v20  ;;  %v3618_v11 = vshrl.u32 %v3338_v48, 16  ;;  %v2394_v14 = vld [vmem:[#allocation2 + $0x94] sm:$0xf] }
 0x291   : > { %5259 = vmatprep.mubr.bf16.mxu1 %v6507_v16  ;;  %v3621_v12 = vshll.u32 %v3338_v48, 16  ;;  %v3627_v34 = vshll.u32 %v3339_v39, 16  ;;  %v2665_v42 = vor.u32 %v2664_v21, %v2660_v19  ;;  %v3631_v28 = vshrl.u32 %v3339_v39, 16 }
 0x292   : > { %5420 = vmatprep.mubr.bf16.mxu0 %v6539_v26  ;;  %v3637_v29 = vshll.u32 %v3340_v18, 16  ;;  %v6711_v30 = vadd.f32 %v8479_v63, %v8465_v31  ;;  %v2656_v37 = vrot.slane %v2655_v24, 4  ;;  %v3620_v57 = vrot.slane %v3618_v11, 4  ;;  %v8666_v58 = vpop.f32.mrb[28].mxu0  ;;  %v2393_v31 = vld [vmem:[#allocation2 + $0x90] sm:$0xf] }
 0x293   : > { %5421 = vmatmul.mubr.bf16.gmra.mrb[120].mxu0 %v7552_v23  ;;  %v3623_v40 = vrot.slane %v3621_v12, 5  ;;  %v3629_v46 = vrot.slane %v3627_v34, 5  ;;  %v2666_v25 = vrot.slane %v2665_v42, 4  ;;  %v3633_v44 = vrot.slane %v3631_v28, 4  ;;  %v8670_v63 = vpop.f32.mrb[29].mxu0  ;;  %v7561_v28 = vld [vmem:[#allocation10] sm:$0xff]  }
 0x294   : > { %v3639_v45 = vrot.slane %v3637_v29, 5  ;;  %v6492_v48 = vrot.slane %v2905_v49, 9  ;;  %v2661_v0 = vsel %vm8120_vm2, %v2656_v37, %v2660_v19  ;;  %v3047_v47 = vrot.slane %v2906_v32, 5  ;;  %v8678_v16 = vpop.f32.mrb[30].mxu0  ;;  %v2395_v19 = vld [vmem:[#allocation2 + $0x98] sm:$0x1]  ;;  %7285 = vmatprep.subr.bf16.mxu0 %v7561_v28 }
 0x295   : > { %v3624_v51 = vor.u32 %v3623_v40, %v3620_v57  ;;  %v3050_v62 = vrot.slane %v2907_v36, 5  ;;  %v2671_v60 = vsel %vm8120_vm2, %v2666_v25, %v2670_v22  ;;  %v3634_v1 = vor.u32 %v3633_v44, %v3629_v46  ;;  %v8682_v21 = vpop.f32.mrb[31].mxu0  ;;  %v3342_v49 = vld [vmem:[#allocation2 + $0xac] sm:$0xf]  ;;  %v3343_v36 = vld [vmem:[#allocation2 + $0xb0] sm:$0x1]  ;;  %7286 = vmatpush3.bf16.msra.mxu0 %v7561_v28 }
 0x296   : > { %v6714_v9 = vadd.f32 %v8494_v27, %v8485_v5  ;;  %v6823_v39 = vadd.f32 %v8594_v43, %v8590_v35  ;;  %v6475_v20 = vcombine.low %v2661_v0, %v2671_v60  ;;  %v3048_v18 = vsel %vm8139_vm5, %v6492_v48, %v3047_v47  ;;  %v3341_v35 = vld [vmem:[#allocation2 + $0xa8] sm:$0xf]  ;;  %v8688_v43 = vpop.f32.mrb[28].mxu1  ;;  %v2908_v44 = vld [vmem:[#allocation2 + $0x9c] sm:$0xe] }
 0x297   : > { %v3625_v38 = vrot.slane %v3624_v51, 4  ;;  %v3049_v26 = vrot.slane %v3047_v47, 4  ;;  %v3635_v22 = vrot.slane %v3634_v1, 4  ;;  %v6826_v5 = vadd.f32 %v8602_v55, %v8598_v52  ;;  %v8694_v42 = vpop.f32.mrb[29].mxu1 }
 0x298   : > { %v8684_v23 = vadd.f32 %v6823_v39, %v6711_v30  ;;  %v2673_v27 = vshrl.u32 %v2393_v31, 16  ;;  %5260 = vmatmul.mubr.bf16.gmra.mrb[120].mxu1 %v6475_v20  ;;  %v2676_v12 = vshll.u32 %v2393_v31, 16  ;;  %v2682_v34 = vshll.u32 %v2394_v14, 16  ;;  %v7554_v30 = vld [vmem:[#allocation2 + $0x9c] sm:$0xff]   ;;  %v8700_v37 = vpop.f32.mrb[30].mxu1 }
 0x299   : > { %v3630_v24 = vsel %vm8120_vm2, %v3625_v38, %v3629_v46  ;;  %v3051_v11 = vsel %vm8139_vm5, %v3049_v26, %v3050_v62  ;;  %v3640_v52 = vsel %vm8120_vm2, %v3635_v22, %v3639_v45  ;;  %v8698_v29 = vadd.f32 %v6826_v5, %v6714_v9  ;;  %v8702_v48 = vpop.f32.mrb[31].mxu1  ;;  %v2909_v62 = vld [vmem:[#allocation2 + $0xa0] sm:$0xf]  ;;  %v2910_v39 = vld [vmem:[#allocation2 + $0xa4] sm:$0x1] }
 0x29a   : > { %9553 = vst [vmem:[#allocation19_spill] sm:$0xff] %v8684_v23  ;;  %v6508_v55 = vcombine.low %v3048_v18, %v3051_v11  ;;  %v2675_v32 = vrot.slane %v2673_v27, 4  ;;  %v6540_v57 = vcombine.low %v3630_v24, %v3640_v52  ;;  %v2678_v40 = vrot.slane %v2676_v12, 5 }
 0x29b   : > { %9554 = vst [vmem:[#allocation20_spill] sm:$0xff] %v8698_v29  ;;  %v2684_v46 = vrot.slane %v2682_v34, 5  ;;  %v2686_v25 = vshrl.u32 %v2394_v14, 16  ;;  %v2692_v0 = vshll.u32 %v2395_v19, 16  ;;  %v3642_v51 = vshrl.u32 %v3341_v35, 16 }
 0x29c   : > { %5267 = vmatprep.mubr.bf16.mxu1 %v6508_v55  ;;  %v3645_v45 = vshll.u32 %v3341_v35, 16  ;;  %v3651_v47 = vshll.u32 %v3342_v49, 16  ;;  %5428 = vmatprep.mubr.bf16.mxu0 %v6540_v57  ;;  %v2679_v31 = vor.u32 %v2678_v40, %v2675_v32  ;;  %v3655_v1 = vshrl.u32 %v3342_v49, 16 }
 0x29d   : > { %v2688_v60 = vrot.slane %v2686_v25, 4  ;;  %v3661_v9 = vshll.u32 %v3343_v36, 16  ;;  %5429 = vmatmul.mubr.bf16.gmra.mrb[124].mxu0 %v7554_v30  ;;  %v2694_v20 = vrot.slane %v2692_v0, 5  ;;  %v3644_v14 = vrot.slane %v3642_v51, 4  ;;  %v2396_v0 = vld [vmem:[#allocation2 + $0x9c] sm:$0xf] }
 0x29e   : > { %v3647_v38 = vrot.slane %v3645_v45, 5  ;;  %v3653_v18 = vrot.slane %v3651_v47, 5  ;;  %v2680_v26 = vrot.slane %v2679_v31, 4  ;;  %v3657_v5 = vrot.slane %v3655_v1, 4  ;;  %v8704_v27 = vpop.f32.mrb[32].mxu0 }
 0x29f   : > { %v2689_v22 = vor.u32 %v2688_v60, %v2684_v46  ;;  %v3663_v19 = vrot.slane %v3661_v9, 5  ;;  %v6493_v24 = vrot.slane %v2908_v44, 9  ;;  %v3054_v11 = vrot.slane %v2909_v62, 5  ;;  %v8706_v34 = vpop.f32.mrb[32].mxu1  ;;  %v8708_v49 = vpop.f32.mrb[33].mxu0 }
 0x2a0   : > { %v3648_v35 = vor.u32 %v3647_v38, %v3644_v14  ;;  %v3057_v12 = vrot.slane %v2910_v39, 5  ;;  %v2685_v28 = vsel %vm8120_vm2, %v2680_v26, %v2684_v46  ;;  %v3658_v55 = vor.u32 %v3657_v5, %v3653_v18  ;;  %v8714_v32 = vpop.f32.mrb[33].mxu1  ;;  %v8716_v36 = vpop.f32.mrb[34].mxu0  ;;  %v2397_v62 = vld [vmem:[#allocation2 + $0xa0] sm:$0xf] }
 0x2a1   : > { %v2690_v52 = vrot.slane %v2689_v22, 4  ;;  %v6829_v30 = vadd.f32 %v8622_v7, %v8616_v8  ;;  %v3055_v40 = vsel %vm8139_vm5, %v6493_v24, %v3054_v11  ;;  %v3056_v25 = vrot.slane %v3054_v11, 4  ;;  %v8722_v51 = vpop.f32.mrb[34].mxu1  ;;  %v8724_v46 = vpop.f32.mrb[35].mxu0  ;;  %v2398_v9 = vld [vmem:[#allocation2 + $0xa4] sm:$0x1] }
 0x2a2   : > { %v3649_v57 = vrot.slane %v3648_v35, 4  ;;  %v6717_v44 = vadd.f32 %v8626_v3, %v8620_v54  ;;  %v3659_v7 = vrot.slane %v3658_v55, 4  ;;  %v6832_v45 = vadd.f32 %v8632_v13, %v8628_v4  ;;  %v8732_v31 = vpop.f32.mrb[35].mxu1  ;;  %v3344_v39 = vld [vmem:[#allocation2 + $0xb4] sm:$0xf]  ;;  %v7555_v24 = vld [vmem:[#allocation2 + $0xa8] sm:$0xff]  }
 0x2a3   : > { %v2695_v8 = vsel %vm8120_vm2, %v2690_v52, %v2694_v20  ;;  %v6720_v47 = vadd.f32 %v8634_v15, %v8630_v2  ;;  %v3058_v3 = vsel %vm8139_vm5, %v3056_v25, %v3057_v12  ;;  %v2697_v2 = vshrl.u32 %v2396_v0, 16  ;;  %v3345_v15 = vld [vmem:[#allocation2 + $0xb8] sm:$0xf]  ;;  %v3346_v14 = vld [vmem:[#allocation2 + $0xbc] sm:$0x1]  ;;  %v9562_v6 = vld [vmem:[#allocation20_spill] sm:$0xff] }
 0x2a4   : > { %v6476_v60 = vcombine.low %v2685_v28, %v2695_v8  ;;  %v3654_v54 = vsel %vm8120_vm2, %v3649_v57, %v3653_v18  ;;  %v8738_v1 = vadd.f32 %v6829_v30, %v6717_v44  ;;  %v3664_v4 = vsel %vm8120_vm2, %v3659_v7, %v3663_v19  ;;  %v2911_v5 = vld [vmem:[#allocation2 + $0xa8] sm:$0xe]  ;;  %v2912_v35 = vld [vmem:[#allocation2 + $0xac] sm:$0xf]  ;;  %v2913_v19 = vld [vmem:[#allocation2 + $0xb0] sm:$0x1] }
 0x2a5   : > { %v6509_v13 = vcombine.low %v3055_v40, %v3058_v3  ;;  %v8742_v20 = vadd.f32 %v6832_v45, %v6720_v47  ;;  %v6541_v38 = vcombine.low %v3654_v54, %v3664_v4  ;;  %v2700_v26 = vshll.u32 %v2396_v0, 16 }
 0x2a6   : > { %9555 = vst [vmem:[#allocation21_spill] sm:$0xff] %v8738_v1  ;;  %5268 = vmatmul.mubr.bf16.gmra.mrb[124].mxu1 %v6476_v60  ;;  %v2706_v18 = vshll.u32 %v2397_v62, 16  ;;  %v2710_v22 = vshrl.u32 %v2397_v62, 16  ;;  %v2699_v11 = vrot.slane %v2697_v2, 4  ;;  %v2716_v12 = vshll.u32 %v2398_v9, 16  ;;  %v8744_v55 = vpop.f32.mrb[36].mxu0 }
 0x2a7   : > { %9556 = vst [vmem:[#allocation22_spill] sm:$0xff] %v8742_v20  ;;  %5275 = vmatprep.mubr.bf16.mxu1 %v6509_v13  ;;  %v3666_v28 = vshrl.u32 %v3344_v39, 16  ;;  %v3669_v52 = vshll.u32 %v3344_v39, 16  ;;  %5436 = vmatprep.mubr.bf16.mxu0 %v6541_v38  ;;  %v2702_v30 = vrot.slane %v2700_v26, 5  ;;  %v3675_v25 = vshll.u32 %v3345_v15, 16  ;;  %v8746_v44 = vpop.f32.mrb[36].mxu1 }
 0x2a8   : > { %v2708_v57 = vrot.slane %v2706_v18, 5  ;;  %v2712_v40 = vrot.slane %v2710_v22, 4  ;;  %v8748_v0 = vpop.f32.mrb[37].mxu0  ;;  %5437 = vmatmul.mubr.bf16.gmra.mrb[128].mxu0 %v7555_v24  ;;  %v2718_v8 = vrot.slane %v2716_v12, 5  ;;  %v3679_v47 = vshrl.u32 %v3345_v15, 16  ;;  %v8750_v62 = vpop.f32.mrb[37].mxu1 }
 0x2a9   : > { %v3668_v7 = vrot.slane %v3666_v28, 4  ;;  %v3671_v45 = vrot.slane %v3669_v52, 5  ;;  %v8752_v60 = vpop.f32.mrb[38].mxu0  ;;  %v2703_v54 = vor.u32 %v2702_v30, %v2699_v11  ;;  %v3677_v9 = vrot.slane %v3675_v25, 5  ;;  %v8754_v4 = vpop.f32.mrb[38].mxu1  ;;  %v7562_v2 = vld [vmem:[#allocation10 + $0x8] sm:$0xff]  }
 0x2aa   : > { %v2713_v3 = vor.u32 %v2712_v40, %v2708_v57  ;;  %v3685_v39 = vshll.u32 %v3346_v14, 16  ;;  %v8756_v13 = vpop.f32.mrb[39].mxu0  ;;  %v3681_v26 = vrot.slane %v3679_v47, 4  ;;  %v6494_v18 = vrot.slane %v2911_v5, 9  ;;  %v8758_v24 = vpop.f32.mrb[39].mxu1  ;;  %7287 = vmatprep.subr.bf16.mxu0 %v7562_v2 }
 0x2ab   : > { %v3672_v38 = vor.u32 %v3671_v45, %v3668_v7  ;;  %v3061_v22 = vrot.slane %v2912_v35, 5  ;;  %v2704_v15 = vrot.slane %v2703_v54, 4  ;;  %v3064_v52 = vrot.slane %v2913_v19, 5  ;;  %7288 = vmatpush3.bf16.msra.mxu0 %v7562_v2  ;;  %v2399_v7 = vld [vmem:[#allocation2 + $0xa8] sm:$0xf] }
 0x2ac   : > { %v2714_v12 = vrot.slane %v2713_v3, 4  ;;  %v3687_v28 = vrot.slane %v3685_v39, 5  ;;  %v3682_v30 = vor.u32 %v3681_v26, %v3677_v9  ;;  %v6835_v35 = vadd.f32 %v8646_v59, %v8642_v50  ;;  %v2400_v45 = vld [vmem:[#allocation2 + $0xac] sm:$0xf]  ;;  %v3347_v2 = vld [vmem:[#allocation2 + $0xc0] sm:$0xf] }
 0x2ad   : > { %v3673_v11 = vrot.slane %v3672_v38, 4  ;;  %v3062_v14 = vsel %vm8139_vm5, %v6494_v18, %v3061_v22  ;;  %v3063_v40 = vrot.slane %v3061_v22, 4  ;;  %v2709_v25 = vsel %vm8120_vm2, %v2704_v15, %v2708_v57  ;;  %v2401_v57 = vld [vmem:[#allocation2 + $0xb0] sm:$0x1]  ;;  %v3348_v59 = vld [vmem:[#allocation2 + $0xc4] sm:$0xf] }
 0x2ae   : > { %v2719_v5 = vsel %vm8120_vm2, %v2714_v12, %v2718_v8  ;;  %v6723_v19 = vadd.f32 %v8648_v61, %v8644_v56  ;;  %v3683_v3 = vrot.slane %v3682_v30, 4  ;;  %v8774_v38 = vpop.f32.mrb[40].mxu0  ;;  %v6838_v50 = vadd.f32 %v8660_v17, %v8654_v53  ;;  %v3349_v61 = vld [vmem:[#allocation2 + $0xc8] sm:$0x1] }
 0x2af   : > { %v6477_v47 = vcombine.low %v2709_v25, %v2719_v5  ;;  %v3678_v54 = vsel %vm8120_vm2, %v3673_v11, %v3677_v9  ;;  %v3065_v39 = vsel %vm8139_vm5, %v3063_v40, %v3064_v52  ;;  %v6726_v56 = vadd.f32 %v8662_v33, %v8656_v10  ;;  %v8782_v9 = vpop.f32.mrb[41].mxu0  ;;  %v2914_v52 = vld [vmem:[#allocation2 + $0xb4] sm:$0xe]  ;;  %v8786_v11 = vpop.f32.mrb[40].mxu1 }
 0x2b0   : > { %v6510_v8 = vcombine.low %v3062_v14, %v3065_v39  ;;  %v8776_v26 = vadd.f32 %v6835_v35, %v6723_v19  ;;  %v3688_v18 = vsel %vm8120_vm2, %v3683_v3, %v3687_v28  ;;  %v2721_v22 = vshrl.u32 %v2399_v7, 16  ;;  %v8788_v30 = vpop.f32.mrb[42].mxu0  ;;  %v2915_v14 = vld [vmem:[#allocation2 + $0xb8] sm:$0xf]  ;;  %v8792_v40 = vpop.f32.mrb[41].mxu1 }
 0x2b1   : > { %5276 = vmatmul.mubr.bf16.gmra.mrb[128].mxu1 %v6477_v47  ;;  %v2724_v15 = vshll.u32 %v2399_v7, 16  ;;  %v2730_v12 = vshll.u32 %v2400_v45, 16  ;;  %v6542_v53 = vcombine.low %v3678_v54, %v3688_v18  ;;  %v8790_v17 = vadd.f32 %v6838_v50, %v6726_v56  ;;  %v8794_v25 = vpop.f32.mrb[43].mxu0  ;;  %v7557_v28 = vld [vmem:[#allocation2 + $0xb4] sm:$0xff]   ;;  %v8796_v47 = vpop.f32.mrb[42].mxu1 }
 0x2b2   : > { %9557 = vst [vmem:[#allocation23_spill] sm:$0xff] %v8776_v26  ;;  %5283 = vmatprep.mubr.bf16.mxu1 %v6510_v8  ;;  %v2734_v10 = vshrl.u32 %v2400_v45, 16  ;;  %v2740_v33 = vshll.u32 %v2401_v57, 16  ;;  %v2723_v5 = vrot.slane %v2721_v22, 4  ;;  %v3690_v7 = vshrl.u32 %v3347_v2, 16  ;;  %v8798_v50 = vpop.f32.mrb[43].mxu1 }
 0x2b3   : > { %9558 = vst [vmem:[#allocation24_spill] sm:$0xff] %v8790_v17  ;;  %v2726_v35 = vrot.slane %v2724_v15, 5  ;;  %v2732_v19 = vrot.slane %v2730_v12, 5  ;;  %5444 = vmatprep.mubr.bf16.mxu0 %v6542_v53  ;;  %v3693_v39 = vshll.u32 %v3347_v2, 16  ;;  %v3699_v8 = vshll.u32 %v3348_v59, 16 }
 0x2b4   : > { %v2736_v3 = vrot.slane %v2734_v10, 4  ;;  %v2742_v54 = vrot.slane %v2740_v33, 5  ;;  %5445 = vmatmul.mubr.bf16.gmra.mrb[132].mxu0 %v7557_v28  ;;  %v3692_v57 = vrot.slane %v3690_v7, 4  ;;  %v3703_v56 = vshrl.u32 %v3348_v59, 16  ;;  %v2916_v17 = vld [vmem:[#allocation2 + $0xbc] sm:$0x1] }
 0x2b5   : > { %v2727_v45 = vor.u32 %v2726_v35, %v2723_v5  ;;  %v3709_v18 = vshll.u32 %v3349_v61, 16  ;;  %v3695_v22 = vrot.slane %v3693_v39, 5  ;;  %v3701_v15 = vrot.slane %v3699_v8, 5  ;;  %v2402_v35 = vld [vmem:[#allocation2 + $0xb4] sm:$0xf] }
 0x2b6   : > { %v2737_v26 = vor.u32 %v2736_v3, %v2732_v19  ;;  %v6495_v12 = vrot.slane %v2914_v52, 9  ;;  %v3705_v1 = vrot.slane %v3703_v56, 4  ;;  %v3068_v53 = vrot.slane %v2915_v14, 5  ;;  %v2403_v14 = vld [vmem:[#allocation2 + $0xb8] sm:$0xf] }
 0x2b7   : > { %v2728_v20 = vrot.slane %v2727_v45, 4  ;;  %v3711_v29 = vrot.slane %v3709_v18, 5  ;;  %v3696_v33 = vor.u32 %v3695_v22, %v3692_v57  ;;  %v3071_v2 = vrot.slane %v2916_v17, 5  ;;  %v8802_v28 = vpop.f32.mrb[44].mxu0  ;;  %v2404_v8 = vld [vmem:[#allocation2 + $0xbc] sm:$0x1] }
 0x2b8   : > { %v2738_v10 = vrot.slane %v2737_v26, 4  ;;  %v6841_v23 = vadd.f32 %v8670_v63, %v8666_v58  ;;  %v3706_v61 = vor.u32 %v3705_v1, %v3701_v15  ;;  %v3069_v5 = vsel %vm8139_vm5, %v6495_v12, %v3068_v53  ;;  %v8808_v7 = vpop.f32.mrb[45].mxu0  ;;  %v2918_v57 = vld [vmem:[#allocation2 + $0xc4] sm:$0xf] }
 0x2b9   : > { %v2733_v59 = vsel %vm8120_vm2, %v2728_v20, %v2732_v19  ;;  %v3070_v52 = vrot.slane %v3068_v53, 4  ;;  %v3697_v17 = vrot.slane %v3696_v33, 4  ;;  %v6729_v58 = vadd.f32 %v8694_v42, %v8688_v43  ;;  %v8816_v20 = vpop.f32.mrb[46].mxu0  ;;  %v2919_v53 = vld [vmem:[#allocation2 + $0xc8] sm:$0x1] }
 0x2ba   : > { %v2743_v26 = vsel %vm8120_vm2, %v2738_v10, %v2742_v54  ;;  %v6844_v63 = vadd.f32 %v8682_v21, %v8678_v16  ;;  %v3707_v19 = vrot.slane %v3706_v61, 4  ;;  %v6732_v39 = vadd.f32 %v8702_v48, %v8700_v37  ;;  %v8822_v54 = vpop.f32.mrb[47].mxu0  ;;  %v2917_v21 = vld [vmem:[#allocation2 + $0xc0] sm:$0xe] }
 0x2bb   : > { %v6478_v1 = vcombine.low %v2733_v59, %v2743_v26  ;;  %v3072_v3 = vsel %vm8139_vm5, %v3070_v52, %v3071_v2  ;;  %v3702_v43 = vsel %vm8120_vm2, %v3697_v17, %v3701_v15  ;;  %v8826_v45 = vadd.f32 %v6841_v23, %v6729_v58  ;;  %v8828_v56 = vpop.f32.mrb[44].mxu1  ;;  %v7558_v37 = vld [vmem:[#allocation2 + $0xc0] sm:$0xff]   ;;  %v7563_v58 = vld [vmem:[#allocation10 + $0x10] sm:$0xff]  }
 0x2bc   : > { %v6511_v42 = vcombine.low %v3069_v5, %v3072_v3  ;;  %v2745_v16 = vshrl.u32 %v2402_v35, 16  ;;  %v3712_v18 = vsel %vm8120_vm2, %v3707_v19, %v3711_v29  ;;  %v8832_v22 = vadd.f32 %v6844_v63, %v6732_v39  ;;  %v8834_v10 = vpop.f32.mrb[45].mxu1  ;;  %v2405_v59 = vld [vmem:[#allocation2 + $0xc0] sm:$0xf]  ;;  %7289 = vmatprep.subr.bf16.mxu0 %v7563_v58 }
 0x2bd   : > { %5284 = vmatmul.mubr.bf16.gmra.mrb[132].mxu1 %v6478_v1  ;;  %v2748_v48 = vshll.u32 %v2402_v35, 16  ;;  %v2754_v12 = vshll.u32 %v2403_v14, 16  ;;  %v6543_v15 = vcombine.low %v3702_v43, %v3712_v18  ;;  %v2758_v33 = vshrl.u32 %v2403_v14, 16  ;;  %v8836_v61 = vpop.f32.mrb[46].mxu1  ;;  %7290 = vmatpush3.bf16.msra.mxu0 %v7563_v58 }
 0x2be   : > { %5291 = vmatprep.mubr.bf16.mxu1 %v6511_v42  ;;  %v2747_v23 = vrot.slane %v2745_v16, 4  ;;  %v2764_v2 = vshll.u32 %v2404_v8, 16  ;;  %v6496_v26 = vrot.slane %v2917_v21, 9  ;;  %v3075_v29 = vrot.slane %v2918_v57, 5  ;;  %v8838_v17 = vpop.f32.mrb[47].mxu1 }
 0x2bf   : > { %v2750_v5 = vrot.slane %v2748_v48, 5  ;;  %v2756_v52 = vrot.slane %v2754_v12, 5  ;;  %5452 = vmatprep.mubr.bf16.mxu0 %v6543_v15  ;;  %v2760_v35 = vrot.slane %v2758_v33, 4  ;;  %v3078_v1 = vrot.slane %v2919_v53, 5  ;;  %v2406_v21 = vld [vmem:[#allocation2 + $0xc4] sm:$0xf] }
 0x2c0   : > { %v2766_v63 = vrot.slane %v2764_v2, 5  ;;  %v6847_v19 = vadd.f32 %v8708_v49, %v8704_v27  ;;  %5453 = vmatmul.mubr.bf16.gmra.mrb[136].mxu0 %v7558_v37  ;;  %v3076_v3 = vsel %vm8139_vm5, %v6496_v26, %v3075_v29  ;;  %v3077_v39 = vrot.slane %v3075_v29, 4  ;;  %v2407_v57 = vld [vmem:[#allocation2 + $0xc8] sm:$0x1]  ;;  %v3817_v26 = vld [vmem:[#allocation2 + $0x18] sm:$0xe] }
 0x2c1   : > { %v2751_v14 = vor.u32 %v2750_v5, %v2747_v23  ;;  %v6735_v8 = vadd.f32 %v8714_v32, %v8706_v34  ;;  %v2761_v43 = vor.u32 %v2760_v35, %v2756_v52  ;;  %v6850_v42 = vadd.f32 %v8724_v46, %v8716_v36  ;;  %v3350_v34 = vld [vmem:[#allocation2 + $0xcc] sm:$0xf]  ;;  %v3351_v32 = vld [vmem:[#allocation2 + $0xd0] sm:$0xf]  ;;  %v3352_v46 = vld [vmem:[#allocation2 + $0xd4] sm:$0x1] }
 0x2c2   : > { %v6738_v16 = vadd.f32 %v8732_v31, %v8722_v51  ;;  %v2769_v27 = vshrl.u32 %v2405_v59, 16  ;;  %v3079_v18 = vsel %vm8139_vm5, %v3077_v39, %v3078_v1  ;;  %v2772_v48 = vshll.u32 %v2405_v59, 16  ;;  %v8856_v51 = vpop.f32.mrb[48].mxu0 }
 0x2c3   : > { %v2752_v49 = vrot.slane %v2751_v14, 4  ;;  %v8852_v37 = vadd.f32 %v6847_v19, %v6735_v8  ;;  %v2762_v12 = vrot.slane %v2761_v43, 4  ;;  %v6512_v53 = vcombine.low %v3076_v3, %v3079_v18  ;;  %v8858_v31 = vpop.f32.mrb[48].mxu1  ;;  %v8862_v59 = vpop.f32.mrb[49].mxu0 }
 0x2c4   : > { %v8854_v15 = vadd.f32 %v6850_v42, %v6738_v16  ;;  %v2771_v36 = vrot.slane %v2769_v27, 4  ;;  %v2774_v33 = vrot.slane %v2772_v48, 5  ;;  %v2778_v2 = vshll.u32 %v2406_v21, 16  ;;  %v8864_v29 = vpop.f32.mrb[49].mxu1  ;;  %v8868_v14 = vpop.f32.mrb[50].mxu0 }
 0x2c5   : > { %9559 = vst [vmem:[#allocation25_spill] sm:$0xff] %v8852_v37  ;;  %v2757_v23 = vsel %vm8120_vm2, %v2752_v49, %v2756_v52  ;;  %v2782_v5 = vshrl.u32 %v2406_v21, 16  ;;  %v2767_v58 = vsel %vm8120_vm2, %v2762_v12, %v2766_v63  ;;  %v2788_v35 = vshll.u32 %v2407_v57, 16  ;;  %v8870_v3 = vpop.f32.mrb[50].mxu1  ;;  %v3818_v42 = vld [vmem:[#allocation2 + $0x1c] sm:$0xf] }
 0x2c6   : > { %9560 = vst [vmem:[#allocation26_spill] sm:$0xff] %v8854_v15  ;;  %v3714_v1 = vshrl.u32 %v3350_v34, 16  ;;  %v3717_v19 = vshll.u32 %v3350_v34, 16  ;;  %v6479_v39 = vcombine.low %v2757_v23, %v2767_v58  ;;  %v2775_v52 = vor.u32 %v2774_v33, %v2771_v36  ;;  %v8872_v16 = vpop.f32.mrb[51].mxu0  ;;  %v8874_v21 = vpop.f32.mrb[51].mxu1 }
 0x2c7   : > { %v2780_v8 = vrot.slane %v2778_v2, 5  ;;  %v2784_v43 = vrot.slane %v2782_v5, 4  ;;  %v2790_v27 = vrot.slane %v2788_v35, 5  ;;  %v3723_v63 = vshll.u32 %v3351_v32, 16  ;;  %v3819_v15 = vld [vmem:[#allocation2 + $0x20] sm:$0x1] }
 0x2c8   : > { %v3716_v49 = vrot.slane %v3714_v1, 4  ;;  %v3719_v18 = vrot.slane %v3717_v19, 5  ;;  %5292 = vmatmul.mubr.bf16.gmra.mrb[136].mxu1 %v6479_v39  ;;  %v2776_v57 = vrot.slane %v2775_v52, 4  ;;  %v3727_v34 = vshrl.u32 %v3351_v32, 16  ;;  %v3820_v1 = vld [vmem:[#allocation2 + $0x24] sm:$0xe] }
 0x2c9   : > { %v2785_v48 = vor.u32 %v2784_v43, %v2780_v8  ;;  %v3733_v12 = vshll.u32 %v3352_v46, 16  ;;  %5299 = vmatprep.mubr.bf16.mxu1 %v6512_v53  ;;  %v3725_v36 = vrot.slane %v3723_v63, 5  ;;  %v6545_v33 = vrot.slane %v3817_v26, 9  ;;  %v3821_v46 = vld [vmem:[#allocation2 + $0x28] sm:$0xf] }
 0x2ca   : > { %v3720_v23 = vor.u32 %v3719_v18, %v3716_v49  ;;  %v3915_v2 = vrot.slane %v3818_v42, 5  ;;  %v2781_v5 = vsel %vm8120_vm2, %v2776_v57, %v2780_v8  ;;  %v3729_v37 = vrot.slane %v3727_v34, 4  ;;  %v3822_v42 = vld [vmem:[#allocation2 + $0x2c] sm:$0x1]  ;;  %v3823_v49 = vld [vmem:[#allocation2 + $0x30] sm:$0xe] }
 0x2cb   : > { %v2786_v58 = vrot.slane %v2785_v48, 4  ;;  %v3735_v35 = vrot.slane %v3733_v12, 5  ;;  %v3918_v32 = vrot.slane %v3819_v15, 5  ;;  %v6853_v26 = vadd.f32 %v8748_v0, %v8744_v55  ;;  %v3825_v48 = vld [vmem:[#allocation2 + $0x38] sm:$0x1] }
 0x2cc   : > { %v3721_v19 = vrot.slane %v3720_v23, 4  ;;  %v3916_v39 = vsel %vm8139_vm5, %v6545_v33, %v3915_v2  ;;  %v3917_v52 = vrot.slane %v3915_v2, 4  ;;  %v3730_v43 = vor.u32 %v3729_v37, %v3725_v36  ;;  %v8886_v18 = vpop.f32.mrb[52].mxu0 }
 0x2cd   : > { %v2791_v53 = vsel %vm8120_vm2, %v2786_v58, %v2790_v27  ;;  %v6741_v8 = vadd.f32 %v8750_v62, %v8746_v44  ;;  %v6856_v37 = vadd.f32 %v8756_v13, %v8752_v60  ;;  %v3824_v27 = vld [vmem:[#allocation2 + $0x34] sm:$0xf]  ;;  %v8894_v55 = vpop.f32.mrb[53].mxu0  ;;  %v6744_v34 = vadd.f32 %v8758_v24, %v8754_v4  ;;  %v7560_v58 = vld [vmem:[#allocation2 + $0xcc] sm:$0xff]   ;;  %v3827_v4 = vld [vmem:[#allocation2 + $0x40] sm:$0xf] }
 0x2ce   : > { %v6480_v63 = vcombine.low %v2781_v5, %v2791_v53  ;;  %v3726_v57 = vsel %vm8120_vm2, %v3721_v19, %v3725_v36  ;;  %v3919_v15 = vsel %vm8139_vm5, %v3917_v52, %v3918_v32  ;;  %v3731_v0 = vrot.slane %v3730_v43, 4  ;;  %v8900_v12 = vpop.f32.mrb[54].mxu0 }
 0x2cf   : > { %v6561_v44 = vcombine.low %v3916_v39, %v3919_v15  ;;  %v8896_v62 = vadd.f32 %v6853_v26, %v6741_v8  ;;  %v6546_v23 = vrot.slane %v3820_v1, 9  ;;  %v3922_v36 = vrot.slane %v3821_v46, 5  ;;  %v8902_v5 = vpop.f32.mrb[52].mxu1  ;;  %v8904_v60 = vpop.f32.mrb[55].mxu0  ;;  %v3826_v8 = vld [vmem:[#allocation2 + $0x3c] sm:$0xe] }
 0x2d0   : > { %v3925_v33 = vrot.slane %v3822_v42, 5  ;;  %v6547_v2 = vrot.slane %v3823_v49, 9  ;;  %5300 = vmatmul.mubr.bf16.gmra.mrb[140].mxu1 %v6480_v63  ;;  %v3736_v13 = vsel %vm8120_vm2, %v3731_v0, %v3735_v35  ;;  %v8908_v19 = vadd.f32 %v6856_v37, %v6744_v34  ;;  %v8910_v24 = vpop.f32.mrb[53].mxu1  ;;  %v3828_v42 = vld [vmem:[#allocation2 + $0x44] sm:$0x1] }
 0x2d1   : > { %v3929_v39 = vrot.slane %v3824_v27, 5  ;;  %v3932_v52 = vrot.slane %v3825_v48, 5  ;;  %v6544_v1 = vcombine.low %v3726_v57, %v3736_v13  ;;  %7253 = vmatprep.mubr.bf16.mxu1 %v6561_v44  ;;  %v3924_v32 = vrot.slane %v3922_v36, 4  ;;  %v8914_v53 = vpop.f32.mrb[54].mxu1  ;;  %v3830_v15 = vld [vmem:[#allocation2 + $0x4c] sm:$0xf] }
 0x2d2   : > { %v6859_v46 = vadd.f32 %v8782_v9, %v8774_v38  ;;  %v3923_v41 = vsel %vm8139_vm5, %v6546_v23, %v3922_v36  ;;  %v6747_v43 = vadd.f32 %v8792_v40, %v8786_v11  ;;  %v6862_v26 = vadd.f32 %v8794_v25, %v8788_v30  ;;  %v8922_v49 = vpop.f32.mrb[55].mxu1  ;;  %v7564_v11 = vld [vmem:[#allocation10 + $0x18] sm:$0xff]   ;;  %v3829_v25 = vld [vmem:[#allocation2 + $0x48] sm:$0xe] }
 0x2d3   : > { %v3931_v35 = vrot.slane %v3929_v39, 4  ;;  %5460 = vmatprep.mubr.bf16.mxu0 %v6544_v1  ;;  %v3926_v38 = vsel %vm8139_vm5, %v3924_v32, %v3925_v33  ;;  %v3930_v9 = vsel %vm8139_vm5, %v6547_v2, %v3929_v39  ;;  %v6750_v63 = vadd.f32 %v8798_v50, %v8796_v47  ;;  %v3831_v44 = vld [vmem:[#allocation2 + $0x50] sm:$0x1]  ;;  %7291 = vmatprep.subr.bf16.mxu0 %v7564_v11 }
 0x2d4   : > { %v3936_v57 = vrot.slane %v3827_v4, 5  ;;  %5461 = vmatmul.mubr.bf16.gmra.mrb[140].mxu0 %v7560_v58  ;;  %v8932_v40 = vadd.f32 %v6859_v46, %v6747_v43  ;;  %v6562_v37 = vcombine.low %v3923_v41, %v3926_v38  ;;  %v6548_v48 = vrot.slane %v3826_v8, 9  ;;  %v3833_v58 = vld [vmem:[#allocation2 + $0x58] sm:$0xf]  ;;  %v3834_v8 = vld [vmem:[#allocation2 + $0x5c] sm:$0x1] }
 0x2d5   : > { %v3933_v30 = vsel %vm8139_vm5, %v3931_v35, %v3932_v52  ;;  %v8934_v27 = vadd.f32 %v6862_v26, %v6750_v63  ;;  %v3939_v0 = vrot.slane %v3828_v42, 5  ;;  %v3943_v47 = vrot.slane %v3830_v15, 5  ;;  %7292 = vmatpush3.bf16.msra.mxu0 %v7564_v11  ;;  %v3832_v26 = vld [vmem:[#allocation2 + $0x54] sm:$0xe]  ;;  %v3835_v11 = vld [vmem:[#allocation2 + $0x60] sm:$0xe] }
 0x2d6   : > { %v6563_v34 = vcombine.low %v3930_v9, %v3933_v30  ;;  %v3938_v23 = vrot.slane %v3936_v57, 4  ;;  %v6865_v50 = vadd.f32 %v8808_v7, %v8802_v28  ;;  %v6549_v36 = vrot.slane %v3829_v25, 9  ;;  %v8944_v39 = vpop.f32.mrb[56].mxu0  ;;  %v3837_v30 = vld [vmem:[#allocation2 + $0x68] sm:$0x1] }
 0x2d7   : > { %v6753_v33 = vadd.f32 %v8834_v10, %v8828_v56  ;;  %v6868_v2 = vadd.f32 %v8822_v54, %v8816_v20  ;;  %v6756_v13 = vadd.f32 %v8838_v17, %v8836_v61  ;;  %v8946_v52 = vpop.f32.mrb[56].mxu1  ;;  %v3945_v4 = vrot.slane %v3943_v47, 4  ;;  %v8948_v28 = vpop.f32.mrb[57].mxu0  ;;  %v3836_v20 = vld [vmem:[#allocation2 + $0x64] sm:$0xf] }
 0x2d8   : > { %7254 = vmatmul.mubr.bf16.vlgmr.msra.gmra.mrb[144].mxu1 %v6562_v37  ;;  %v3946_v1 = vrot.slane %v3831_v44, 5  ;;  %v8950_v7 = vpop.f32.mrb[57].mxu1  ;;  %v6884_v54 = vpop.f32.mrb[58].mxu0  ;;  %v3937_v17 = vsel %vm8139_vm5, %v6548_v48, %v3936_v57  ;;  %v3940_v32 = vsel %vm8139_vm5, %v3938_v23, %v3939_v0  ;;  %v3950_v46 = vrot.slane %v3833_v58, 5 }
 0x2d9   : > { %7257 = vmatprep.mubr.bf16.mxu1 %v6563_v34  ;;  %v8952_v56 = vadd.f32 %v6865_v50, %v6753_v33  ;;  %v8954_v10 = vadd.f32 %v6868_v2, %v6756_v13  ;;  %v8956_v61 = vpop.f32.mrb[58].mxu1  ;;  %v6885_v41 = vpop.f32.mrb[59].mxu0  ;;  %v3944_v43 = vsel %vm8139_vm5, %v6549_v36, %v3943_v47  ;;  %v6871_v42 = vadd.f32 %v8862_v59, %v8856_v51  ;;  %v3839_v34 = vld [vmem:[#allocation2 + $0x70] sm:$0xf] }
 0x2da   : > { %v6773_v35 = vpop.f32.mrb[59].mxu1  ;;  %v3947_v38 = vsel %vm8139_vm5, %v3945_v4, %v3946_v1  ;;  %v3957_v9 = vrot.slane %v3836_v20, 5  ;;  %v6759_v63 = vadd.f32 %v8864_v29, %v8858_v31  ;;  %v6874_v57 = vadd.f32 %v8872_v16, %v8868_v14  ;;  %v3840_v1 = vld [vmem:[#allocation2 + $0x74] sm:$0x1] }
 0x2db   : > { %v6564_v15 = vcombine.low %v3937_v17, %v3940_v32  ;;  %v6762_v25 = vadd.f32 %v8874_v21, %v8870_v3  ;;  %v6550_v37 = vrot.slane %v3832_v26, 9  ;;  %v3952_v48 = vrot.slane %v3950_v46, 4  ;;  %v8980_v3 = vld [vmem:[#allocation2 + $0x7c] sm:$0xf] }
 0x2dc   : > { %v3953_v0 = vrot.slane %v3834_v8, 5  ;;  %v8974_v51 = vadd.f32 %v6871_v42, %v6759_v63  ;;  %v6565_v59 = vcombine.low %v3944_v43, %v3947_v38  ;;  %v6551_v31 = vrot.slane %v3835_v11, 9  ;;  %v3843_v43 = vld [vmem:[#allocation2 + $0x80] sm:$0x1]  ;;  %v3845_v11 = vld [vmem:[#allocation2 + $0x88] sm:$0xf] }
 0x2dd   : > { %v8976_v44 = vadd.f32 %v6874_v57, %v6762_v25  ;;  %v3959_v29 = vrot.slane %v3957_v9, 4  ;;  %v3960_v14 = vrot.slane %v3837_v30, 5  ;;  %v6877_v16 = vadd.f32 %v8894_v55, %v8886_v18  ;;  %v3838_v55 = vld [vmem:[#allocation2 + $0x6c] sm:$0xe]  ;;  %v7565_v57 = vld [vmem:[#allocation10 + $0x20] sm:$0xff]  }
 0x2de   : > { %v6765_v21 = vadd.f32 %v8910_v24, %v8902_v5  ;;  %v6880_v50 = vadd.f32 %v8904_v60, %v8900_v12  ;;  %v6768_v36 = vadd.f32 %v8922_v49, %v8914_v53  ;;  %v3951_v2 = vsel %vm8139_vm5, %v6550_v37, %v3950_v46  ;;  %v3841_v46 = vld [vmem:[#allocation2 + $0x78] sm:$0xe]  ;;  %7293 = vmatprep.subr.bf16.mxu0 %v7565_v57 }
 0x2df   : > { %v3954_v18 = vsel %vm8139_vm5, %v3952_v48, %v3953_v0  ;;  %v3964_v13 = vrot.slane %v3839_v34, 5  ;;  %v3958_v60 = vsel %vm8139_vm5, %v6551_v31, %v3957_v9  ;;  %v3961_v24 = vsel %vm8139_vm5, %v3959_v29, %v3960_v14  ;;  %7294 = vmatpush3.bf16.msra.mxu0 %v7565_v57 }
 0x2e0   : > { %v6887_v23 = vpop.f32.mrb[60].mxu0  ;;  %7258 = vmatmul.mubr.bf16.gmra.mrb[148].mxu1 %v6564_v15  ;;  %v8992_v20 = vadd.f32 %v6877_v16, %v6765_v21  ;;  %v8994_v5 = vadd.f32 %v6880_v50, %v6768_v36  ;;  %v3971_v53 = vrot.slane %v8980_v3, 5  ;;  %v6566_v17 = vcombine.low %v3951_v2, %v3954_v18  ;;  %v3847_v16 = vld [vmem:[#allocation2 + $0x90] sm:$0xe]  ;;  %v3849_v3 = vld [vmem:[#allocation2 + $0x98] sm:$0x1] }
 0x2e1   : > { %v6888_v47 = vpop.f32.mrb[61].mxu0  ;;  %7261 = vmatprep.mubr.bf16.mxu1 %v6565_v59  ;;  %v6552_v32 = vrot.slane %v3838_v55, 9  ;;  %v6883_v26 = vadd.f32 %v8948_v28, %v8944_v39  ;;  %v3966_v42 = vrot.slane %v3964_v13, 4  ;;  %v3967_v38 = vrot.slane %v3840_v1, 5  ;;  %v3848_v59 = vld [vmem:[#allocation2 + $0x94] sm:$0xf] }
 0x2e2   : > { %v6890_v33 = vpop.f32.mrb[62].mxu0  ;;  %v6775_v58 = vpop.f32.mrb[60].mxu1  ;;  %v6771_v63 = vadd.f32 %v8950_v7, %v8946_v52  ;;  %v6886_v9 = vadd.f32 %v6885_v41, %v6884_v54  ;;  %v6567_v15 = vcombine.low %v3958_v60, %v3961_v24  ;;  %v6774_v30 = vadd.f32 %v6773_v35, %v8956_v61  ;;  %v3844_v28 = vld [vmem:[#allocation2 + $0x84] sm:$0xe]  ;;  %v3846_v61 = vld [vmem:[#allocation2 + $0x8c] sm:$0x1] }
 0x2e3   : > { %v6891_v4 = vpop.f32.mrb[63].mxu0  ;;  %v6776_v12 = vpop.f32.mrb[61].mxu1  ;;  %v6553_v37 = vrot.slane %v3841_v46, 9  ;;  %v3973_v48 = vrot.slane %v3971_v53, 4  ;;  %v3974_v0 = vrot.slane %v3843_v43, 5  ;;  %v3965_v7 = vsel %vm8139_vm5, %v6552_v32, %v3964_v13 }
 0x2e4   : > { %v6778_v49 = vpop.f32.mrb[62].mxu1  ;;  %v9006_v34 = vadd.f32 %v6883_v26, %v6771_v63  ;;  %v9008_v31 = vadd.f32 %v6886_v9, %v6774_v30  ;;  %v3968_v54 = vsel %vm8139_vm5, %v3966_v42, %v3967_v38  ;;  %v3978_v41 = vrot.slane %v3845_v11, 5  ;;  %v3854_v38 = vld [vmem:[#allocation2 + $0xac] sm:$0xf] }
 0x2e5   : > { %v6779_v8 = vpop.f32.mrb[63].mxu1  ;;  %v6889_v35 = vadd.f32 %v6888_v47, %v6887_v23  ;;  %v3985_v21 = vrot.slane %v3848_v59, 5  ;;  %v6777_v50 = vadd.f32 %v6776_v12, %v6775_v58  ;;  %v6892_v36 = vadd.f32 %v6891_v4, %v6890_v33 }
 0x2e6   : > { %v6780_v2 = vadd.f32 %v6779_v8, %v6778_v49  ;;  %v3972_v55 = vsel %vm8139_vm5, %v6553_v37, %v3971_v53  ;;  %v3975_v13 = vsel %vm8139_vm5, %v3973_v48, %v3974_v0  ;;  %v6568_v60 = vcombine.low %v3965_v7, %v3968_v54  ;;  %v3851_v53 = vld [vmem:[#allocation2 + $0xa0] sm:$0xf] }
 0x2e7   : > { %v9018_v24 = vadd.f32 %v6889_v35, %v6777_v50  ;;  %v3981_v32 = vrot.slane %v3846_v61, 5  ;;  %v6555_v46 = vrot.slane %v3847_v16, 9  ;;  %v3988_v58 = vrot.slane %v3849_v3, 5 }
 0x2e8   : > { %v6893_v25 = vpop.f32.mrb[64].mxu0  ;;  %7262 = vmatmul.mubr.bf16.gmra.mrb[152].mxu1 %v6566_v17  ;;  %v9020_v23 = vadd.f32 %v6892_v36, %v6780_v2  ;;  %v6554_v17 = vrot.slane %v3844_v28, 9  ;;  %v6569_v33 = vcombine.low %v3972_v55, %v3975_v13  ;;  %v3980_v4 = vrot.slane %v3978_v41, 4  ;;  %v3850_v28 = vld [vmem:[#allocation2 + $0x9c] sm:$0xe] }
 0x2e9   : > { %v6894_v39 = vpop.f32.mrb[65].mxu0  ;;  %7265 = vmatprep.mubr.bf16.mxu1 %v6567_v15  ;;  %v3987_v12 = vrot.slane %v3985_v21, 4  ;;  %v3986_v15 = vsel %vm8139_vm5, %v6555_v46, %v3985_v21  ;;  %v3992_v0 = vrot.slane %v3851_v53, 5  ;;  %v3999_v7 = vrot.slane %v3854_v38, 5 }
 0x2ea   : > { %v6896_v52 = vpop.f32.mrb[66].mxu0  ;;  %v6781_v29 = vpop.f32.mrb[64].mxu1  ;;  %v6895_v49 = vadd.f32 %v6894_v39, %v6893_v25  ;;  %v3979_v57 = vsel %vm8139_vm5, %v6554_v17, %v3978_v41  ;;  %v3982_v37 = vsel %vm8139_vm5, %v3980_v4, %v3981_v32  ;;  %v6556_v2 = vrot.slane %v3850_v28, 9  ;;  %v3857_v17 = vld [vmem:[#allocation2 + $0xb8] sm:$0xf] }
 0x2eb   : > { %v6897_v14 = vpop.f32.mrb[67].mxu0  ;;  %v6782_v18 = vpop.f32.mrb[65].mxu1  ;;  %v3989_v48 = vsel %vm8139_vm5, %v3987_v12, %v3988_v58  ;;  %v6570_v3 = vcombine.low %v3979_v57, %v3982_v37  ;;  %v3860_v58 = vld [vmem:[#allocation2 + $0xc4] sm:$0xf]  ;;  %v3858_v57 = vld [vmem:[#allocation2 + $0xbc] sm:$0x1] }
 0x2ec   : > { %v6784_v1 = vpop.f32.mrb[66].mxu1  ;;  %v6783_v26 = vadd.f32 %v6782_v18, %v6781_v29  ;;  %v6898_v8 = vadd.f32 %v6897_v14, %v6896_v52  ;;  %v3852_v52 = vld [vmem:[#allocation2 + $0xa4] sm:$0x1]  ;;  %v3853_v29 = vld [vmem:[#allocation2 + $0xa8] sm:$0xe]  ;;  %v6571_v36 = vcombine.low %v3986_v15, %v3989_v48  ;;  %v3994_v18 = vrot.slane %v3992_v0, 4 }
 0x2ed   : > { %v6785_v47 = vpop.f32.mrb[67].mxu1  ;;  %v3855_v14 = vld [vmem:[#allocation2 + $0xb0] sm:$0x1]  ;;  %v3995_v55 = vrot.slane %v3852_v52, 5  ;;  %v4013_v15 = vrot.slane %v3860_v58, 5 }
 0x2ee   : > { %v6786_v63 = vadd.f32 %v6785_v47, %v6784_v1  ;;  %v9026_v11 = vadd.f32 %v6895_v49, %v6783_v26  ;;  %v6557_v1 = vrot.slane %v3853_v29, 9  ;;  %v4002_v47 = vrot.slane %v3855_v14, 5  ;;  %v3859_v37 = vld [vmem:[#allocation2 + $0xc0] sm:$0xe]  ;;  %v3861_v48 = vld [vmem:[#allocation2 + $0xc8] sm:$0x1] }
 0x2ef   : > { %v3996_v53 = vsel %vm8139_vm5, %v3994_v18, %v3995_v55  ;;  %v4006_v26 = vrot.slane %v3857_v17, 5  ;;  %v3863_v28 = vld [vmem:[#allocation2 + $0xd0] sm:$0xf]  ;;  %v4009_v29 = vrot.slane %v3858_v57, 5 }
 0x2f0   : > { %v6899_v43 = vpop.f32.mrb[68].mxu0  ;;  %7266 = vmatmul.mubr.bf16.gmra.mrb[156].mxu1 %v6568_v60  ;;  %v9032_v59 = vadd.f32 %v6898_v8, %v6786_v63  ;;  %v4001_v60 = vrot.slane %v3999_v7, 4  ;;  %v4000_v38 = vsel %vm8139_vm5, %v6557_v1, %v3999_v7  ;;  %v4020_v18 = vrot.slane %v3863_v28, 5  ;;  %v3862_v1 = vld [vmem:[#allocation2 + $0xcc] sm:$0xe] }
 0x2f1   : > { %v6900_v42 = vpop.f32.mrb[69].mxu0  ;;  %7269 = vmatprep.mubr.bf16.mxu1 %v6569_v33  ;;  %v4008_v7 = vrot.slane %v4006_v26, 4 }
 0x2f2   : > { %v6902_v9 = vpop.f32.mrb[70].mxu0  ;;  %v6787_v30 = vpop.f32.mrb[68].mxu1  ;;  %v6901_v54 = vadd.f32 %v6900_v42, %v6899_v43  ;;  %v3993_v43 = vsel %vm8139_vm5, %v6556_v2, %v3992_v0  ;;  %v4003_v63 = vsel %vm8139_vm5, %v4001_v60, %v4002_v47  ;;  %v3864_v60 = vld [vmem:[#allocation2 + $0xd4] sm:$0x1] }
 0x2f3   : > { %v6903_v25 = vpop.f32.mrb[71].mxu0  ;;  %v6788_v39 = vpop.f32.mrb[69].mxu1  ;;  %v4010_v58 = vsel %vm8139_vm5, %v4008_v7, %v4009_v29 }
 0x2f4   : > { %v6789_v61 = vadd.f32 %v6788_v39, %v6787_v30  ;;  %v6790_v41 = vpop.f32.mrb[70].mxu1  ;;  %v6904_v35 = vadd.f32 %v6903_v25, %v6902_v9  ;;  %v3856_v9 = vld [vmem:[#allocation2 + $0xb4] sm:$0xe]  ;;  %v6572_v39 = vcombine.low %v3993_v43, %v3996_v53 }
 0x2f5   : > { %v6791_v16 = vpop.f32.mrb[71].mxu1 }
 0x2f6   : > { %v9034_v21 = vadd.f32 %v6901_v54, %v6789_v61  ;;  %v6792_v50 = vadd.f32 %v6791_v16, %v6790_v41  ;;  %v7566_v61 = vld [vmem:[#allocation10 + $0x28] sm:$0xff]   ;;  %v6573_v41 = vcombine.low %v4000_v38, %v4003_v63  ;;  %v6559_v16 = vrot.slane %v3859_v37, 9 }
 0x2f7   : > { %7295 = vmatprep.subr.bf16.mxu0 %v7566_v61  ;;  %v4023_v38 = vrot.slane %v3864_v60, 5 }
 0x2f8   : > { %v6905_v13 = vpop.f32.mrb[72].mxu0  ;;  %7270 = vmatmul.mubr.bf16.gmra.mrb[160].mxu1 %v6570_v3  ;;  %v9036_v32 = vadd.f32 %v6904_v35, %v6792_v50  ;;  %v6558_v35 = vrot.slane %v3856_v9, 9  ;;  %v4015_v3 = vrot.slane %v4013_v15, 4  ;;  %v4016_v50 = vrot.slane %v3861_v48, 5  ;;  %7296 = vmatpush3.bf16.msra.mxu0 %v7566_v61 }
 0x2f9   : > { %v6906_v46 = vpop.f32.mrb[73].mxu0  ;;  %7273 = vmatprep.mubr.bf16.mxu1 %v6571_v36 }
 0x2fa   : > { %v6907_v33 = vadd.f32 %v6906_v46, %v6905_v13  ;;  %v6908_v4 = vpop.f32.mrb[74].mxu0  ;;  %v6793_v12 = vpop.f32.mrb[72].mxu1  ;;  %v4007_v46 = vsel %vm8139_vm5, %v6558_v35, %v4006_v26 }
 0x2fb   : > { %v6909_v49 = vpop.f32.mrb[75].mxu0  ;;  %v6794_v8 = vpop.f32.mrb[73].mxu1  ;;  %v6574_v9 = vcombine.low %v4007_v46, %v4010_v58 }
 0x2fc   : > { %v6910_v42 = vadd.f32 %v6909_v49, %v6908_v4  ;;  %v6795_v30 = vadd.f32 %v6794_v8, %v6793_v12  ;;  %v6796_v25 = vpop.f32.mrb[74].mxu1  ;;  %v4014_v12 = vsel %vm8139_vm5, %v6559_v16, %v4013_v15  ;;  %v4017_v49 = vsel %vm8139_vm5, %v4015_v3, %v4016_v50  ;;  %v9561_v3 = vld [vmem:[#allocation19_spill] sm:$0xff] }
 0x2fd   : > { %v6797_v0 = vpop.f32.mrb[75].mxu1  ;;  %v6560_v8 = vrot.slane %v3862_v1, 9 }
 0x2fe   : > { %v9046_v52 = vadd.f32 %v6907_v33, %v6795_v30  ;;  %v6798_v54 = vadd.f32 %v6797_v0, %v6796_v25  ;;  %v6575_v30 = vcombine.low %v4014_v12, %v4017_v49  ;;  %v7567_v49 = vld [vmem:[#allocation10 + $0x30] sm:$0xff]  }
 0x2ff   : > { %v4021_v15 = vsel %vm8139_vm5, %v6560_v8, %v4020_v18  ;;  %7297 = vmatprep.subr.bf16.mxu0 %v7567_v49 }
 0x300   : > { %v6911_v14 = vpop.f32.mrb[76].mxu0  ;;  %7274 = vmatmul.mubr.bf16.gmra.mrb[164].mxu1 %v6572_v39  ;;  %v9048_v36 = vadd.f32 %v6910_v42, %v6798_v54  ;;  %v4022_v42 = vrot.slane %v4020_v18, 4  ;;  %7298 = vmatpush3.bf16.msra.mxu0 %v7567_v49 }
 0x301   : > { %v6912_v2 = vpop.f32.mrb[77].mxu0  ;;  %7277 = vmatprep.mubr.bf16.mxu1 %v6573_v41 }
 0x302   : > { %v6913_v55 = vadd.f32 %v6912_v2, %v6911_v14  ;;  %v6914_v13 = vpop.f32.mrb[78].mxu0  ;;  %v6799_v47 = vpop.f32.mrb[76].mxu1  ;;  %v4024_v0 = vsel %vm8139_vm5, %v4022_v42, %v4023_v38  ;;  %v9564_v38 = vld [vmem:[#allocation22_spill] sm:$0xff] }
 0x303   : > { %v6915_v17 = vpop.f32.mrb[79].mxu0  ;;  %v6800_v33 = vpop.f32.mrb[77].mxu1  ;;  %v6576_v7 = vcombine.low %v4021_v15, %v4024_v0 }
 0x304   : > { %v6916_v4 = vadd.f32 %v6915_v17, %v6914_v13  ;;  %v6801_v43 = vadd.f32 %v6800_v33, %v6799_v47  ;;  %v6802_v53 = vpop.f32.mrb[78].mxu1 }
 0x305   : > { %v6803_v63 = vpop.f32.mrb[79].mxu1 }
 0x306   : > { %v9058_v57 = vadd.f32 %v6913_v55, %v6801_v43  ;;  %v6804_v26 = vadd.f32 %v6803_v63, %v6802_v53  ;;  %v9563_v43 = vld [vmem:[#allocation21_spill] sm:$0xff] }
 0x308   : > { %v7045_v25 = vpop.f32.mrb[80].mxu0  ;;  %7278 = vmatmul.mubr.bf16.gmra.mrb[168].mxu1 %v6574_v9  ;;  %v9060_v37 = vadd.f32 %v6916_v4, %v6804_v26 }
 0x309   : > { %v7046_v48 = vpop.f32.mrb[81].mxu0  ;;  %7281 = vmatprep.mubr.bf16.mxu1 %v6575_v30 }
 0x30a   : > { %v9066_v39 = vadd.f32 %v7046_v48, %v7045_v25  ;;  %v7048_v28 = vpop.f32.mrb[82].mxu0  ;;  %v6933_v54 = vpop.f32.mrb[80].mxu1 }
 0x30b   : > { %v7049_v61 = vpop.f32.mrb[83].mxu0  ;;  %v6934_v41 = vpop.f32.mrb[81].mxu1 }
 0x30c   : > { %v9068_v35 = vadd.f32 %v7049_v61, %v7048_v28  ;;  %v6935_v29 = vadd.f32 %v6934_v41, %v6933_v54  ;;  %v6936_v14 = vpop.f32.mrb[82].mxu1  ;;  %v9565_v41 = vld [vmem:[#allocation23_spill] sm:$0xff] }
 0x30d   : > { %v6937_v16 = vpop.f32.mrb[83].mxu1 }
 0x30e   : > { %v9071_v50 = vadd.f32 %v6935_v29, %v9561_v3  ;;  %v6938_v2 = vadd.f32 %v6937_v16, %v6936_v14  ;;  %v9566_v16 = vld [vmem:[#allocation24_spill] sm:$0xff] }
 0x310   : > { %v7051_v18 = vpop.f32.mrb[84].mxu0  ;;  %7282 = vmatmul.mubr.bf16.gmra.mrb[172].mxu1 %v6576_v7  ;;  %v9074_v55 = vadd.f32 %v6938_v2, %v9562_v6 }
 0x311   : > { %v7052_v13 = vpop.f32.mrb[85].mxu0 }
 0x312   : > { %v7053_v1 = vadd.f32 %v7052_v13, %v7051_v18  ;;  %v7054_v60 = vpop.f32.mrb[86].mxu0  ;;  %v6939_v47 = vpop.f32.mrb[84].mxu1 }
 0x313   : > { %v7055_v17 = vpop.f32.mrb[87].mxu0  ;;  %v6940_v46 = vpop.f32.mrb[85].mxu1 }
 0x314   : > { %v7056_v58 = vadd.f32 %v7055_v17, %v7054_v60  ;;  %v6941_v33 = vadd.f32 %v6940_v46, %v6939_v47  ;;  %v6942_v4 = vpop.f32.mrb[86].mxu1 }
 0x315   : > { %v6943_v12 = vpop.f32.mrb[87].mxu1 }
 0x316   : > { %v5190_v53 = vadd.f32 %v6941_v33, %v9563_v43  ;;  %v6944_v8 = vadd.f32 %v6943_v12, %v6942_v4 }
 0x318   : > { %v7057_v42 = vpop.f32.mrb[88].mxu0  ;;  %v5193_v63 = vadd.f32 %v6944_v8, %v9564_v38 }
 0x319   : > { %v7058_v9 = vpop.f32.mrb[89].mxu0 }
 0x31a   : > { %v7059_v26 = vadd.f32 %v7058_v9, %v7057_v42  ;;  %v7060_v30 = vpop.f32.mrb[90].mxu0  ;;  %v6945_v25 = vpop.f32.mrb[88].mxu1 }
 0x31b   : > { %v7061_v48 = vpop.f32.mrb[91].mxu0  ;;  %v6946_v15 = vpop.f32.mrb[89].mxu1 }
 0x31c   : > { %v7062_v0 = vadd.f32 %v7061_v48, %v7060_v30  ;;  %v6947_v28 = vadd.f32 %v6946_v15, %v6945_v25  ;;  %v6948_v54 = vpop.f32.mrb[90].mxu1  ;;  %v7568_v25 = vld [vmem:[#allocation10 + $0x38] sm:$0xff]   ;;  %v9082_v48 = vadd.f32 %v7053_v1, %v5190_v53  ;;  %v9090_v53 = vadd.f32 %v7056_v58, %v5193_v63 }
 0x31d   : > { %v6949_v61 = vpop.f32.mrb[91].mxu1  ;;  %7299 = vmatprep.subr.bf16.mxu0 %v7568_v25 }
 0x31e   : > { %v5198_v7 = vadd.f32 %v6947_v28, %v9565_v41  ;;  %v6950_v29 = vadd.f32 %v6949_v61, %v6948_v54  ;;  %7300 = vmatpush3.bf16.msra.mxu0 %v7568_v25 }
 0x320   : > { %v7063_v14 = vpop.f32.mrb[92].mxu0  ;;  %v5201_v3 = vadd.f32 %v6950_v29, %v9566_v16 }
 0x321   : > { %v7064_v2 = vpop.f32.mrb[93].mxu0 }
 0x322   : > { %v7065_v18 = vadd.f32 %v7064_v2, %v7063_v14  ;;  %v7066_v6 = vpop.f32.mrb[94].mxu0 }
 0x323   : > { %v7067_v13 = vpop.f32.mrb[95].mxu0 }
 0x324   : > { %v6951_v60 = vpop.f32.mrb[92].mxu1  ;;  %v7068_v47 = vadd.f32 %v7067_v13, %v7066_v6  ;;  %v9568_v6 = vld [vmem:[#allocation26_spill] sm:$0xff] }
 0x325   : > { %v6952_v17 = vpop.f32.mrb[93].mxu1 }
 0x326   : > { %v6953_v46 = vadd.f32 %v6952_v17, %v6951_v60  ;;  %v6954_v33 = vpop.f32.mrb[94].mxu1 }
 0x327   : > { %v6955_v4 = vpop.f32.mrb[95].mxu1 }
 0x328   : > { %v5206_v12 = vadd.f32 %v6953_v46, %v8826_v45  ;;  %v6956_v49 = vadd.f32 %v6955_v4, %v6954_v33  ;;  %v7069_v43 = vpop.f32.mrb[96].mxu0  ;;  %v9567_v45 = vld [vmem:[#allocation25_spill] sm:$0xff]  ;;  %v9094_v4 = vadd.f32 %v9068_v35, %v9074_v55 }
 0x329   : > { %v7070_v42 = vpop.f32.mrb[97].mxu0 }
 0x32a   : > { %v5209_v8 = vadd.f32 %v6956_v49, %v8832_v22  ;;  %v7071_v38 = vadd.f32 %v7070_v42, %v7069_v43  ;;  %v7072_v9 = vpop.f32.mrb[98].mxu0  ;;  %v9087_v22 = vadd.f32 %v9066_v39, %v9071_v50  ;;  %v9096_v49 = vadd.f32 %v7065_v18, %v5206_v12 }
 0x32b   : > { %v7073_v30 = vpop.f32.mrb[99].mxu0  ;;  %v9098_v50 = vadd.f32 %v7059_v26, %v5198_v7 }
 0x32c   : > { %v7074_v15 = vadd.f32 %v7073_v30, %v7072_v9  ;;  %v9100_v25 = vadd.f32 %v7068_v47, %v5209_v8 }
 0x32e   : > { %v6957_v28 = vpop.f32.mrb[96].mxu1 }
 0x32f   : > { %v6958_v54 = vpop.f32.mrb[97].mxu1 }
 0x330   : > { %v6959_v61 = vadd.f32 %v6958_v54, %v6957_v28  ;;  %v6960_v41 = vpop.f32.mrb[98].mxu1  ;;  %v9103_v54 = vadd.f32 %v7062_v0, %v5201_v3 }
 0x331   : > { %v6961_v29 = vpop.f32.mrb[99].mxu1 }
 0x332   : > { %v5214_v14 = vadd.f32 %v6959_v61, %v9567_v45  ;;  %v6962_v16 = vadd.f32 %v6961_v29, %v6960_v41 }
 0x333   : > { %v7075_v2 = vpop.f32.mrb[100].mxu0 }
 0x334   : > { %v5217_v13 = vadd.f32 %v6962_v16, %v9568_v6  ;;  %v7076_v1 = vpop.f32.mrb[101].mxu0  ;;  %v9108_v7 = vadd.f32 %v7071_v38, %v5214_v14 }
 0x335   : > { %v7077_v60 = vadd.f32 %v7076_v1, %v7075_v2  ;;  %v7078_v17 = vpop.f32.mrb[102].mxu0 }
 0x336   : > { %v7079_v46 = vpop.f32.mrb[103].mxu0  ;;  %v9112_v16 = vadd.f32 %v7074_v15, %v5217_v13 }
 0x337   : > { %v7080_v33 = vadd.f32 %v7079_v46, %v7078_v17 }
 0x338   : > { %v6963_v43 = vpop.f32.mrb[100].mxu1 }
 0x339   : > { %v6964_v42 = vpop.f32.mrb[101].mxu1 }
 0x33a   : > { %v6965_v9 = vadd.f32 %v6964_v42, %v6963_v43  ;;  %v6966_v39 = vpop.f32.mrb[102].mxu1 }
 0x33b   : > { %v6967_v30 = vpop.f32.mrb[103].mxu1 }
 0x33c   : > { %v5222_v58 = vadd.f32 %v6965_v9, %v8896_v62  ;;  %v6968_v63 = vadd.f32 %v6967_v30, %v6966_v39 }
 0x33d   : > { %v7081_v28 = vpop.f32.mrb[104].mxu0 }
 0x33e   : > { %v7082_v61 = vpop.f32.mrb[105].mxu0  ;;  %v5225_v35 = vadd.f32 %v6968_v63, %v8908_v19  ;;  %v9106_v12 = vadd.f32 %v7077_v60, %v5222_v58 }
 0x33f   : > { %v7083_v55 = vadd.f32 %v7082_v61, %v7081_v28  ;;  %v7084_v18 = vpop.f32.mrb[106].mxu0 }
 0x340   : > { %v7085_v41 = vpop.f32.mrb[107].mxu0  ;;  %v9110_v8 = vadd.f32 %v7080_v33, %v5225_v35 }
 0x341   : > { %v7086_v29 = vadd.f32 %v7085_v41, %v7084_v18 }
 0x343   : > { %v6969_v26 = vpop.f32.mrb[104].mxu1 }
 0x344   : > { %v6970_v47 = vpop.f32.mrb[105].mxu1 }
 0x345   : > { %v6971_v62 = vadd.f32 %v6970_v47, %v6969_v26  ;;  %v6972_v45 = vpop.f32.mrb[106].mxu1 }
 0x346   : > { %v6973_v0 = vpop.f32.mrb[107].mxu1 }
 0x347   : > { %v5230_v3 = vadd.f32 %v6971_v62, %v8932_v40  ;;  %v6974_v19 = vadd.f32 %v6973_v0, %v6972_v45  ;;  %v7087_v2 = vpop.f32.mrb[108].mxu0 }
 0x348   : > { %v7088_v1 = vpop.f32.mrb[109].mxu0 }
 0x349   : > { %v5233_v6 = vadd.f32 %v6974_v19, %v8934_v27  ;;  %v7089_v60 = vadd.f32 %v7088_v1, %v7087_v2  ;;  %v7090_v17 = vpop.f32.mrb[110].mxu0  ;;  %v9116_v38 = vadd.f32 %v7083_v55, %v5230_v3 }
 0x34a   : > { %v7091_v46 = vpop.f32.mrb[111].mxu0 }
 0x34b   : > { %v7092_v14 = vadd.f32 %v7091_v46, %v7090_v17  ;;  %v9118_v33 = vadd.f32 %v7086_v29, %v5233_v6 }
 0x34d   : > { %v6975_v43 = vpop.f32.mrb[108].mxu1 }
 0x34e   : > { %v6976_v42 = vpop.f32.mrb[109].mxu1 }
 0x34f   : > { %v6977_v15 = vadd.f32 %v6976_v42, %v6975_v43  ;;  %v6978_v13 = vpop.f32.mrb[110].mxu1 }
 0x350   : > { %v6979_v9 = vpop.f32.mrb[111].mxu1 }
 0x351   : > { %v5238_v40 = vadd.f32 %v6977_v15, %v8952_v56  ;;  %v6980_v39 = vadd.f32 %v6979_v9, %v6978_v13  ;;  %v7093_v30 = vpop.f32.mrb[112].mxu0 }
 0x352   : > { %v7094_v58 = vpop.f32.mrb[113].mxu0 }
 0x353   : > { %v5241_v27 = vadd.f32 %v6980_v39, %v8954_v10  ;;  %v7095_v63 = vadd.f32 %v7094_v58, %v7093_v30  ;;  %v7096_v28 = vpop.f32.mrb[114].mxu0  ;;  %v9122_v61 = vadd.f32 %v7089_v60, %v5238_v40 }
 0x354   : > { %v7097_v35 = vpop.f32.mrb[115].mxu0 }
 0x355   : > { %v7098_v55 = vadd.f32 %v7097_v35, %v7096_v28  ;;  %v9124_v18 = vadd.f32 %v7092_v14, %v5241_v27 }
 0x358   : > { %v6981_v41 = vpop.f32.mrb[112].mxu1 }
 0x359   : > { %v6982_v29 = vpop.f32.mrb[113].mxu1 }
 0x35a   : > { %v6983_v26 = vadd.f32 %v6982_v29, %v6981_v41  ;;  %v6984_v47 = vpop.f32.mrb[114].mxu1 }
 0x35b   : > { %v6985_v62 = vpop.f32.mrb[115].mxu1  ;;  %v7099_v45 = vpop.f32.mrb[116].mxu0 }
 0x35c   : > { %v5246_v56 = vadd.f32 %v6983_v26, %v8974_v51  ;;  %v6986_v0 = vadd.f32 %v6985_v62, %v6984_v47  ;;  %v7100_v3 = vpop.f32.mrb[117].mxu0 }
 0x35d   : > { %v7101_v19 = vadd.f32 %v7100_v3, %v7099_v45  ;;  %v7102_v10 = vpop.f32.mrb[118].mxu0 }
 0x35e   : > { %v5249_v2 = vadd.f32 %v6986_v0, %v8976_v44  ;;  %v7103_v6 = vpop.f32.mrb[119].mxu0  ;;  %v9128_v1 = vadd.f32 %v7095_v63, %v5246_v56 }
 0x35f   : > { %v7104_v60 = vadd.f32 %v7103_v6, %v7102_v10 }
 0x360   : > { %v9130_v46 = vadd.f32 %v7098_v55, %v5249_v2 }
 0x361   : > { %v6987_v17 = vpop.f32.mrb[116].mxu1 }
 0x362   : > { %v6988_v14 = vpop.f32.mrb[117].mxu1 }
 0x363   : > { %v6989_v43 = vadd.f32 %v6988_v14, %v6987_v17  ;;  %v6990_v42 = vpop.f32.mrb[118].mxu1 }
 0x364   : > { %v6991_v15 = vpop.f32.mrb[119].mxu1 }
 0x365   : > { %v5254_v13 = vadd.f32 %v6989_v43, %v8992_v20  ;;  %v6992_v51 = vadd.f32 %v6991_v15, %v6990_v42 }
 0x366   : > { %v7105_v9 = vpop.f32.mrb[120].mxu0 }
 0x367   : > { %v5257_v40 = vadd.f32 %v6992_v51, %v8994_v5  ;;  %v7106_v39 = vpop.f32.mrb[121].mxu0  ;;  %v9134_v30 = vadd.f32 %v7101_v19, %v5254_v13 }
 0x368   : > { %v7107_v44 = vadd.f32 %v7106_v39, %v7105_v9  ;;  %v7108_v58 = vpop.f32.mrb[122].mxu0 }
 0x369   : > { %v7109_v27 = vpop.f32.mrb[123].mxu0  ;;  %v9136_v63 = vadd.f32 %v7104_v60, %v5257_v40 }
 0x36a   : > { %v7110_v28 = vadd.f32 %v7109_v27, %v7108_v58 }
 0x36b   : > { %v6993_v35 = vpop.f32.mrb[120].mxu1 }
 0x36c   : > { %v6994_v55 = vpop.f32.mrb[121].mxu1 }
 0x36d   : > { %v6995_v41 = vadd.f32 %v6994_v55, %v6993_v35  ;;  %v6996_v29 = vpop.f32.mrb[122].mxu1 }
 0x36e   : > { %v6997_v26 = vpop.f32.mrb[123].mxu1 }
 0x36f   : > { %v5262_v20 = vadd.f32 %v6995_v41, %v9006_v34  ;;  %v6998_v47 = vadd.f32 %v6997_v26, %v6996_v29 }
 0x370   : > { %v7111_v62 = vpop.f32.mrb[124].mxu0 }
 0x371   : > { %v5265_v5 = vadd.f32 %v6998_v47, %v9008_v31  ;;  %v7112_v45 = vpop.f32.mrb[125].mxu0  ;;  %v9140_v56 = vadd.f32 %v7107_v44, %v5262_v20 }
 0x372   : > { %v7113_v0 = vadd.f32 %v7112_v45, %v7111_v62  ;;  %v7114_v3 = vpop.f32.mrb[126].mxu0 }
 0x373   : > { %v7115_v19 = vpop.f32.mrb[127].mxu0  ;;  %v9142_v10 = vadd.f32 %v7110_v28, %v5265_v5 }
 0x374   : > { %v7116_v2 = vadd.f32 %v7115_v19, %v7114_v3 }
 0x379   : > { %v6999_v6 = vpop.f32.mrb[124].mxu1 }
 0x37a   : > { %v7000_v60 = vpop.f32.mrb[125].mxu1 }
 0x37b   : > { %v7001_v17 = vadd.f32 %v7000_v60, %v6999_v6  ;;  %v7002_v14 = vpop.f32.mrb[126].mxu1  ;;  %v7117_v42 = vpop.f32.mrb[128].mxu0 }
 0x37c   : > { %v7003_v43 = vpop.f32.mrb[127].mxu1  ;;  %v7118_v13 = vpop.f32.mrb[129].mxu0 }
 0x37d   : > { %v5270_v34 = vadd.f32 %v7001_v17, %v9018_v24  ;;  %v7004_v15 = vadd.f32 %v7003_v43, %v7002_v14  ;;  %v7119_v31 = vadd.f32 %v7118_v13, %v7117_v42  ;;  %v7120_v51 = vpop.f32.mrb[130].mxu0 }
 0x37e   : > { %v7121_v40 = vpop.f32.mrb[131].mxu0 }
 0x37f   : > { %v5273_v9 = vadd.f32 %v7004_v15, %v9020_v23  ;;  %v9146_v39 = vadd.f32 %v7113_v0, %v5270_v34  ;;  %v7122_v44 = vadd.f32 %v7121_v40, %v7120_v51 }
 0x381   : > { %v9148_v58 = vadd.f32 %v7116_v2, %v5273_v9 }
 0x384   : > { %v7005_v27 = vpop.f32.mrb[128].mxu1 }
 0x385   : > { %v7006_v28 = vpop.f32.mrb[129].mxu1 }
 0x386   : > { %v7007_v35 = vadd.f32 %v7006_v28, %v7005_v27  ;;  %v7008_v55 = vpop.f32.mrb[130].mxu1 }
 0x387   : > { %v7009_v41 = vpop.f32.mrb[131].mxu1  ;;  %v7123_v26 = vpop.f32.mrb[132].mxu0 }
 0x388   : > { %v5278_v29 = vadd.f32 %v7007_v35, %v9026_v11  ;;  %v7010_v24 = vadd.f32 %v7009_v41, %v7008_v55  ;;  %v7124_v20 = vpop.f32.mrb[133].mxu0 }
 0x389   : > { %v7125_v62 = vadd.f32 %v7124_v20, %v7123_v26  ;;  %v7126_v23 = vpop.f32.mrb[134].mxu0 }
 0x38a   : > { %v5281_v47 = vadd.f32 %v7010_v24, %v9032_v59  ;;  %v9152_v5 = vadd.f32 %v7119_v31, %v5278_v29  ;;  %v7127_v45 = vpop.f32.mrb[135].mxu0 }
 0x38b   : > { %v7128_v0 = vadd.f32 %v7127_v45, %v7126_v23 }
 0x38c   : > { %v9154_v3 = vadd.f32 %v7122_v44, %v5281_v47 }
 0x390   : > { %v7011_v19 = vpop.f32.mrb[132].mxu1 }
 0x391   : > { %v7012_v2 = vpop.f32.mrb[133].mxu1 }
 0x392   : > { %v7013_v6 = vadd.f32 %v7012_v2, %v7011_v19  ;;  %v7014_v60 = vpop.f32.mrb[134].mxu1 }
 0x393   : > { %v7015_v17 = vpop.f32.mrb[135].mxu1  ;;  %v7129_v43 = vpop.f32.mrb[136].mxu0 }
 0x394   : > { %v5286_v11 = vadd.f32 %v7013_v6, %v9034_v21  ;;  %v7016_v14 = vadd.f32 %v7015_v17, %v7014_v60  ;;  %v7130_v42 = vpop.f32.mrb[137].mxu0 }
 0x395   : > { %v7131_v34 = vadd.f32 %v7130_v42, %v7129_v43  ;;  %v7132_v15 = vpop.f32.mrb[138].mxu0  ;;  %v9181_v42 = vld [vmem:[%s9517_s7] ss:$0 sm:$0xff] }
 0x396   : > { %v5289_v59 = vadd.f32 %v7016_v14, %v9036_v32  ;;  %v9158_v13 = vadd.f32 %v7125_v62, %v5286_v11  ;;  %v7133_v31 = vpop.f32.mrb[139].mxu0  ;;  %v9173_v11 = vld [vmem:[%s9516_s6] ss:$0 sm:$0xff] }
 0x397   : > { %v7134_v51 = vadd.f32 %v7133_v31, %v7132_v15 }
 0x398   : > { %v9160_v9 = vadd.f32 %v7128_v0, %v5289_v59 }
 0x39b   : > { %v7017_v40 = vpop.f32.mrb[136].mxu1 }
 0x39c   : > { %v7018_v44 = vpop.f32.mrb[137].mxu1 }
 0x39d   : > { %v7019_v27 = vadd.f32 %v7018_v44, %v7017_v40  ;;  %v7020_v28 = vpop.f32.mrb[138].mxu1 }
 0x39e   : > { %v7021_v35 = vpop.f32.mrb[139].mxu1 }
 0x39f   : > { %v5294_v21 = vadd.f32 %v7019_v27, %v9046_v52  ;;  %v7022_v55 = vadd.f32 %v7021_v35, %v7020_v28 }
 0x3a1   : > { %v5297_v41 = vadd.f32 %v7022_v55, %v9048_v36  ;;  %v9164_v29 = vadd.f32 %v7131_v34, %v5294_v21 }
 0x3a3   : > { %v7023_v32 = vpop.f32.mrb[140].mxu1  ;;  %v9166_v24 = vadd.f32 %v7134_v51, %v5297_v41 }
 0x3a4   : > { %v7024_v26 = vpop.f32.mrb[141].mxu1 }
 0x3a5   : > { %v7025_v20 = vadd.f32 %v7024_v26, %v7023_v32  ;;  %v7026_v47 = vpop.f32.mrb[142].mxu1 }
 0x3a6   : > { %v7027_v62 = vpop.f32.mrb[143].mxu1 }
 0x3a7   : > { %v5302_v23 = vadd.f32 %v7025_v20, %v9058_v57  ;;  %v7135_v45 = vpop.f32.mrb[140].mxu0  ;;  %v7028_v0 = vadd.f32 %v7027_v62, %v7026_v47 }
 0x3a8   : > { %v7136_v19 = vpop.f32.mrb[141].mxu0 }
 0x3a9   : > { %v5305_v2 = vadd.f32 %v7028_v0, %v9060_v37  ;;  %v7137_v52 = vadd.f32 %v7136_v19, %v7135_v45  ;;  %v7138_v6 = vpop.f32.mrb[142].mxu0 }
 0x3aa   : > { %v7139_v60 = vpop.f32.mrb[143].mxu0 }
 0x3ab   : > { %v7140_v36 = vadd.f32 %v7139_v60, %v7138_v6  ;;  %v7255_v17 = vpop.f32.mrb[144].mxu1  ;;  %v9175_v14 = vadd.f32 %v7137_v52, %v5302_v23 }
 0x3ac   : > { %v5512_v43 = vadd.f32 %v7255_v17, %v9082_v48  ;;  %v5503_v57 = vpop.f32.mrb[145].mxu1 }
 0x3ad   : > { %v5504_v37 = vadd.f32 %v5503_v57, %v9087_v22  ;;  %v7256_v59 = vpop.f32.mrb[146].mxu1  ;;  %v9184_v34 = vadd.f32 %v7140_v36, %v5305_v2 }
 0x3ae   : > { %v5639_v15 = vmul.f32 %v9173_v11, %v5512_v43  ;;  %v5515_v31 = vadd.f32 %v7256_v59, %v9090_v53  ;;  %v5506_v51 = vpop.f32.mrb[147].mxu1 }
 0x3af   : > { %v5637_v40 = vmul.f32 %v9173_v11, %v5504_v37  ;;  %v5507_v48 = vadd.f32 %v5506_v51, %v9094_v4 }
 0x3b0   : > { %v5678_v44 = vadd.f32 %v9181_v42, %v5639_v15  ;;  %v5640_v27 = vmul.f32 %v9173_v11, %v5515_v31 }
 0x3b1   : > { %v5676_v28 = vadd.f32 %v9181_v42, %v5637_v40  ;;  %v5638_v22 = vmul.f32 %v9173_v11, %v5507_v48 }
 0x3b2   : > { %v5679_v35 = vadd.f32 %v9181_v42, %v5640_v27  ;;  %v5710_v41 = vmax.f32 %v5678_v44, 0.0 }
 0x3b3   : > { %v5677_v21 = vadd.f32 %v9181_v42, %v5638_v22  ;;  %v7259_v55 = vpop.f32.mrb[148].mxu1  ;;  %v5708_v20 = vmax.f32 %v5676_v28, 0.0 }
 0x3b4   : > { %v5711_v53 = vmax.f32 %v5679_v35, 0.0  ;;  %v5528_v32 = vadd.f32 %v7259_v55, %v9096_v49  ;;  %v5519_v26 = vpop.f32.mrb[149].mxu1 }
 0x3b5   : > { %v5709_v4 = vmax.f32 %v5677_v21, 0.0  ;;  %v5520_v47 = vadd.f32 %v5519_v26, %v9098_v50  ;;  %v7260_v62 = vpop.f32.mrb[150].mxu1 }
 0x3b6   : > { %v5741_v23 = vpack.c.bf16 %v5711_v53, %v5710_v41  ;;  %v5643_v45 = vmul.f32 %v9173_v11, %v5528_v32  ;;  %v5531_v0 = vadd.f32 %v7260_v62, %v9100_v25  ;;  %v5522_v19 = vpop.f32.mrb[151].mxu1 }
 0x3b7   : > { %v5641_v2 = vmul.f32 %v9173_v11, %v5520_v47  ;;  %v5523_v52 = vadd.f32 %v5522_v19, %v9103_v54  ;;  %v5740_v6 = vpack.c.bf16 %v5709_v4, %v5708_v20 }
 0x3b8   : > { %v5682_v60 = vadd.f32 %v9181_v42, %v5643_v45  ;;  %v5644_v49 = vmul.f32 %v9173_v11, %v5531_v0 }
 0x3b9   : > { %v5680_v36 = vadd.f32 %v9181_v42, %v5641_v2  ;;  %v5642_v50 = vmul.f32 %v9173_v11, %v5523_v52  ;;  %7301 = vmatprep.mubr.bf16.mxu0 %v5740_v6 }
 0x3ba   : > { %v5683_v17 = vadd.f32 %v9181_v42, %v5644_v49  ;;  %7302 = vmatmul.mubr.bf16.vlgmr.msra.gmra.mrb[144].mxu0 %v5741_v23  ;;  %v5714_v57 = vmax.f32 %v5682_v60, 0.0 }
 0x3bb   : > { %v5681_v25 = vadd.f32 %v9181_v42, %v5642_v50  ;;  %v7263_v43 = vpop.f32.mrb[152].mxu1  ;;  %v5712_v15 = vmax.f32 %v5680_v36, 0.0 }
 0x3bc   : > { %v5715_v37 = vmax.f32 %v5683_v17, 0.0  ;;  %v5544_v54 = vadd.f32 %v7263_v43, %v9106_v12  ;;  %v5535_v59 = vpop.f32.mrb[153].mxu1 }
 0x3bd   : > { %v5713_v31 = vmax.f32 %v5681_v25, 0.0  ;;  %v5536_v51 = vadd.f32 %v5535_v59, %v9108_v7  ;;  %v7264_v40 = vpop.f32.mrb[154].mxu1 }
 0x3be   : > { %v5647_v48 = vmul.f32 %v9173_v11, %v5544_v54  ;;  %v5547_v44 = vadd.f32 %v7264_v40, %v9110_v8  ;;  %v5538_v27 = vpop.f32.mrb[155].mxu1  ;;  %v5743_v28 = vpack.c.bf16 %v5715_v37, %v5714_v57 }
 0x3bf   : > { %v5645_v22 = vmul.f32 %v9173_v11, %v5536_v51  ;;  %v5539_v35 = vadd.f32 %v5538_v27, %v9112_v16  ;;  %v5742_v21 = vpack.c.bf16 %v5713_v31, %v5712_v15 }
 0x3c0   : > { %v5686_v55 = vadd.f32 %v9181_v42, %v5647_v48  ;;  %v5648_v12 = vmul.f32 %v9173_v11, %v5547_v44 }
 0x3c1   : > { %v5684_v41 = vadd.f32 %v9181_v42, %v5645_v22  ;;  %v5646_v7 = vmul.f32 %v9173_v11, %v5539_v35  ;;  %7305 = vmatprep.mubr.bf16.mxu0 %v5742_v21 }
 0x3c2   : > { %v5687_v53 = vadd.f32 %v9181_v42, %v5648_v12  ;;  %7306 = vmatmul.mubr.bf16.gmra.mrb[148].mxu0 %v5743_v28  ;;  %v5718_v26 = vmax.f32 %v5686_v55, 0.0 }
 0x3c3   : > { %v5685_v8 = vadd.f32 %v9181_v42, %v5646_v7  ;;  %v7267_v32 = vpop.f32.mrb[156].mxu1  ;;  %v5716_v47 = vmax.f32 %v5684_v41, 0.0 }
 0x3c4   : > { %v5719_v20 = vmax.f32 %v5687_v53, 0.0  ;;  %v5560_v16 = vadd.f32 %v7267_v32, %v9122_v61  ;;  %v5551_v4 = vpop.f32.mrb[157].mxu1 }
 0x3c5   : > { %v5717_v62 = vmax.f32 %v5685_v8, 0.0  ;;  %v5552_v23 = vadd.f32 %v5551_v4, %v9116_v38  ;;  %v7268_v45 = vpop.f32.mrb[158].mxu1 }
 0x3c6   : > { %v5651_v0 = vmul.f32 %v9173_v11, %v5560_v16  ;;  %v5563_v19 = vadd.f32 %v7268_v45, %v9124_v18  ;;  %v5554_v2 = vpop.f32.mrb[159].mxu1  ;;  %v5745_v52 = vpack.c.bf16 %v5719_v20, %v5718_v26 }
 0x3c7   : > { %v5649_v6 = vmul.f32 %v9173_v11, %v5552_v23  ;;  %v5555_v60 = vadd.f32 %v5554_v2, %v9118_v33  ;;  %v5744_v49 = vpack.c.bf16 %v5717_v62, %v5716_v47 }
 0x3c8   : > { %v5690_v36 = vadd.f32 %v9181_v42, %v5651_v0  ;;  %v5652_v61 = vmul.f32 %v9173_v11, %v5563_v19 }
 0x3c9   : > { %v5688_v50 = vadd.f32 %v9181_v42, %v5649_v6  ;;  %v5650_v38 = vmul.f32 %v9173_v11, %v5555_v60  ;;  %7309 = vmatprep.mubr.bf16.mxu0 %v5744_v49 }
 0x3ca   : > { %v5691_v17 = vadd.f32 %v9181_v42, %v5652_v61  ;;  %7310 = vmatmul.mubr.bf16.gmra.mrb[152].mxu0 %v5745_v52  ;;  %v5722_v43 = vmax.f32 %v5690_v36, 0.0 }
 0x3cb   : > { %v5689_v18 = vadd.f32 %v9181_v42, %v5650_v38  ;;  %v7271_v25 = vpop.f32.mrb[160].mxu1  ;;  %v5720_v54 = vmax.f32 %v5688_v50, 0.0 }
 0x3cc   : > { %v5723_v57 = vmax.f32 %v5691_v17, 0.0  ;;  %v5576_v33 = vadd.f32 %v7271_v25, %v9134_v30  ;;  %v5567_v37 = vpop.f32.mrb[161].mxu1 }
 0x3cd   : > { %v5721_v59 = vmax.f32 %v5689_v18, 0.0  ;;  %v5568_v15 = vadd.f32 %v5567_v37, %v9128_v1  ;;  %v7272_v31 = vpop.f32.mrb[162].mxu1 }
 0x3ce   : > { %v5655_v51 = vmul.f32 %v9173_v11, %v5576_v33  ;;  %v5579_v40 = vadd.f32 %v7272_v31, %v9136_v63  ;;  %v5570_v48 = vpop.f32.mrb[163].mxu1  ;;  %v5747_v44 = vpack.c.bf16 %v5723_v57, %v5722_v43 }
 0x3cf   : > { %v5653_v27 = vmul.f32 %v9173_v11, %v5568_v15  ;;  %v5571_v28 = vadd.f32 %v5570_v48, %v9130_v46  ;;  %v5746_v22 = vpack.c.bf16 %v5721_v59, %v5720_v54 }
 0x3d0   : > { %v5694_v35 = vadd.f32 %v9181_v42, %v5655_v51  ;;  %v5656_v30 = vmul.f32 %v9173_v11, %v5579_v40 }
 0x3d1   : > { %v5692_v21 = vadd.f32 %v9181_v42, %v5653_v27  ;;  %v5654_v1 = vmul.f32 %v9173_v11, %v5571_v28  ;;  %7313 = vmatprep.mubr.bf16.mxu0 %v5746_v22 }
 0x3d2   : > { %v5695_v55 = vadd.f32 %v9181_v42, %v5656_v30  ;;  %7314 = vmatmul.mubr.bf16.gmra.mrb[156].mxu0 %v5747_v44  ;;  %v5726_v41 = vmax.f32 %v5694_v35, 0.0 }
 0x3d3   : > { %v5693_v63 = vadd.f32 %v9181_v42, %v5654_v1  ;;  %v7275_v12 = vpop.f32.mrb[164].mxu1  ;;  %v5724_v8 = vmax.f32 %v5692_v21, 0.0 }
 0x3d4   : > { %v5727_v7 = vmax.f32 %v5695_v55, 0.0  ;;  %v5592_v46 = vadd.f32 %v7275_v12, %v9146_v39  ;;  %v5583_v53 = vpop.f32.mrb[165].mxu1 }
 0x3d5   : > { %v5725_v32 = vmax.f32 %v5693_v63, 0.0  ;;  %v5584_v26 = vadd.f32 %v5583_v53, %v9140_v56  ;;  %v7276_v20 = vpop.f32.mrb[166].mxu1 }
 0x3d6   : > { %v5659_v16 = vmul.f32 %v9173_v11, %v5592_v46  ;;  %v5595_v4 = vadd.f32 %v7276_v20, %v9148_v58  ;;  %v5586_v47 = vpop.f32.mrb[167].mxu1  ;;  %v5749_v62 = vpack.c.bf16 %v5727_v7, %v5726_v41 }
 0x3d7   : > { %v5657_v23 = vmul.f32 %v9173_v11, %v5584_v26  ;;  %v5587_v45 = vadd.f32 %v5586_v47, %v9142_v10  ;;  %v5748_v0 = vpack.c.bf16 %v5725_v32, %v5724_v8  ;;  %v9293_v47 = vld [vmem:[%s9570_s12] ss:$0 sm:$0xff] }
 0x3d8   : > { %v5698_v19 = vadd.f32 %v9181_v42, %v5659_v16  ;;  %v5660_v39 = vmul.f32 %v9173_v11, %v5595_v4  ;;  %v9288_v4 = vld [vmem:[%s9569_s27] ss:$0 sm:$0xff]  ;;  %s7724_s27 = scalar_lea.vmem %s7723_s14, 8192 }
 0x3d9   : > { %v5696_v2 = vadd.f32 %v9181_v42, %v5657_v23  ;;  %v5658_v56 = vmul.f32 %v9173_v11, %v5587_v45  ;;  %7317 = vmatprep.mubr.bf16.mxu0 %v5748_v0  ;;  %p7726_p1 = scmp.lt.s32.totalorder %s7724_s27, %s7718_s25 }
 0x3da   : > { %v5699_v52 = vadd.f32 %v9181_v42, %v5660_v39  ;;  %7318 = vmatmul.mubr.bf16.gmra.mrb[160].mxu0 %v5749_v62  ;;  %v5730_v60 = vmax.f32 %v5698_v19, 0.0  ;;  %v7572_v62 = vld [vmem:[%s8074_s22 + $0x10] sm:$0xff]  ;;  %v7573_v19 = vld [vmem:[%s8074_s22] sm:$0xff] }
 0x3db   : > { %v5697_v58 = vadd.f32 %v9181_v42, %v5658_v56  ;;  %v7279_v6 = vpop.f32.mrb[168].mxu1  ;;  %v5728_v61 = vmax.f32 %v5696_v2, 0.0  ;;  %p7727_p2 = por %p7726_p1, %p7725_p12 }
 0x3dc   : > { %v5731_v49 = vmax.f32 %v5699_v52, 0.0  ;;  %v5608_v10 = vadd.f32 %v7279_v6, %v9158_v13  ;;  %v5599_v36 = vpop.f32.mrb[169].mxu1  ;;  %v7574_v52 = vld [vmem:[%s8074_s22 + $0x18] sm:$0xff] }
 0x3dd   : > { %v5729_v50 = vmax.f32 %v5697_v58, 0.0  ;;  %v5600_v38 = vadd.f32 %v5599_v36, %v9152_v5  ;;  %v7280_v17 = vpop.f32.mrb[170].mxu1  ;;  %p7728_p4 = pnand %p7727_p2, %p7721_p7 }
 0x3de   : > { %v5663_v18 = vmul.f32 %v9173_v11, %v5608_v10  ;;  %v5611_v25 = vadd.f32 %v7280_v17, %v9160_v9  ;;  %v5602_v43 = vpop.f32.mrb[171].mxu1  ;;  %v5751_v57 = vpack.c.bf16 %v5731_v49, %v5730_v60  ;;  %v7575_v10 = vld [vmem:[%s8074_s22 + $0x8] sm:$0xff] }
 0x3df   : > { %v5661_v33 = vmul.f32 %v9173_v11, %v5600_v38  ;;  %v5603_v37 = vadd.f32 %v5602_v43, %v9154_v3  ;;  %v5750_v54 = vpack.c.bf16 %v5729_v50, %v5728_v61 }
 0x3e0   : > { %v5702_v59 = vadd.f32 %v9181_v42, %v5663_v18  ;;  %v5664_v13 = vmul.f32 %v9173_v11, %v5611_v25 }
 0x3e1   : > { %v5700_v15 = vadd.f32 %v9181_v42, %v5661_v33  ;;  %v5662_v5 = vmul.f32 %v9173_v11, %v5603_v37  ;;  %7321 = vmatprep.mubr.bf16.mxu0 %v5750_v54 }
 0x3e2   : > { %v5703_v31 = vadd.f32 %v9181_v42, %v5664_v13  ;;  %7322 = vmatmul.mubr.bf16.gmra.mrb[164].mxu0 %v5751_v57  ;;  %v5734_v40 = vmax.f32 %v5702_v59, 0.0  ;;  %v7576_v59 = vld [vmem:[%s8074_s22 + $0x30] sm:$0xff] }
 0x3e3   : > { %v5701_v9 = vadd.f32 %v9181_v42, %v5662_v5  ;;  %v7283_v51 = vpop.f32.mrb[172].mxu1  ;;  %v5732_v27 = vmax.f32 %v5700_v15, 0.0 }
 0x3e4   : > { %v5735_v48 = vmax.f32 %v5703_v31, 0.0  ;;  %v5624_v3 = vadd.f32 %v7283_v51, %v9175_v14  ;;  %v5615_v44 = vpop.f32.mrb[173].mxu1 }
 0x3e5   : > { %v5733_v28 = vmax.f32 %v5701_v9, 0.0  ;;  %v5616_v22 = vadd.f32 %v5615_v44, %v9164_v29  ;;  %v7284_v35 = vpop.f32.mrb[174].mxu1  ;;  %v7577_v9 = vld [vmem:[%s8074_s22 + $0x20] sm:$0xff]  ;;  %v7578_v44 = vld [vmem:[%s8074_s22 + $0x38] sm:$0xff] }
 0x3e6   : > { %v5667_v30 = vmul.f32 %v9173_v11, %v5624_v3  ;;  %v5627_v21 = vadd.f32 %v7284_v35, %v9184_v34  ;;  %v5618_v1 = vpop.f32.mrb[175].mxu1  ;;  %v5753_v55 = vpack.c.bf16 %v5735_v48, %v5734_v40 }
 0x3e7   : > { %v5665_v63 = vmul.f32 %v9173_v11, %v5616_v22  ;;  %v5619_v12 = vadd.f32 %v5618_v1, %v9166_v24  ;;  %v5752_v41 = vpack.c.bf16 %v5733_v28, %v5732_v27 }
 0x3e8   : > { %v5706_v7 = vadd.f32 %v9181_v42, %v5667_v30  ;;  %v5668_v14 = vmul.f32 %v9173_v11, %v5627_v21  ;;  %v7579_v30 = vld [vmem:[%s8074_s22 + $0x28] sm:$0xff] }
 0x3e9   : > { %v5704_v46 = vadd.f32 %v9181_v42, %v5665_v63  ;;  %v5666_v29 = vmul.f32 %v9173_v11, %v5619_v12  ;;  %7325 = vmatprep.mubr.bf16.mxu0 %v5752_v41  ;;  %v9283_v11 = vld [vmem:[%s9520_s10] ss:$0 sm:$0xff] }
 0x3ea   : > { %v5707_v53 = vadd.f32 %v9181_v42, %v5668_v14  ;;  %7326 = vmatmul.mubr.bf16.gmra.mrb[168].mxu0 %v5753_v55  ;;  %v5738_v8 = vmax.f32 %v5706_v7, 0.0  ;;  %v6068_v23 = vmul.f32 %v7572_v62, %v9283_v11  ;;  %v6066_v39 = vmul.f32 %v7573_v19, %v9283_v11 }
 0x3eb   : > { %v5705_v34 = vadd.f32 %v9181_v42, %v5666_v29  ;;  %v5736_v24 = vmax.f32 %v5704_v46, 0.0  ;;  %v6069_v58 = vmul.f32 %v7574_v52, %v9283_v11  ;;  %v6067_v36 = vmul.f32 %v7575_v10, %v9283_v11  ;;  %v7583_v52 = vld [vmem:[%s8074_s22 + $0x48] sm:$0xff] }
 0x3ec   : > { %v5739_v32 = vmax.f32 %v5707_v53, 0.0  ;;  %v6072_v13 = vmul.f32 %v7576_v59, %v9283_v11  ;;  %v6070_v51 = vmul.f32 %v7577_v9, %v9283_v11  ;;  %v6073_v27 = vmul.f32 %v7578_v44, %v9283_v11  ;;  %v7585_v59 = vld [vmem:[%s8074_s22 + $0x60] sm:$0xff]  ;;  %v7586_v9 = vld [vmem:[%s8074_s22 + $0x78] sm:$0xff]  ;;  %v7587_v44 = vld [vmem:[%s8074_s22 + $0x68] sm:$0xff] }
 0x3ed   : > { %v5737_v26 = vmax.f32 %v5705_v34, 0.0  ;;  %v6071_v21 = vmul.f32 %v7579_v30, %v9283_v11 }
 0x3ee   : > { %v5755_v20 = vpack.c.bf16 %v5739_v32, %v5738_v8  ;;  %v7580_v8 = vld [vmem:[%s8074_s22 + $0x50] sm:$0xff] }
 0x3ef   : > { %v5754_v16 = vpack.c.bf16 %v5737_v26, %v5736_v24  ;;  %v6076_v32 = vmul.f32 %v7580_v8, %v9283_v11  ;;  %v7589_v8 = vld [vmem:[%s8074_s22 + $0x80] sm:$0xff] }
 0x3f1   : > { %7329 = vmatprep.mubr.bf16.mxu0 %v5754_v16  ;;  %v7581_v16 = vld [vmem:[%s8074_s22 + $0x40] sm:$0xff] }
 0x3f2   : > { %7330 = vmatmul.mubr.bf16.gmra.mrb[172].mxu0 %v5755_v20 }
 0x48d   : > { %v7303_v42 = vpop.f32.mrb[144].mxu0 }
 0x48e   : > { %v5990_v45 = vmul.f32 %v7303_v42, %v9288_v4  ;;  %v5854_v0 = vpop.f32.mrb[145].mxu0  ;;  %v6074_v42 = vmul.f32 %v7581_v16, %v9283_v11  ;;  %v7590_v16 = vld [vmem:[%s8074_s22 + $0x98] sm:$0xff] }
 0x48f   : > { %v5988_v2 = vmul.f32 %v9288_v4, %v5854_v0  ;;  %v7304_v56 = vpop.f32.mrb[146].mxu0  ;;  %v7582_v0 = vld [vmem:[%s8074_s22 + $0x58] sm:$0xff] }
 0x490   : > { %v6029_v6 = vadd.f32 %v9293_v47, %v5990_v45  ;;  %v5991_v60 = vmul.f32 %v7304_v56, %v9288_v4  ;;  %v5857_v49 = vpop.f32.mrb[147].mxu0  ;;  %v6077_v19 = vmul.f32 %v7582_v0, %v9283_v11  ;;  %v7591_v0 = vld [vmem:[%s8074_s22 + $0x88] sm:$0xff] }
 0x491   : > { %v6027_v61 = vadd.f32 %v9293_v47, %v5988_v2  ;;  %v5989_v50 = vmul.f32 %v9288_v4, %v5857_v49 }
 0x492   : > { %v6100_v38 = vadd.f32 %v6068_v23, %v6029_v6  ;;  %v6030_v17 = vadd.f32 %v9293_v47, %v5991_v60 }
 0x493   : > { %v6098_v18 = vadd.f32 %v6066_v39, %v6027_v61  ;;  %v6028_v25 = vadd.f32 %v9293_v47, %v5989_v50 }
 0x494   : > { %v6132_v43 = vmax.f32 %v6100_v38, 0.0  ;;  %v6101_v57 = vadd.f32 %v6069_v58, %v6030_v17  ;;  %v6075_v58 = vmul.f32 %v7583_v52, %v9283_v11 }
 0x495   : > { %v6130_v33 = vmax.f32 %v6098_v18, 0.0  ;;  %v6099_v37 = vadd.f32 %v6067_v36, %v6028_v25  ;;  %v7307_v54 = vpop.f32.mrb[148].mxu0 }
 0x496   : > { %6164 = vst [vmem:[%s9315_s28 + $0x10] sm:$0xff] %v6132_v43  ;;  %v6133_v15 = vmax.f32 %v6101_v57, 0.0  ;;  %v5994_v5 = vmul.f32 %v7307_v54, %v9288_v4  ;;  %v5870_v31 = vpop.f32.mrb[149].mxu0  ;;  %v7584_v43 = vld [vmem:[%s8074_s22 + $0x70] sm:$0xff] }
 0x497   : > { %6162 = vst [vmem:[%s9315_s28] sm:$0xff] %v6130_v33  ;;  %v6131_v40 = vmax.f32 %v6099_v37, 0.0  ;;  %v5992_v48 = vmul.f32 %v9288_v4, %v5870_v31  ;;  %v7308_v3 = vpop.f32.mrb[150].mxu0  ;;  %v6080_v57 = vmul.f32 %v7584_v43, %v9283_v11  ;;  %v7593_v43 = vld [vmem:[%s8074_s22 + $0xa0] sm:$0xff] }
 0x498   : > { %6165 = vst [vmem:[%s9315_s28 + $0x18] sm:$0xff] %v6133_v15  ;;  %v6033_v28 = vadd.f32 %v9293_v47, %v5994_v5  ;;  %v5995_v22 = vmul.f32 %v7308_v3, %v9288_v4  ;;  %v5873_v35 = vpop.f32.mrb[151].mxu0 }
 0x499   : > { %6163 = vst [vmem:[%s9315_s28 + $0x8] sm:$0xff] %v6131_v40  ;;  %v6031_v1 = vadd.f32 %v9293_v47, %v5992_v48  ;;  %v5993_v55 = vmul.f32 %v9288_v4, %v5873_v35 }
 0x49a   : > { %v6104_v63 = vadd.f32 %v6072_v13, %v6033_v28  ;;  %v6034_v12 = vadd.f32 %v9293_v47, %v5995_v22  ;;  %v6078_v13 = vmul.f32 %v7585_v59, %v9283_v11  ;;  %v7594_v59 = vld [vmem:[%s8074_s22 + $0xb8] sm:$0xff] }
 0x49b   : > { %v6102_v41 = vadd.f32 %v6070_v51, %v6031_v1  ;;  %v6032_v7 = vadd.f32 %v9293_v47, %v5993_v55  ;;  %v6081_v51 = vmul.f32 %v7586_v9, %v9283_v11  ;;  %v7595_v9 = vld [vmem:[%s8074_s22 + $0xa8] sm:$0xff] }
 0x49c   : > { %v6136_v14 = vmax.f32 %v6104_v63, 0.0  ;;  %v6105_v46 = vadd.f32 %v6073_v27, %v6034_v12  ;;  %v6079_v27 = vmul.f32 %v7587_v44, %v9283_v11 }
 0x49d   : > { %v6134_v29 = vmax.f32 %v6102_v41, 0.0  ;;  %v6103_v53 = vadd.f32 %v6071_v21, %v6032_v7  ;;  %v7311_v34 = vpop.f32.mrb[152].mxu0 }
 0x49e   : > { %6168 = vst [vmem:[%s9315_s28 + $0x30] sm:$0xff] %v6136_v14  ;;  %v6137_v24 = vmax.f32 %v6105_v46, 0.0  ;;  %v5998_v26 = vmul.f32 %v7311_v34, %v9288_v4  ;;  %v5886_v20 = vpop.f32.mrb[153].mxu0  ;;  %v7588_v14 = vld [vmem:[%s8074_s22 + $0x90] sm:$0xff] }
 0x49f   : > { %6166 = vst [vmem:[%s9315_s28 + $0x20] sm:$0xff] %v6134_v29  ;;  %v6135_v62 = vmax.f32 %v6103_v53, 0.0  ;;  %v5996_v23 = vmul.f32 %v9288_v4, %v5886_v20  ;;  %v7312_v45 = vpop.f32.mrb[154].mxu0  ;;  %v6084_v46 = vmul.f32 %v7588_v14, %v9283_v11  ;;  %v7597_v14 = vld [vmem:[%s8074_s22 + $0xc0] sm:$0xff] }
 0x4a0   : > { %6169 = vst [vmem:[%s9315_s28 + $0x38] sm:$0xff] %v6137_v24  ;;  %v6037_v39 = vadd.f32 %v9293_v47, %v5998_v26  ;;  %v5999_v2 = vmul.f32 %v7312_v45, %v9288_v4  ;;  %v5889_v56 = vpop.f32.mrb[155].mxu0 }
 0x4a1   : > { %6167 = vst [vmem:[%s9315_s28 + $0x28] sm:$0xff] %v6135_v62  ;;  %v6035_v6 = vadd.f32 %v9293_v47, %v5996_v23  ;;  %v5997_v60 = vmul.f32 %v9288_v4, %v5889_v56 }
 0x4a2   : > { %v6108_v49 = vadd.f32 %v6076_v32, %v6037_v39  ;;  %v6038_v10 = vadd.f32 %v9293_v47, %v5999_v2  ;;  %v6082_v32 = vmul.f32 %v7589_v8, %v9283_v11  ;;  %v7598_v8 = vld [vmem:[%s8074_s22 + $0xd8] sm:$0xff] }
 0x4a3   : > { %v6106_v36 = vadd.f32 %v6074_v42, %v6035_v6  ;;  %v6036_v61 = vadd.f32 %v9293_v47, %v5997_v60  ;;  %v6085_v42 = vmul.f32 %v7590_v16, %v9283_v11  ;;  %v7599_v16 = vld [vmem:[%s8074_s22 + $0xc8] sm:$0xff] }
 0x4a4   : > { %v6140_v50 = vmax.f32 %v6108_v49, 0.0  ;;  %v6109_v38 = vadd.f32 %v6077_v19, %v6038_v10  ;;  %v6083_v19 = vmul.f32 %v7591_v0, %v9283_v11 }
 0x4a5   : > { %v6138_v17 = vmax.f32 %v6106_v36, 0.0  ;;  %v6107_v18 = vadd.f32 %v6075_v58, %v6036_v61  ;;  %v7315_v25 = vpop.f32.mrb[156].mxu0 }
 0x4a6   : > { %6172 = vst [vmem:[%s9315_s28 + $0x50] sm:$0xff] %v6140_v50  ;;  %v6141_v33 = vmax.f32 %v6109_v38, 0.0  ;;  %v6002_v37 = vmul.f32 %v7315_v25, %v9288_v4  ;;  %v5902_v54 = vpop.f32.mrb[157].mxu0  ;;  %v7592_v50 = vld [vmem:[%s8074_s22 + $0xb0] sm:$0xff] }
 0x4a7   : > { %6170 = vst [vmem:[%s9315_s28 + $0x40] sm:$0xff] %v6138_v17  ;;  %v6139_v15 = vmax.f32 %v6107_v18, 0.0  ;;  %v6000_v5 = vmul.f32 %v9288_v4, %v5902_v54  ;;  %v7316_v31 = vpop.f32.mrb[158].mxu0  ;;  %v6088_v38 = vmul.f32 %v7592_v50, %v9283_v11  ;;  %v7601_v50 = vld [vmem:[%s8074_s22 + $0xe0] sm:$0xff] }
 0x4a8   : > { %6173 = vst [vmem:[%s9315_s28 + $0x58] sm:$0xff] %v6141_v33  ;;  %v6041_v40 = vadd.f32 %v9293_v47, %v6002_v37  ;;  %v6003_v48 = vmul.f32 %v7316_v31, %v9288_v4  ;;  %v5905_v3 = vpop.f32.mrb[159].mxu0 }
 0x4a9   : > { %6171 = vst [vmem:[%s9315_s28 + $0x48] sm:$0xff] %v6139_v15  ;;  %v6039_v28 = vadd.f32 %v9293_v47, %v6000_v5  ;;  %v6001_v22 = vmul.f32 %v9288_v4, %v5905_v3 }
 0x4aa   : > { %v6112_v35 = vadd.f32 %v6080_v57, %v6041_v40  ;;  %v6042_v30 = vadd.f32 %v9293_v47, %v6003_v48  ;;  %v6086_v57 = vmul.f32 %v7593_v43, %v9283_v11  ;;  %v7602_v43 = vld [vmem:[%s8074_s22 + $0xf8] sm:$0xff] }
 0x4ab   : > { %v6110_v21 = vadd.f32 %v6078_v13, %v6039_v28  ;;  %v6040_v1 = vadd.f32 %v9293_v47, %v6001_v22  ;;  %v6089_v13 = vmul.f32 %v7594_v59, %v9283_v11  ;;  %v7603_v59 = vld [vmem:[%s8074_s22 + $0xe8] sm:$0xff] }
 0x4ac   : > { %v6144_v55 = vmax.f32 %v6112_v35, 0.0  ;;  %v6113_v63 = vadd.f32 %v6081_v51, %v6042_v30  ;;  %v6087_v51 = vmul.f32 %v7595_v9, %v9283_v11 }
 0x4ad   : > { %v6142_v12 = vmax.f32 %v6110_v21, 0.0  ;;  %v6111_v41 = vadd.f32 %v6079_v27, %v6040_v1  ;;  %v7319_v7 = vpop.f32.mrb[160].mxu0 }
 0x4ae   : > { %6176 = vst [vmem:[%s9315_s28 + $0x70] sm:$0xff] %v6144_v55  ;;  %v6145_v29 = vmax.f32 %v6113_v63, 0.0  ;;  %v6006_v53 = vmul.f32 %v7319_v7, %v9288_v4  ;;  %v5918_v34 = vpop.f32.mrb[161].mxu0  ;;  %v7596_v55 = vld [vmem:[%s8074_s22 + $0xd0] sm:$0xff] }
 0x4af   : > { %6174 = vst [vmem:[%s9315_s28 + $0x60] sm:$0xff] %v6142_v12  ;;  %v6143_v24 = vmax.f32 %v6111_v41, 0.0  ;;  %v6004_v26 = vmul.f32 %v9288_v4, %v5918_v34  ;;  %v7320_v20 = vpop.f32.mrb[162].mxu0  ;;  %v6092_v63 = vmul.f32 %v7596_v55, %v9283_v11 }
 0x4b0   : > { %6177 = vst [vmem:[%s9315_s28 + $0x78] sm:$0xff] %v6145_v29  ;;  %v6045_v62 = vadd.f32 %v9293_v47, %v6006_v53  ;;  %v6007_v23 = vmul.f32 %v7320_v20, %v9288_v4  ;;  %v5921_v45 = vpop.f32.mrb[163].mxu0 }
 0x4b1   : > { %6175 = vst [vmem:[%s9315_s28 + $0x68] sm:$0xff] %v6143_v24  ;;  %v6043_v39 = vadd.f32 %v9293_v47, %v6004_v26  ;;  %v6005_v2 = vmul.f32 %v9288_v4, %v5921_v45 }
 0x4b2   : > { %v6116_v56 = vadd.f32 %v6084_v46, %v6045_v62  ;;  %v6046_v52 = vadd.f32 %v9293_v47, %v6007_v23  ;;  %v6090_v46 = vmul.f32 %v7597_v14, %v9283_v11 }
 0x4b3   : > { %v6114_v58 = vadd.f32 %v6082_v32, %v6043_v39  ;;  %v6044_v6 = vadd.f32 %v9293_v47, %v6005_v2  ;;  %v6093_v32 = vmul.f32 %v7598_v8, %v9283_v11 }
 0x4b4   : > { %v6148_v60 = vmax.f32 %v6116_v56, 0.0  ;;  %v6117_v49 = vadd.f32 %v6085_v42, %v6046_v52  ;;  %v6091_v42 = vmul.f32 %v7599_v16, %v9283_v11 }
 0x4b5   : > { %v6146_v10 = vmax.f32 %v6114_v58, 0.0  ;;  %v6115_v36 = vadd.f32 %v6083_v19, %v6044_v6  ;;  %v7323_v61 = vpop.f32.mrb[164].mxu0 }
 0x4b6   : > { %6180 = vst [vmem:[%s9315_s28 + $0x90] sm:$0xff] %v6148_v60  ;;  %v6149_v17 = vmax.f32 %v6117_v49, 0.0  ;;  %v6010_v18 = vmul.f32 %v7323_v61, %v9288_v4  ;;  %v5934_v25 = vpop.f32.mrb[165].mxu0  ;;  %v7600_v60 = vld [vmem:[%s8074_s22 + $0xf0] sm:$0xff] }
 0x4b7   : > { %6178 = vst [vmem:[%s9315_s28 + $0x80] sm:$0xff] %v6146_v10  ;;  %v6147_v33 = vmax.f32 %v6115_v36, 0.0  ;;  %v6008_v37 = vmul.f32 %v9288_v4, %v5934_v25  ;;  %v7324_v54 = vpop.f32.mrb[166].mxu0  ;;  %v6096_v49 = vmul.f32 %v7600_v60, %v9283_v11 }
 0x4b8   : > { %6181 = vst [vmem:[%s9315_s28 + $0x98] sm:$0xff] %v6149_v17  ;;  %v6049_v15 = vadd.f32 %v9293_v47, %v6010_v18  ;;  %v6011_v5 = vmul.f32 %v7324_v54, %v9288_v4  ;;  %v5937_v31 = vpop.f32.mrb[167].mxu0 }
 0x4b9   : > { %6179 = vst [vmem:[%s9315_s28 + $0x88] sm:$0xff] %v6147_v33  ;;  %v6047_v40 = vadd.f32 %v9293_v47, %v6008_v37  ;;  %v6009_v48 = vmul.f32 %v9288_v4, %v5937_v31 }
 0x4ba   : > { %v6120_v3 = vadd.f32 %v6088_v38, %v6049_v15  ;;  %v6050_v44 = vadd.f32 %v9293_v47, %v6011_v5  ;;  %v6094_v38 = vmul.f32 %v7601_v50, %v9283_v11 }
 0x4bb   : > { %v6118_v27 = vadd.f32 %v6086_v57, %v6047_v40  ;;  %v6048_v28 = vadd.f32 %v9293_v47, %v6009_v48  ;;  %v6097_v57 = vmul.f32 %v7602_v43, %v9283_v11 }
 0x4bc   : > { %v6152_v22 = vmax.f32 %v6120_v3, 0.0  ;;  %v6121_v35 = vadd.f32 %v6089_v13, %v6050_v44  ;;  %v6095_v13 = vmul.f32 %v7603_v59, %v9283_v11 }
 0x4bd   : > { %v6150_v30 = vmax.f32 %v6118_v27, 0.0  ;;  %v6119_v21 = vadd.f32 %v6087_v51, %v6048_v28  ;;  %v7327_v1 = vpop.f32.mrb[168].mxu0 }
 0x4be   : > { %6184 = vst [vmem:[%s9315_s28 + $0xb0] sm:$0xff] %v6152_v22  ;;  %v6153_v12 = vmax.f32 %v6121_v35, 0.0  ;;  %v6014_v41 = vmul.f32 %v7327_v1, %v9288_v4  ;;  %v5950_v7 = vpop.f32.mrb[169].mxu0 }
 0x4bf   : > { %6182 = vst [vmem:[%s9315_s28 + $0xa0] sm:$0xff] %v6150_v30  ;;  %v6151_v29 = vmax.f32 %v6119_v21, 0.0  ;;  %v6012_v53 = vmul.f32 %v9288_v4, %v5950_v7  ;;  %v7328_v34 = vpop.f32.mrb[170].mxu0 }
 0x4c0   : > { %6185 = vst [vmem:[%s9315_s28 + $0xb8] sm:$0xff] %v6153_v12  ;;  %v6053_v24 = vadd.f32 %v9293_v47, %v6014_v41  ;;  %v6015_v26 = vmul.f32 %v7328_v34, %v9288_v4  ;;  %v5953_v20 = vpop.f32.mrb[171].mxu0 }
 0x4c1   : > { %6183 = vst [vmem:[%s9315_s28 + $0xa8] sm:$0xff] %v6151_v29  ;;  %v6051_v62 = vadd.f32 %v9293_v47, %v6012_v53  ;;  %v6013_v23 = vmul.f32 %v9288_v4, %v5953_v20 }
 0x4c2   : > { %v6124_v45 = vadd.f32 %v6092_v63, %v6053_v24  ;;  %v6054_v0 = vadd.f32 %v9293_v47, %v6015_v26 }
 0x4c3   : > { %v6122_v19 = vadd.f32 %v6090_v46, %v6051_v62  ;;  %v6052_v39 = vadd.f32 %v9293_v47, %v6013_v23 }
 0x4c4   : > { %v6156_v2 = vmax.f32 %v6124_v45, 0.0  ;;  %v6125_v56 = vadd.f32 %v6093_v32, %v6054_v0 }
 0x4c5   : > { %v6154_v52 = vmax.f32 %v6122_v19, 0.0  ;;  %v6123_v58 = vadd.f32 %v6091_v42, %v6052_v39  ;;  %v7331_v6 = vpop.f32.mrb[172].mxu0 }
 0x4c6   : > { %6188 = vst [vmem:[%s9315_s28 + $0xd0] sm:$0xff] %v6156_v2  ;;  %v6157_v10 = vmax.f32 %v6125_v56, 0.0  ;;  %v6018_v36 = vmul.f32 %v7331_v6, %v9288_v4  ;;  %v5966_v61 = vpop.f32.mrb[173].mxu0 }
 0x4c7   : > { %6186 = vst [vmem:[%s9315_s28 + $0xc0] sm:$0xff] %v6154_v52  ;;  %v6155_v17 = vmax.f32 %v6123_v58, 0.0  ;;  %v6016_v18 = vmul.f32 %v9288_v4, %v5966_v61  ;;  %v7332_v25 = vpop.f32.mrb[174].mxu0 }
 0x4c8   : > { %6189 = vst [vmem:[%s9315_s28 + $0xd8] sm:$0xff] %v6157_v10  ;;  %v6057_v33 = vadd.f32 %v9293_v47, %v6018_v36  ;;  %v6019_v37 = vmul.f32 %v7332_v25, %v9288_v4  ;;  %v5969_v54 = vpop.f32.mrb[175].mxu0 }
 0x4c9   : > { %6187 = vst [vmem:[%s9315_s28 + $0xc8] sm:$0xff] %v6155_v17  ;;  %v6055_v15 = vadd.f32 %v9293_v47, %v6016_v18  ;;  %v6017_v5 = vmul.f32 %v9288_v4, %v5969_v54 }
 0x4ca   : > { %v6128_v31 = vadd.f32 %v6096_v49, %v6057_v33  ;;  %v6058_v9 = vadd.f32 %v9293_v47, %v6019_v37 }
 0x4cb   : > { %v6126_v51 = vadd.f32 %v6094_v38, %v6055_v15  ;;  %v6056_v40 = vadd.f32 %v9293_v47, %v6017_v5 }
 0x4cc   : > { %v6160_v48 = vmax.f32 %v6128_v31, 0.0  ;;  %v6129_v11 = vadd.f32 %v6097_v57, %v6058_v9 }
 0x4cd   : > { %v6158_v3 = vmax.f32 %v6126_v51, 0.0  ;;  %v6127_v44 = vadd.f32 %v6095_v13, %v6056_v40 }
 0x4ce   : > { %6192 = vst [vmem:[%s9315_s28 + $0xf0] sm:$0xff] %v6160_v48  ;;  %v6161_v27 = vmax.f32 %v6129_v11, 0.0 }
 0x4cf   : > { %6190 = vst [vmem:[%s9315_s28 + $0xe0] sm:$0xff] %v6158_v3  ;;  %v6159_v4 = vmax.f32 %v6127_v44, 0.0 }
 0x4d0   : > { %6193 = vst [vmem:[%s9315_s28 + $0xf8] sm:$0xff] %v6161_v27 }
 0x4d1   : > { %6191 = vst [vmem:[%s9315_s28 + $0xe8] sm:$0xff] %v6159_v4 }
 0x4d2   : > { %7731 = shalt.err (!%p7728_p4)
}
 0x4d3   : > { %s7732_s30 = scalar_lea.hbm %s9461_s23, 4096  ;;  %s7736_s28 = scalar_lea.hbm %s9571_s15, 8192 }
 0x4d4   : > { %p7733_p9 = scmp.ne.s32.totalorder %s9461_s23, %s7732_s30  ;;  %p7737_p8 = scmp.lt.u32.totalorder %s9461_s23, %s9571_s15 }
 0x4d5   : > { %p7738_p13 = scmp.lt.u32.totalorder %s7736_s28, %s7732_s30  ;;  %p7740_p10 = scmp.lt.u32.totalorder %s7732_s30, %s9461_s23 }
 0x4d6   : > { %p7734_p0 = pnand %p7733_p9, %p8020_p5 }
 0x4d7   : > { %p7739_p6 = por %p7738_p13, %p7737_p8 }
 0x4d8   : > { %p7735_p11 = pneg %p7734_p0 }
 0x4d9   : > { %p7741_p3 = por %p7740_p10, %p7739_p6 }
 0x4db   : > { %p7742_p7 = pnand %p7741_p3, %p7735_p11 }
 0x4dd   : > { %7745 = shalt.err (!%p7742_p7)
}
 0x4de   : > { %s7804_s9 = smov 128   ;;  %s7805_s25 = smov 8  }
 0x4df   : > { %7363 = dma.vmem_to_hbm [thread:$0]  (%p8020_p5), %s9463_s8, 4096, %s9461_s23, %s6195_s21, %s7804_s9, %s7804_s9, %s7805_s25  }
 0x4e0 PF: > { %s9572_s29 = sld [smem:[#allocation17_spill]]  ;;  %s9573_s14 = sld [smem:[#allocation18_spill]] }
 0x4e1   : > { %p9575_p1 = scmp.ge.s32.totalorder %s7792_s20, 2 }
 0x4e6   : > { %s6223_s27 = sand.u32 1, %s9572_s29   ;;  %p9574_p12 = scmp.ne.s32.totalorder %s9573_s14, 0 }
 0x4e7   : > { %s6224_s30 = scalar_lea.sflag [#allocation6], %s6223_s27 }
 0x4e8   : > { %p7380_p2 = pnand %p9575_p1, %p9574_p12 }
 0x4ea   : > { %7775 = dma.done.wait (!%p7380_p2), %s6224_s30, 4096  }
 0x4eb   : > { %7777 = vsyncadd (!%p7380_p2), %s6224_s30, 4294963200  ;;  %p26_p4 = scmp.ge.s32.totalorder %s8006_s24, 4   ;;  %s9576_s17 = smov %s7784_s18 }
 0x4ec   : > { %s9577_s18 = smov %s7788_s19  ;;  %s9578_s19 = smov %s8016_s11 }
 0x4ed   : > { %s9579_s20 = smov %s8006_s24  ;;  %28 = sbr.rel (!%p26_p4) target bundleno = 11 (0xb), region = 123 }
 0x4f4   :  { %6229 = vsyncpa [#allocation5], 1 }
 0x4f5   :  { %6231 = vsyncpa [#allocation5 + $0x1], 1 }
 0x4f6   :  { %6232 = vsyncpa [#allocation8], 1 }
 0x4f7   :  { %6233 = vsyncpa [#allocation11], 1 }
 0x4f8   :  { %6234 = vsyncpa [#allocation6], 1 }
 0x4f9   :  { %6236 = vsyncpa [#allocation6 + $0x1], 1 }

</bundles_post_ra>
